<compile_context>
chip_gen: v5e
topology: v5e:2x2
jax: 0.10.0
libtpu: 0.0.40
codegen_flags: <defaults>
</compile_context>

<pallas_src>
import functools

import jax
import jax.numpy as jnp
import numpy as np
from jax import lax
from jax.experimental import pallas as pl
from jax.experimental.pallas import tpu as pltpu

BN_EPS = 1e-5
_LPAD = 8   # left halo width along W (sublane dim) -> sublane-aligned fill


# ------------------------------ in-kernel helpers --------------------------- #

def _zero_fill(ref):
    ref[...] = jnp.zeros(ref.shape, ref.dtype)


def _im2col_s1(pad_ref, Hs, Ws, C):
    """im2col for a 3x3 stride-1 conv (padding already materialized).

    pad_ref: (Hs+2, _LPAD+Ws+1, C) VMEM scratch; zeros everywhere except the
             data block at rows [1:Hs+1], cols [_LPAD:_LPAD+Ws].
    Returns (Hs*Ws, 9*C) patches, taps in (di, dj) row-major order.
    """
    slabs = []
    for di in range(3):
        for dj in range(3):
            blk = pad_ref[di:di + Hs, _LPAD - 1 + dj:_LPAD - 1 + dj + Ws, :]
            slabs.append(blk.reshape(Hs * Ws, C))
    return jnp.concatenate(slabs, axis=-1)


def _im2col_s2_folded(pad_ref, Ho, Wo, C):
    """im2col for a 3x3 stride-2 conv on a column-parity-folded input.

    The folded input satisfies folded[h, wk, p*C + c] == x[h, 2*wk + p, c].
    pad_ref: (2*Ho+2, _LPAD+Wo+1, 2*C) VMEM scratch; zeros except the data
             block at rows [1:2*Ho+1], cols [_LPAD:_LPAD+Wo].
    Returns (Ho*Wo, 9*C) patches, taps in (di, dj) row-major order.
    """
    slabs = []
    for di in range(3):
        for dj in range(3):
            # input col 2*oj + dj - 1 == 2*wk + p :
            if dj == 0:
                c0, p = _LPAD - 1, 1      # wk = oj - 1, odd phase
            elif dj == 1:
                c0, p = _LPAD, 0          # wk = oj,     even phase
            else:
                c0, p = _LPAD, 1          # wk = oj,     odd phase
            blk = pad_ref[di:di + 2 * Ho, c0:c0 + Wo, :]     # (2Ho, Wo, 2C)
            blk = blk[:, :, p * C:(p + 1) * C]               # (2Ho, Wo, C)
            # input row 2*oi + di - 1 -> padded row 2*oi + di: keep every 2nd
            blk = blk.reshape(Ho, 2, Wo, C)[:, 0]            # (Ho, Wo, C)
            slabs.append(blk.reshape(Ho * Wo, C))
    return jnp.concatenate(slabs, axis=-1)


# ------------------------------ fused layer kernel -------------------------- #

def _residual_layer_kernel(*refs, H, W, Cin, Ch, downsample):
    """One EncoderResidualLayer, fully fused (inference-mode BN folded)."""
    if downsample:
        (x_ref, w1_ref, s1_ref, b1_ref, w2_ref, s2_ref, b2_ref,
         wd_ref, sd_ref, bd_ref, o_ref, pad1_ref, pad2_ref) = refs
        Ho, Wo = H // 2, W // 2
    else:
        (x_ref, w1_ref, s1_ref, b1_ref, w2_ref, s2_ref, b2_ref,
         o_ref, pad1_ref, pad2_ref) = refs
        Ho, Wo = H, W

    x = x_ref[0]                          # (H, W, Cin) or (H, W/2, 2*Cin)

    # ---- conv1 (3x3, stride 1 or 2) + BN1 + ReLU ---------------------------
    _zero_fill(pad1_ref)
    pad1_ref[1:x.shape[0] + 1, _LPAD:_LPAD + x.shape[1], :] = x
    if downsample:
        patches1 = _im2col_s2_folded(pad1_ref, Ho, Wo, Cin)   # (HoWo, 9*Cin)
    else:
        patches1 = _im2col_s1(pad1_ref, H, W, Cin)
    y1 = jnp.dot(patches1, w1_ref[...], preferred_element_type=jnp.float32)
    y1 = jnp.maximum(y1 * s1_ref[...] + b1_ref[...], 0.0)     # (HoWo, Ch)

    # ---- identity branch ---------------------------------------------------
    if downsample:
        # 1x1 stride-2 conv + BN: even rows, even cols (= phase-0 lanes).
        x_even = x.reshape(Ho, 2, Wo, 2 * Cin)[:, 0]          # even rows
        x_even = x_even[:, :, :Cin].reshape(Ho * Wo, Cin)     # even cols
        identity = jnp.dot(x_even, wd_ref[...],
                           preferred_element_type=jnp.float32)
        identity = identity * sd_ref[...] + bd_ref[...]
    else:
        identity = x.reshape(H * W, Cin)                      # Cin == Ch here

    # ---- conv2 (3x3) + BN2 + residual + ReLU -------------------------------
    _zero_fill(pad2_ref)
    pad2_ref[1:Ho + 1, _LPAD:_LPAD + Wo, :] = y1.reshape(Ho, Wo, Ch)
    patches2 = _im2col_s1(pad2_ref, Ho, Wo, Ch)               # (HoWo, 9*Ch)
    y2 = jnp.dot(patches2, w2_ref[...], preferred_element_type=jnp.float32)
    y2 = y2 * s2_ref[...] + b2_ref[...] + identity
    o_ref[0] = jnp.maximum(y2, 0.0).reshape(Ho, Wo, Ch).astype(o_ref.dtype)


# ------------------------------ layer / block wrappers ---------------------- #

def pallas_residual_layer(x, p, downsample):
    """One EncoderResidualLayer on an NHWC activation x: (B, H, W, Cin)."""
    B, H, W, Cin = x.shape
    Ch = p["w1"].shape[-1]

    # 2-D weight slabs: rows in (di, dj, cin) order -> matches im2col columns.
    w1 = p["w1"].reshape(9 * Cin, Ch)
    w2 = p["w2"].reshape(9 * Ch, Ch)
    s1, b1 = p["s1"].reshape(1, Ch), p["b1"].reshape(1, Ch)
    s2, b2 = p["s2"].reshape(1, Ch), p["b2"].reshape(1, Ch)

    kernel = functools.partial(_residual_layer_kernel, H=H, W=W, Cin=Cin,
                               Ch=Ch, downsample=downsample)

    def rep(shape):                       # broadcast (replicated) operand
        return pl.BlockSpec(shape, lambda b: (0, 0))

    if downsample:
        assert H % 2 == 0 and W % 2 == 0, "stride-2 layer needs even H, W"
        Ho, Wo = H // 2, W // 2
        # Fold column parity into the channel/lane dim (free row-major view):
        # xf[b, h, wk, p*Cin + c] == x[b, h, 2*wk + p, c]
        xf = x.reshape(B, H, Wo, 2 * Cin)
        in_specs = [pl.BlockSpec((1, H, Wo, 2 * Cin), lambda b: (b, 0, 0, 0)),
                    rep((9 * Cin, Ch)), rep((1, Ch)), rep((1, Ch)),
                    rep((9 * Ch, Ch)), rep((1, Ch)), rep((1, Ch)),
                    rep((Cin, Ch)), rep((1, Ch)), rep((1, Ch))]
        args = (xf, w1, s1, b1, w2, s2, b2,
                p["wd"], p["sd"].reshape(1, Ch), p["bd"].reshape(1, Ch))
        scratch = [pltpu.VMEM((H + 2, _LPAD + Wo + 1, 2 * Cin), jnp.float32),
                   pltpu.VMEM((Ho + 2, _LPAD + Wo + 1, Ch), jnp.float32)]
    else:
        Ho, Wo = H, W
        in_specs = [pl.BlockSpec((1, H, W, Cin), lambda b: (b, 0, 0, 0)),
                    rep((9 * Cin, Ch)), rep((1, Ch)), rep((1, Ch)),
                    rep((9 * Ch, Ch)), rep((1, Ch)), rep((1, Ch))]
        args = (x, w1, s1, b1, w2, s2, b2)
        scratch = [pltpu.VMEM((H + 2, _LPAD + W + 1, Cin), jnp.float32),
                   pltpu.VMEM((Ho + 2, _LPAD + Wo + 1, Ch), jnp.float32)]

    return pl.pallas_call(
        kernel,
        out_shape=jax.ShapeDtypeStruct((B, Ho, Wo, Ch), jnp.float32),
        grid=(B,),
        in_specs=in_specs,
        out_specs=pl.BlockSpec((1, Ho, Wo, Ch), lambda b: (b, 0, 0, 0)),
        scratch_shapes=scratch,
        compiler_params=pltpu.CompilerParams(
            dimension_semantics=("parallel",),
            vmem_limit_bytes=48 * 1024 * 1024),
    )(*args)


def encoder_residual_block_pallas(x_nchw, params):
    x = jnp.transpose(x_nchw, (0, 2, 3, 1))      # NCHW -> NHWC
    for i, p in enumerate(params):
        x = pallas_residual_layer(x, p, downsample=(i == 0))
    return jnp.transpose(x, (0, 3, 1, 2))        # NHWC -> NCHW


# ------------------------------ parameter construction ---------------------- #

def _bn_fold(kg, kb, km, kv, c):
    gamma = 1.0 + 0.1 * jax.random.normal(kg, (c,), jnp.float32)
    beta = 0.1 * jax.random.normal(kb, (c,), jnp.float32)
    mean = 0.1 * jax.random.normal(km, (c,), jnp.float32)
    var = 1.0 + 0.1 * jnp.abs(jax.random.normal(kv, (c,), jnp.float32))
    scale = gamma * lax.rsqrt(var + BN_EPS)
    bias = beta - mean * scale
    return scale, bias


def init_layer_params(key, cin, ch, downsample):
    ks = jax.random.split(key, 15)

    def conv_w(k, kh, kw, ci, co):
        fan_in = kh * kw * ci
        return jax.random.normal(k, (kh, kw, ci, co), jnp.float32) / np.sqrt(fan_in)

    p = {}
    p["w1"] = conv_w(ks[0], 3, 3, cin, ch)                # HWIO
    p["s1"], p["b1"] = _bn_fold(ks[1], ks[2], ks[3], ks[4], ch)
    p["w2"] = conv_w(ks[5], 3, 3, ch, ch)
    p["s2"], p["b2"] = _bn_fold(ks[6], ks[7], ks[8], ks[9], ch)
    if downsample:
        p["wd"] = conv_w(ks[10], 1, 1, cin, ch)[0, 0]     # (Cin, Cout)
        p["sd"], p["bd"] = _bn_fold(ks[11], ks[12], ks[13], ks[14], ch)
    return p


def init_block_params(key, in_channels, hidden_channels, layers):
    params = []
    for i in range(layers):
        key, sub = jax.random.split(key)
        cin = in_channels if i == 0 else hidden_channels
        params.append(init_layer_params(sub, cin, hidden_channels,
                                        downsample=(i == 0)))
    return params


# ------------------------------ JAX reference -------------------------------- #

def _ref_layer(x, p, downsample):
    stride = (2, 2) if downsample else (1, 1)
    dn = ("NHWC", "HWIO", "NHWC")
    y = lax.conv_general_dilated(x, p["w1"], stride, [(1, 1), (1, 1)],
                                 dimension_numbers=dn)
    y = jnp.maximum(y * p["s1"] + p["b1"], 0.0)
    y = lax.conv_general_dilated(y, p["w2"], (1, 1), [(1, 1), (1, 1)],
                                 dimension_numbers=dn)
    y = y * p["s2"] + p["b2"]
    if downsample:
        ident = lax.conv_general_dilated(x, p["wd"][None, None], (2, 2),
                                         [(0, 0), (0, 0)], dimension_numbers=dn)
        ident = ident * p["sd"] + p["bd"]
    else:
        ident = x
    return jnp.maximum(y + ident, 0.0)


def encoder_residual_block_ref(x_nchw, params):
    x = jnp.transpose(x_nchw, (0, 2, 3, 1))
    for i, p in enumerate(params):
        x = _ref_layer(x, p, downsample=(i == 0))
    return jnp.transpose(x, (0, 3, 1, 2))


# ------------------------------------ main ----------------------------------- #

if __name__ == "__main__":
    B, Cin, H, W = 2, 4, 16, 16
    hidden_channels, layers = 8, 2

    key = jax.random.PRNGKey(0)
    kx, kp = jax.random.split(key)
    x = jax.random.normal(kx, (B, Cin, H, W), jnp.float32)   # PyTorch-style NCHW
    params = init_block_params(kp, Cin, hidden_channels, layers)

    out = jax.jit(encoder_residual_block_pallas)(x, params)
    out = jax.block_until_ready(out)

    ref = encoder_residual_block_ref(x, params)
    assert out.shape == (B, hidden_channels, H // 2, W // 2)
    np.testing.assert_allclose(np.asarray(out), np.asarray(ref),
                               rtol=1e-3, atol=1e-3)
    print("KERNEL_OK")
</pallas_src>

<mosaic_0001>
module attributes {stable_mosaic.version = 11 : i64} {
  func.func @_residual_layer_kernel(%arg0: i32, %arg1: memref<1x16x8x8xf32, #tpu.memory_space<vmem>>, %arg2: memref<36x8xf32, #tpu.memory_space<vmem>>, %arg3: memref<1x8xf32, #tpu.memory_space<vmem>>, %arg4: memref<1x8xf32, #tpu.memory_space<vmem>>, %arg5: memref<72x8xf32, #tpu.memory_space<vmem>>, %arg6: memref<1x8xf32, #tpu.memory_space<vmem>>, %arg7: memref<1x8xf32, #tpu.memory_space<vmem>>, %arg8: memref<4x8xf32, #tpu.memory_space<vmem>>, %arg9: memref<1x8xf32, #tpu.memory_space<vmem>>, %arg10: memref<1x8xf32, #tpu.memory_space<vmem>>, %arg11: memref<1x8x8x8xf32, #tpu.memory_space<vmem>>, %arg12: memref<18x17x8xf32, #tpu.memory_space<vmem>>, %arg13: memref<10x17x8xf32, #tpu.memory_space<vmem>>) attributes {dimension_semantics = [#tpu.dimension_semantics<parallel>], iteration_bounds = array<i64: 2>, scalar_prefetch = 0 : i64, scratch_operands = 2 : i64, tpu.core_type = #tpu.core_type<tc>, window_params = [{transform_indices = @transform_0, window_bounds = array<i64: 1, 16, 8, 8>}, {pipeline_mode = #tpu.pipeline_mode<synchronous>, transform_indices = @transform_1, window_bounds = array<i64: 36, 8>}, {pipeline_mode = #tpu.pipeline_mode<synchronous>, transform_indices = @transform_2, window_bounds = array<i64: 1, 8>}, {pipeline_mode = #tpu.pipeline_mode<synchronous>, transform_indices = @transform_3, window_bounds = array<i64: 1, 8>}, {pipeline_mode = #tpu.pipeline_mode<synchronous>, transform_indices = @transform_4, window_bounds = array<i64: 72, 8>}, {pipeline_mode = #tpu.pipeline_mode<synchronous>, transform_indices = @transform_5, window_bounds = array<i64: 1, 8>}, {pipeline_mode = #tpu.pipeline_mode<synchronous>, transform_indices = @transform_6, window_bounds = array<i64: 1, 8>}, {pipeline_mode = #tpu.pipeline_mode<synchronous>, transform_indices = @transform_7, window_bounds = array<i64: 4, 8>}, {pipeline_mode = #tpu.pipeline_mode<synchronous>, transform_indices = @transform_8, window_bounds = array<i64: 1, 8>}, {pipeline_mode = #tpu.pipeline_mode<synchronous>, transform_indices = @transform_9, window_bounds = array<i64: 1, 8>}, {transform_indices = @transform_10, window_bounds = array<i64: 1, 8, 8, 8>}]} {
    %c0 = arith.constant 0 : index
    %c0_0 = arith.constant 0 : index
    %c0_1 = arith.constant 0 : index
    %c0_2 = arith.constant 0 : index
    %0 = vector.load %arg1[%c0, %c0_0, %c0_1, %c0_2] : memref<1x16x8x8xf32, #tpu.memory_space<vmem>>, vector<1x16x8x8xf32>
    %1 = vector.shape_cast %0 : vector<1x16x8x8xf32> to vector<16x8x8xf32>
    %cst = arith.constant 0.000000e+00 : f32
    %2 = vector.broadcast %cst : f32 to vector<18x17x8xf32>
    %c0_3 = arith.constant 0 : index
    %c0_4 = arith.constant 0 : index
    %c0_5 = arith.constant 0 : index
    %3 = vector.load %arg12[%c0_3, %c0_4, %c0_5] : memref<18x17x8xf32, #tpu.memory_space<vmem>>, vector<18x17x8xf32>
    tpu.vector_store %arg12[%c0_3, %c0_4, %c0_5], %2 {strides = array<i32>} : memref<18x17x8xf32, #tpu.memory_space<vmem>>, vector<18x17x8xf32>,
    %c1 = arith.constant 1 : index
    %c8 = arith.constant 8 : index
    %c0_6 = arith.constant 0 : index
    %4 = vector.load %arg12[%c1, %c8, %c0_6] : memref<18x17x8xf32, #tpu.memory_space<vmem>>, vector<16x8x8xf32>
    tpu.vector_store %arg12[%c1, %c8, %c0_6], %1 {strides = array<i32>} : memref<18x17x8xf32, #tpu.memory_space<vmem>>, vector<16x8x8xf32>,
    %c0_7 = arith.constant 0 : index
    %c7 = arith.constant 7 : index
    %c0_8 = arith.constant 0 : index
    %5 = vector.load %arg12[%c0_7, %c7, %c0_8] : memref<18x17x8xf32, #tpu.memory_space<vmem>>, vector<16x8x8xf32>
    %6 = vector.extract_strided_slice %5 {offsets = [0, 0, 4], sizes = [16, 8, 4], strides = [1, 1, 1]} : vector<16x8x8xf32> to vector<16x8x4xf32>
    %7 = vector.shape_cast %6 : vector<16x8x4xf32> to vector<8x2x8x4xf32>
    %8 = vector.extract_strided_slice %7 {offsets = [0, 0, 0, 0], sizes = [8, 1, 8, 4], strides = [1, 1, 1, 1]} : vector<8x2x8x4xf32> to vector<8x1x8x4xf32>
    %9 = vector.shape_cast %8 : vector<8x1x8x4xf32> to vector<8x8x4xf32>
    %10 = vector.shape_cast %9 : vector<8x8x4xf32> to vector<64x4xf32>
    %c0_9 = arith.constant 0 : index
    %c8_10 = arith.constant 8 : index
    %c0_11 = arith.constant 0 : index
    %11 = vector.load %arg12[%c0_9, %c8_10, %c0_11] : memref<18x17x8xf32, #tpu.memory_space<vmem>>, vector<16x8x8xf32>
    %12 = vector.extract_strided_slice %11 {offsets = [0, 0, 0], sizes = [16, 8, 4], strides = [1, 1, 1]} : vector<16x8x8xf32> to vector<16x8x4xf32>
    %13 = vector.shape_cast %12 : vector<16x8x4xf32> to vector<8x2x8x4xf32>
    %14 = vector.extract_strided_slice %13 {offsets = [0, 0, 0, 0], sizes = [8, 1, 8, 4], strides = [1, 1, 1, 1]} : vector<8x2x8x4xf32> to vector<8x1x8x4xf32>
    %15 = vector.shape_cast %14 : vector<8x1x8x4xf32> to vector<8x8x4xf32>
    %16 = vector.shape_cast %15 : vector<8x8x4xf32> to vector<64x4xf32>
    %c0_12 = arith.constant 0 : index
    %c8_13 = arith.constant 8 : index
    %c0_14 = arith.constant 0 : index
    %17 = vector.load %arg12[%c0_12, %c8_13, %c0_14] : memref<18x17x8xf32, #tpu.memory_space<vmem>>, vector<16x8x8xf32>
    %18 = vector.extract_strided_slice %17 {offsets = [0, 0, 4], sizes = [16, 8, 4], strides = [1, 1, 1]} : vector<16x8x8xf32> to vector<16x8x4xf32>
    %19 = vector.shape_cast %18 : vector<16x8x4xf32> to vector<8x2x8x4xf32>
    %20 = vector.extract_strided_slice %19 {offsets = [0, 0, 0, 0], sizes = [8, 1, 8, 4], strides = [1, 1, 1, 1]} : vector<8x2x8x4xf32> to vector<8x1x8x4xf32>
    %21 = vector.shape_cast %20 : vector<8x1x8x4xf32> to vector<8x8x4xf32>
    %22 = vector.shape_cast %21 : vector<8x8x4xf32> to vector<64x4xf32>
    %c1_15 = arith.constant 1 : index
    %c7_16 = arith.constant 7 : index
    %c0_17 = arith.constant 0 : index
    %23 = vector.load %arg12[%c1_15, %c7_16, %c0_17] : memref<18x17x8xf32, #tpu.memory_space<vmem>>, vector<16x8x8xf32>
    %24 = vector.extract_strided_slice %23 {offsets = [0, 0, 4], sizes = [16, 8, 4], strides = [1, 1, 1]} : vector<16x8x8xf32> to vector<16x8x4xf32>
    %25 = vector.shape_cast %24 : vector<16x8x4xf32> to vector<8x2x8x4xf32>
    %26 = vector.extract_strided_slice %25 {offsets = [0, 0, 0, 0], sizes = [8, 1, 8, 4], strides = [1, 1, 1, 1]} : vector<8x2x8x4xf32> to vector<8x1x8x4xf32>
    %27 = vector.shape_cast %26 : vector<8x1x8x4xf32> to vector<8x8x4xf32>
    %28 = vector.shape_cast %27 : vector<8x8x4xf32> to vector<64x4xf32>
    %c1_18 = arith.constant 1 : index
    %c8_19 = arith.constant 8 : index
    %c0_20 = arith.constant 0 : index
    %29 = vector.load %arg12[%c1_18, %c8_19, %c0_20] : memref<18x17x8xf32, #tpu.memory_space<vmem>>, vector<16x8x8xf32>
    %30 = vector.extract_strided_slice %29 {offsets = [0, 0, 0], sizes = [16, 8, 4], strides = [1, 1, 1]} : vector<16x8x8xf32> to vector<16x8x4xf32>
    %31 = vector.shape_cast %30 : vector<16x8x4xf32> to vector<8x2x8x4xf32>
    %32 = vector.extract_strided_slice %31 {offsets = [0, 0, 0, 0], sizes = [8, 1, 8, 4], strides = [1, 1, 1, 1]} : vector<8x2x8x4xf32> to vector<8x1x8x4xf32>
    %33 = vector.shape_cast %32 : vector<8x1x8x4xf32> to vector<8x8x4xf32>
    %34 = vector.shape_cast %33 : vector<8x8x4xf32> to vector<64x4xf32>
    %c1_21 = arith.constant 1 : index
    %c8_22 = arith.constant 8 : index
    %c0_23 = arith.constant 0 : index
    %35 = vector.load %arg12[%c1_21, %c8_22, %c0_23] : memref<18x17x8xf32, #tpu.memory_space<vmem>>, vector<16x8x8xf32>
    %36 = vector.extract_strided_slice %35 {offsets = [0, 0, 4], sizes = [16, 8, 4], strides = [1, 1, 1]} : vector<16x8x8xf32> to vector<16x8x4xf32>
    %37 = vector.shape_cast %36 : vector<16x8x4xf32> to vector<8x2x8x4xf32>
    %38 = vector.extract_strided_slice %37 {offsets = [0, 0, 0, 0], sizes = [8, 1, 8, 4], strides = [1, 1, 1, 1]} : vector<8x2x8x4xf32> to vector<8x1x8x4xf32>
    %39 = vector.shape_cast %38 : vector<8x1x8x4xf32> to vector<8x8x4xf32>
    %40 = vector.shape_cast %39 : vector<8x8x4xf32> to vector<64x4xf32>
    %c2 = arith.constant 2 : index
    %c7_24 = arith.constant 7 : index
    %c0_25 = arith.constant 0 : index
    %41 = vector.load %arg12[%c2, %c7_24, %c0_25] : memref<18x17x8xf32, #tpu.memory_space<vmem>>, vector<16x8x8xf32>
    %42 = vector.extract_strided_slice %41 {offsets = [0, 0, 4], sizes = [16, 8, 4], strides = [1, 1, 1]} : vector<16x8x8xf32> to vector<16x8x4xf32>
    %43 = vector.shape_cast %42 : vector<16x8x4xf32> to vector<8x2x8x4xf32>
    %44 = vector.extract_strided_slice %43 {offsets = [0, 0, 0, 0], sizes = [8, 1, 8, 4], strides = [1, 1, 1, 1]} : vector<8x2x8x4xf32> to vector<8x1x8x4xf32>
    %45 = vector.shape_cast %44 : vector<8x1x8x4xf32> to vector<8x8x4xf32>
    %46 = vector.shape_cast %45 : vector<8x8x4xf32> to vector<64x4xf32>
    %c2_26 = arith.constant 2 : index
    %c8_27 = arith.constant 8 : index
    %c0_28 = arith.constant 0 : index
    %47 = vector.load %arg12[%c2_26, %c8_27, %c0_28] : memref<18x17x8xf32, #tpu.memory_space<vmem>>, vector<16x8x8xf32>
    %48 = vector.extract_strided_slice %47 {offsets = [0, 0, 0], sizes = [16, 8, 4], strides = [1, 1, 1]} : vector<16x8x8xf32> to vector<16x8x4xf32>
    %49 = vector.shape_cast %48 : vector<16x8x4xf32> to vector<8x2x8x4xf32>
    %50 = vector.extract_strided_slice %49 {offsets = [0, 0, 0, 0], sizes = [8, 1, 8, 4], strides = [1, 1, 1, 1]} : vector<8x2x8x4xf32> to vector<8x1x8x4xf32>
    %51 = vector.shape_cast %50 : vector<8x1x8x4xf32> to vector<8x8x4xf32>
    %52 = vector.shape_cast %51 : vector<8x8x4xf32> to vector<64x4xf32>
    %c2_29 = arith.constant 2 : index
    %c8_30 = arith.constant 8 : index
    %c0_31 = arith.constant 0 : index
    %53 = vector.load %arg12[%c2_29, %c8_30, %c0_31] : memref<18x17x8xf32, #tpu.memory_space<vmem>>, vector<16x8x8xf32>
    %54 = vector.extract_strided_slice %53 {offsets = [0, 0, 4], sizes = [16, 8, 4], strides = [1, 1, 1]} : vector<16x8x8xf32> to vector<16x8x4xf32>
    %55 = vector.shape_cast %54 : vector<16x8x4xf32> to vector<8x2x8x4xf32>
    %56 = vector.extract_strided_slice %55 {offsets = [0, 0, 0, 0], sizes = [8, 1, 8, 4], strides = [1, 1, 1, 1]} : vector<8x2x8x4xf32> to vector<8x1x8x4xf32>
    %57 = vector.shape_cast %56 : vector<8x1x8x4xf32> to vector<8x8x4xf32>
    %58 = vector.shape_cast %57 : vector<8x8x4xf32> to vector<64x4xf32>
    %59 = tpu.concatenate %10, %16, %22, %28, %34, %40, %46, %52, %58 in 1 : vector<64x4xf32>, vector<64x4xf32>, vector<64x4xf32>, vector<64x4xf32>, vector<64x4xf32>, vector<64x4xf32>, vector<64x4xf32>, vector<64x4xf32>, vector<64x4xf32> -> vector<64x36xf32>
    %c0_32 = arith.constant 0 : index
    %c0_33 = arith.constant 0 : index
    %60 = vector.load %arg2[%c0_32, %c0_33] : memref<36x8xf32, #tpu.memory_space<vmem>>, vector<36x8xf32>
    %cst_34 = arith.constant dense<0.000000e+00> : vector<64x8xf32>
    %61 = tpu.matmul %59, %60, %cst_34 {dimension_numbers = #tpu.dot_dimension_numbers<[1], [0], [0], [1], [0, 0, 1, 1], [], []>} : vector<64x36xf32>, vector<36x8xf32>, vector<64x8xf32> -> vector<64x8xf32>
    %c0_35 = arith.constant 0 : index
    %c0_36 = arith.constant 0 : index
    %62 = vector.load %arg3[%c0_35, %c0_36] : memref<1x8xf32, #tpu.memory_space<vmem>>, vector<1x8xf32>
    %63 = vector.broadcast %62 : vector<1x8xf32> to vector<64x8xf32>
    %64 = arith.mulf %61, %63 : vector<64x8xf32>
    %c0_37 = arith.constant 0 : index
    %c0_38 = arith.constant 0 : index
    %65 = vector.load %arg4[%c0_37, %c0_38] : memref<1x8xf32, #tpu.memory_space<vmem>>, vector<1x8xf32>
    %66 = vector.broadcast %65 : vector<1x8xf32> to vector<64x8xf32>
    %67 = arith.addf %64, %66 : vector<64x8xf32>
    %cst_39 = arith.constant 0.000000e+00 : f32
    %68 = vector.broadcast %cst_39 : f32 to vector<64x8xf32>
    %69 = arith.maximumf %67, %68 : vector<64x8xf32>
    %70 = vector.shape_cast %1 : vector<16x8x8xf32> to vector<8x2x8x8xf32>
    %71 = vector.extract_strided_slice %70 {offsets = [0, 0, 0, 0], sizes = [8, 1, 8, 8], strides = [1, 1, 1, 1]} : vector<8x2x8x8xf32> to vector<8x1x8x8xf32>
    %72 = vector.shape_cast %71 : vector<8x1x8x8xf32> to vector<8x8x8xf32>
    %73 = vector.extract_strided_slice %72 {offsets = [0, 0, 0], sizes = [8, 8, 4], strides = [1, 1, 1]} : vector<8x8x8xf32> to vector<8x8x4xf32>
    %74 = vector.shape_cast %73 : vector<8x8x4xf32> to vector<64x4xf32>
    %c0_40 = arith.constant 0 : index
    %c0_41 = arith.constant 0 : index
    %75 = vector.load %arg8[%c0_40, %c0_41] : memref<4x8xf32, #tpu.memory_space<vmem>>, vector<4x8xf32>
    %cst_42 = arith.constant dense<0.000000e+00> : vector<64x8xf32>
    %76 = tpu.matmul %74, %75, %cst_42 {dimension_numbers = #tpu.dot_dimension_numbers<[1], [0], [0], [1], [0, 0, 1, 1], [], []>} : vector<64x4xf32>, vector<4x8xf32>, vector<64x8xf32> -> vector<64x8xf32>
    %c0_43 = arith.constant 0 : index
    %c0_44 = arith.constant 0 : index
    %77 = vector.load %arg9[%c0_43, %c0_44] : memref<1x8xf32, #tpu.memory_space<vmem>>, vector<1x8xf32>
    %78 = vector.broadcast %77 : vector<1x8xf32> to vector<64x8xf32>
    %79 = arith.mulf %76, %78 : vector<64x8xf32>
    %c0_45 = arith.constant 0 : index
    %c0_46 = arith.constant 0 : index
    %80 = vector.load %arg10[%c0_45, %c0_46] : memref<1x8xf32, #tpu.memory_space<vmem>>, vector<1x8xf32>
    %81 = vector.broadcast %80 : vector<1x8xf32> to vector<64x8xf32>
    %82 = arith.addf %79, %81 : vector<64x8xf32>
    %cst_47 = arith.constant 0.000000e+00 : f32
    %83 = vector.broadcast %cst_47 : f32 to vector<10x17x8xf32>
    %c0_48 = arith.constant 0 : index
    %c0_49 = arith.constant 0 : index
    %c0_50 = arith.constant 0 : index
    %84 = vector.load %arg13[%c0_48, %c0_49, %c0_50] : memref<10x17x8xf32, #tpu.memory_space<vmem>>, vector<10x17x8xf32>
    tpu.vector_store %arg13[%c0_48, %c0_49, %c0_50], %83 {strides = array<i32>} : memref<10x17x8xf32, #tpu.memory_space<vmem>>, vector<10x17x8xf32>,
    %85 = vector.shape_cast %69 : vector<64x8xf32> to vector<8x8x8xf32>
    %c1_51 = arith.constant 1 : index
    %c8_52 = arith.constant 8 : index
    %c0_53 = arith.constant 0 : index
    %86 = vector.load %arg13[%c1_51, %c8_52, %c0_53] : memref<10x17x8xf32, #tpu.memory_space<vmem>>, vector<8x8x8xf32>
    tpu.vector_store %arg13[%c1_51, %c8_52, %c0_53], %85 {strides = array<i32>} : memref<10x17x8xf32, #tpu.memory_space<vmem>>, vector<8x8x8xf32>,
    %c0_54 = arith.constant 0 : index
    %c7_55 = arith.constant 7 : index
    %c0_56 = arith.constant 0 : index
    %87 = vector.load %arg13[%c0_54, %c7_55, %c0_56] : memref<10x17x8xf32, #tpu.memory_space<vmem>>, vector<8x8x8xf32>
    %88 = vector.shape_cast %87 : vector<8x8x8xf32> to vector<64x8xf32>
    %c0_57 = arith.constant 0 : index
    %c8_58 = arith.constant 8 : index
    %c0_59 = arith.constant 0 : index
    %89 = vector.load %arg13[%c0_57, %c8_58, %c0_59] : memref<10x17x8xf32, #tpu.memory_space<vmem>>, vector<8x8x8xf32>
    %90 = vector.shape_cast %89 : vector<8x8x8xf32> to vector<64x8xf32>
    %c0_60 = arith.constant 0 : index
    %c9 = arith.constant 9 : index
    %c0_61 = arith.constant 0 : index
    %91 = vector.load %arg13[%c0_60, %c9, %c0_61] : memref<10x17x8xf32, #tpu.memory_space<vmem>>, vector<8x8x8xf32>
    %92 = vector.shape_cast %91 : vector<8x8x8xf32> to vector<64x8xf32>
    %c1_62 = arith.constant 1 : index
    %c7_63 = arith.constant 7 : index
    %c0_64 = arith.constant 0 : index
    %93 = vector.load %arg13[%c1_62, %c7_63, %c0_64] : memref<10x17x8xf32, #tpu.memory_space<vmem>>, vector<8x8x8xf32>
    %94 = vector.shape_cast %93 : vector<8x8x8xf32> to vector<64x8xf32>
    %c1_65 = arith.constant 1 : index
    %c8_66 = arith.constant 8 : index
    %c0_67 = arith.constant 0 : index
    %95 = vector.load %arg13[%c1_65, %c8_66, %c0_67] : memref<10x17x8xf32, #tpu.memory_space<vmem>>, vector<8x8x8xf32>
    %96 = vector.shape_cast %95 : vector<8x8x8xf32> to vector<64x8xf32>
    %c1_68 = arith.constant 1 : index
    %c9_69 = arith.constant 9 : index
    %c0_70 = arith.constant 0 : index
    %97 = vector.load %arg13[%c1_68, %c9_69, %c0_70] : memref<10x17x8xf32, #tpu.memory_space<vmem>>, vector<8x8x8xf32>
    %98 = vector.shape_cast %97 : vector<8x8x8xf32> to vector<64x8xf32>
    %c2_71 = arith.constant 2 : index
    %c7_72 = arith.constant 7 : index
    %c0_73 = arith.constant 0 : index
    %99 = vector.load %arg13[%c2_71, %c7_72, %c0_73] : memref<10x17x8xf32, #tpu.memory_space<vmem>>, vector<8x8x8xf32>
    %100 = vector.shape_cast %99 : vector<8x8x8xf32> to vector<64x8xf32>
    %c2_74 = arith.constant 2 : index
    %c8_75 = arith.constant 8 : index
    %c0_76 = arith.constant 0 : index
    %101 = vector.load %arg13[%c2_74, %c8_75, %c0_76] : memref<10x17x8xf32, #tpu.memory_space<vmem>>, vector<8x8x8xf32>
    %102 = vector.shape_cast %101 : vector<8x8x8xf32> to vector<64x8xf32>
    %c2_77 = arith.constant 2 : index
    %c9_78 = arith.constant 9 : index
    %c0_79 = arith.constant 0 : index
    %103 = vector.load %arg13[%c2_77, %c9_78, %c0_79] : memref<10x17x8xf32, #tpu.memory_space<vmem>>, vector<8x8x8xf32>
    %104 = vector.shape_cast %103 : vector<8x8x8xf32> to vector<64x8xf32>
    %105 = tpu.concatenate %88, %90, %92, %94, %96, %98, %100, %102, %104 in 1 : vector<64x8xf32>, vector<64x8xf32>, vector<64x8xf32>, vector<64x8xf32>, vector<64x8xf32>, vector<64x8xf32>, vector<64x8xf32>, vector<64x8xf32>, vector<64x8xf32> -> vector<64x72xf32>
    %c0_80 = arith.constant 0 : index
    %c0_81 = arith.constant 0 : index
    %106 = vector.load %arg5[%c0_80, %c0_81] : memref<72x8xf32, #tpu.memory_space<vmem>>, vector<72x8xf32>
    %cst_82 = arith.constant dense<0.000000e+00> : vector<64x8xf32>
    %107 = tpu.matmul %105, %106, %cst_82 {dimension_numbers = #tpu.dot_dimension_numbers<[1], [0], [0], [1], [0, 0, 1, 1], [], []>} : vector<64x72xf32>, vector<72x8xf32>, vector<64x8xf32> -> vector<64x8xf32>
    %c0_83 = arith.constant 0 : index
    %c0_84 = arith.constant 0 : index
    %108 = vector.load %arg6[%c0_83, %c0_84] : memref<1x8xf32, #tpu.memory_space<vmem>>, vector<1x8xf32>
    %109 = vector.broadcast %108 : vector<1x8xf32> to vector<64x8xf32>
    %110 = arith.mulf %107, %109 : vector<64x8xf32>
    %c0_85 = arith.constant 0 : index
    %c0_86 = arith.constant 0 : index
    %111 = vector.load %arg7[%c0_85, %c0_86] : memref<1x8xf32, #tpu.memory_space<vmem>>, vector<1x8xf32>
    %112 = vector.broadcast %111 : vector<1x8xf32> to vector<64x8xf32>
    %113 = arith.addf %110, %112 : vector<64x8xf32>
    %114 = arith.addf %113, %82 : vector<64x8xf32>
    %cst_87 = arith.constant 0.000000e+00 : f32
    %115 = vector.broadcast %cst_87 : f32 to vector<64x8xf32>
    %116 = arith.maximumf %114, %115 : vector<64x8xf32>
    %117 = vector.shape_cast %116 : vector<64x8xf32> to vector<8x8x8xf32>
    %c0_88 = arith.constant 0 : index
    %c0_89 = arith.constant 0 : index
    %c0_90 = arith.constant 0 : index
    %c0_91 = arith.constant 0 : index
    %118 = vector.load %arg11[%c0_88, %c0_89, %c0_90, %c0_91] : memref<1x8x8x8xf32, #tpu.memory_space<vmem>>, vector<1x8x8x8xf32>
    %119 = vector.shape_cast %118 : vector<1x8x8x8xf32> to vector<8x8x8xf32>
    %120 = vector.shape_cast %117 : vector<8x8x8xf32> to vector<1x8x8x8xf32>
    tpu.vector_store %arg11[%c0_88, %c0_89, %c0_90, %c0_91], %120 {strides = array<i32>} : memref<1x8x8x8xf32, #tpu.memory_space<vmem>>, vector<1x8x8x8xf32>,
    return
  }
  func.func @transform_0(%arg0: i32) -> (i32, i32, i32, i32) {
    %c0_i32 = arith.constant 0 : i32
    %c0_i32_0 = arith.constant 0 : i32
    %c0_i32_1 = arith.constant 0 : i32
    %c0_i32_2 = arith.constant 0 : i32
    return %arg0, %c0_i32, %c0_i32_0, %c0_i32_1 : i32, i32, i32, i32
  }
  func.func @transform_1(%arg0: i32) -> (i32, i32) {
    %c0_i32 = arith.constant 0 : i32
    %c0_i32_0 = arith.constant 0 : i32
    %c0_i32_1 = arith.constant 0 : i32
    return %c0_i32, %c0_i32_0 : i32, i32
  }
  func.func @transform_2(%arg0: i32) -> (i32, i32) {
    %c0_i32 = arith.constant 0 : i32
    %c0_i32_0 = arith.constant 0 : i32
    %c0_i32_1 = arith.constant 0 : i32
    return %c0_i32, %c0_i32_0 : i32, i32
  }
  func.func @transform_3(%arg0: i32) -> (i32, i32) {
    %c0_i32 = arith.constant 0 : i32
    %c0_i32_0 = arith.constant 0 : i32
    %c0_i32_1 = arith.constant 0 : i32
    return %c0_i32, %c0_i32_0 : i32, i32
  }
  func.func @transform_4(%arg0: i32) -> (i32, i32) {
    %c0_i32 = arith.constant 0 : i32
    %c0_i32_0 = arith.constant 0 : i32
    %c0_i32_1 = arith.constant 0 : i32
    return %c0_i32, %c0_i32_0 : i32, i32
  }
  func.func @transform_5(%arg0: i32) -> (i32, i32) {
    %c0_i32 = arith.constant 0 : i32
    %c0_i32_0 = arith.constant 0 : i32
    %c0_i32_1 = arith.constant 0 : i32
    return %c0_i32, %c0_i32_0 : i32, i32
  }
  func.func @transform_6(%arg0: i32) -> (i32, i32) {
    %c0_i32 = arith.constant 0 : i32
    %c0_i32_0 = arith.constant 0 : i32
    %c0_i32_1 = arith.constant 0 : i32
    return %c0_i32, %c0_i32_0 : i32, i32
  }
  func.func @transform_7(%arg0: i32) -> (i32, i32) {
    %c0_i32 = arith.constant 0 : i32
    %c0_i32_0 = arith.constant 0 : i32
    %c0_i32_1 = arith.constant 0 : i32
    return %c0_i32, %c0_i32_0 : i32, i32
  }
  func.func @transform_8(%arg0: i32) -> (i32, i32) {
    %c0_i32 = arith.constant 0 : i32
    %c0_i32_0 = arith.constant 0 : i32
    %c0_i32_1 = arith.constant 0 : i32
    return %c0_i32, %c0_i32_0 : i32, i32
  }
  func.func @transform_9(%arg0: i32) -> (i32, i32) {
    %c0_i32 = arith.constant 0 : i32
    %c0_i32_0 = arith.constant 0 : i32
    %c0_i32_1 = arith.constant 0 : i32
    return %c0_i32, %c0_i32_0 : i32, i32
  }
  func.func @transform_10(%arg0: i32) -> (i32, i32, i32, i32) {
    %c0_i32 = arith.constant 0 : i32
    %c0_i32_0 = arith.constant 0 : i32
    %c0_i32_1 = arith.constant 0 : i32
    %c0_i32_2 = arith.constant 0 : i32
    return %arg0, %c0_i32, %c0_i32_0, %c0_i32_1 : i32, i32, i32, i32
  }
}

module attributes {stable_mosaic.version = 11 : i64} {
  func.func @_residual_layer_kernel(%arg0: i32, %arg1: memref<1x8x8x8xf32, #tpu.memory_space<vmem>>, %arg2: memref<72x8xf32, #tpu.memory_space<vmem>>, %arg3: memref<1x8xf32, #tpu.memory_space<vmem>>, %arg4: memref<1x8xf32, #tpu.memory_space<vmem>>, %arg5: memref<72x8xf32, #tpu.memory_space<vmem>>, %arg6: memref<1x8xf32, #tpu.memory_space<vmem>>, %arg7: memref<1x8xf32, #tpu.memory_space<vmem>>, %arg8: memref<1x8x8x8xf32, #tpu.memory_space<vmem>>, %arg9: memref<10x17x8xf32, #tpu.memory_space<vmem>>, %arg10: memref<10x17x8xf32, #tpu.memory_space<vmem>>) attributes {dimension_semantics = [#tpu.dimension_semantics<parallel>], iteration_bounds = array<i64: 2>, scalar_prefetch = 0 : i64, scratch_operands = 2 : i64, tpu.core_type = #tpu.core_type<tc>, window_params = [{transform_indices = @transform_0, window_bounds = array<i64: 1, 8, 8, 8>}, {pipeline_mode = #tpu.pipeline_mode<synchronous>, transform_indices = @transform_1, window_bounds = array<i64: 72, 8>}, {pipeline_mode = #tpu.pipeline_mode<synchronous>, transform_indices = @transform_2, window_bounds = array<i64: 1, 8>}, {pipeline_mode = #tpu.pipeline_mode<synchronous>, transform_indices = @transform_3, window_bounds = array<i64: 1, 8>}, {pipeline_mode = #tpu.pipeline_mode<synchronous>, transform_indices = @transform_4, window_bounds = array<i64: 72, 8>}, {pipeline_mode = #tpu.pipeline_mode<synchronous>, transform_indices = @transform_5, window_bounds = array<i64: 1, 8>}, {pipeline_mode = #tpu.pipeline_mode<synchronous>, transform_indices = @transform_6, window_bounds = array<i64: 1, 8>}, {transform_indices = @transform_7, window_bounds = array<i64: 1, 8, 8, 8>}]} {
    %c0 = arith.constant 0 : index
    %c0_0 = arith.constant 0 : index
    %c0_1 = arith.constant 0 : index
    %c0_2 = arith.constant 0 : index
    %0 = vector.load %arg1[%c0, %c0_0, %c0_1, %c0_2] : memref<1x8x8x8xf32, #tpu.memory_space<vmem>>, vector<1x8x8x8xf32>
    %1 = vector.shape_cast %0 : vector<1x8x8x8xf32> to vector<8x8x8xf32>
    %cst = arith.constant 0.000000e+00 : f32
    %2 = vector.broadcast %cst : f32 to vector<10x17x8xf32>
    %c0_3 = arith.constant 0 : index
    %c0_4 = arith.constant 0 : index
    %c0_5 = arith.constant 0 : index
    %3 = vector.load %arg9[%c0_3, %c0_4, %c0_5] : memref<10x17x8xf32, #tpu.memory_space<vmem>>, vector<10x17x8xf32>
    tpu.vector_store %arg9[%c0_3, %c0_4, %c0_5], %2 {strides = array<i32>} : memref<10x17x8xf32, #tpu.memory_space<vmem>>, vector<10x17x8xf32>,
    %c1 = arith.constant 1 : index
    %c8 = arith.constant 8 : index
    %c0_6 = arith.constant 0 : index
    %4 = vector.load %arg9[%c1, %c8, %c0_6] : memref<10x17x8xf32, #tpu.memory_space<vmem>>, vector<8x8x8xf32>
    tpu.vector_store %arg9[%c1, %c8, %c0_6], %1 {strides = array<i32>} : memref<10x17x8xf32, #tpu.memory_space<vmem>>, vector<8x8x8xf32>,
    %c0_7 = arith.constant 0 : index
    %c7 = arith.constant 7 : index
    %c0_8 = arith.constant 0 : index
    %5 = vector.load %arg9[%c0_7, %c7, %c0_8] : memref<10x17x8xf32, #tpu.memory_space<vmem>>, vector<8x8x8xf32>
    %6 = vector.shape_cast %5 : vector<8x8x8xf32> to vector<64x8xf32>
    %c0_9 = arith.constant 0 : index
    %c8_10 = arith.constant 8 : index
    %c0_11 = arith.constant 0 : index
    %7 = vector.load %arg9[%c0_9, %c8_10, %c0_11] : memref<10x17x8xf32, #tpu.memory_space<vmem>>, vector<8x8x8xf32>
    %8 = vector.shape_cast %7 : vector<8x8x8xf32> to vector<64x8xf32>
    %c0_12 = arith.constant 0 : index
    %c9 = arith.constant 9 : index
    %c0_13 = arith.constant 0 : index
    %9 = vector.load %arg9[%c0_12, %c9, %c0_13] : memref<10x17x8xf32, #tpu.memory_space<vmem>>, vector<8x8x8xf32>
    %10 = vector.shape_cast %9 : vector<8x8x8xf32> to vector<64x8xf32>
    %c1_14 = arith.constant 1 : index
    %c7_15 = arith.constant 7 : index
    %c0_16 = arith.constant 0 : index
    %11 = vector.load %arg9[%c1_14, %c7_15, %c0_16] : memref<10x17x8xf32, #tpu.memory_space<vmem>>, vector<8x8x8xf32>
    %12 = vector.shape_cast %11 : vector<8x8x8xf32> to vector<64x8xf32>
    %c1_17 = arith.constant 1 : index
    %c8_18 = arith.constant 8 : index
    %c0_19 = arith.constant 0 : index
    %13 = vector.load %arg9[%c1_17, %c8_18, %c0_19] : memref<10x17x8xf32, #tpu.memory_space<vmem>>, vector<8x8x8xf32>
    %14 = vector.shape_cast %13 : vector<8x8x8xf32> to vector<64x8xf32>
    %c1_20 = arith.constant 1 : index
    %c9_21 = arith.constant 9 : index
    %c0_22 = arith.constant 0 : index
    %15 = vector.load %arg9[%c1_20, %c9_21, %c0_22] : memref<10x17x8xf32, #tpu.memory_space<vmem>>, vector<8x8x8xf32>
    %16 = vector.shape_cast %15 : vector<8x8x8xf32> to vector<64x8xf32>
    %c2 = arith.constant 2 : index
    %c7_23 = arith.constant 7 : index
    %c0_24 = arith.constant 0 : index
    %17 = vector.load %arg9[%c2, %c7_23, %c0_24] : memref<10x17x8xf32, #tpu.memory_space<vmem>>, vector<8x8x8xf32>
    %18 = vector.shape_cast %17 : vector<8x8x8xf32> to vector<64x8xf32>
    %c2_25 = arith.constant 2 : index
    %c8_26 = arith.constant 8 : index
    %c0_27 = arith.constant 0 : index
    %19 = vector.load %arg9[%c2_25, %c8_26, %c0_27] : memref<10x17x8xf32, #tpu.memory_space<vmem>>, vector<8x8x8xf32>
    %20 = vector.shape_cast %19 : vector<8x8x8xf32> to vector<64x8xf32>
    %c2_28 = arith.constant 2 : index
    %c9_29 = arith.constant 9 : index
    %c0_30 = arith.constant 0 : index
    %21 = vector.load %arg9[%c2_28, %c9_29, %c0_30] : memref<10x17x8xf32, #tpu.memory_space<vmem>>, vector<8x8x8xf32>
    %22 = vector.shape_cast %21 : vector<8x8x8xf32> to vector<64x8xf32>
    %23 = tpu.concatenate %6, %8, %10, %12, %14, %16, %18, %20, %22 in 1 : vector<64x8xf32>, vector<64x8xf32>, vector<64x8xf32>, vector<64x8xf32>, vector<64x8xf32>, vector<64x8xf32>, vector<64x8xf32>, vector<64x8xf32>, vector<64x8xf32> -> vector<64x72xf32>
    %c0_31 = arith.constant 0 : index
    %c0_32 = arith.constant 0 : index
    %24 = vector.load %arg2[%c0_31, %c0_32] : memref<72x8xf32, #tpu.memory_space<vmem>>, vector<72x8xf32>
    %cst_33 = arith.constant dense<0.000000e+00> : vector<64x8xf32>
    %25 = tpu.matmul %23, %24, %cst_33 {dimension_numbers = #tpu.dot_dimension_numbers<[1], [0], [0], [1], [0, 0, 1, 1], [], []>} : vector<64x72xf32>, vector<72x8xf32>, vector<64x8xf32> -> vector<64x8xf32>
    %c0_34 = arith.constant 0 : index
    %c0_35 = arith.constant 0 : index
    %26 = vector.load %arg3[%c0_34, %c0_35] : memref<1x8xf32, #tpu.memory_space<vmem>>, vector<1x8xf32>
    %27 = vector.broadcast %26 : vector<1x8xf32> to vector<64x8xf32>
    %28 = arith.mulf %25, %27 : vector<64x8xf32>
    %c0_36 = arith.constant 0 : index
    %c0_37 = arith.constant 0 : index
    %29 = vector.load %arg4[%c0_36, %c0_37] : memref<1x8xf32, #tpu.memory_space<vmem>>, vector<1x8xf32>
    %30 = vector.broadcast %29 : vector<1x8xf32> to vector<64x8xf32>
    %31 = arith.addf %28, %30 : vector<64x8xf32>
    %cst_38 = arith.constant 0.000000e+00 : f32
    %32 = vector.broadcast %cst_38 : f32 to vector<64x8xf32>
    %33 = arith.maximumf %31, %32 : vector<64x8xf32>
    %34 = vector.shape_cast %1 : vector<8x8x8xf32> to vector<64x8xf32>
    %cst_39 = arith.constant 0.000000e+00 : f32
    %35 = vector.broadcast %cst_39 : f32 to vector<10x17x8xf32>
    %c0_40 = arith.constant 0 : index
    %c0_41 = arith.constant 0 : index
    %c0_42 = arith.constant 0 : index
    %36 = vector.load %arg10[%c0_40, %c0_41, %c0_42] : memref<10x17x8xf32, #tpu.memory_space<vmem>>, vector<10x17x8xf32>
    tpu.vector_store %arg10[%c0_40, %c0_41, %c0_42], %35 {strides = array<i32>} : memref<10x17x8xf32, #tpu.memory_space<vmem>>, vector<10x17x8xf32>,
    %37 = vector.shape_cast %33 : vector<64x8xf32> to vector<8x8x8xf32>
    %c1_43 = arith.constant 1 : index
    %c8_44 = arith.constant 8 : index
    %c0_45 = arith.constant 0 : index
    %38 = vector.load %arg10[%c1_43, %c8_44, %c0_45] : memref<10x17x8xf32, #tpu.memory_space<vmem>>, vector<8x8x8xf32>
    tpu.vector_store %arg10[%c1_43, %c8_44, %c0_45], %37 {strides = array<i32>} : memref<10x17x8xf32, #tpu.memory_space<vmem>>, vector<8x8x8xf32>,
    %c0_46 = arith.constant 0 : index
    %c7_47 = arith.constant 7 : index
    %c0_48 = arith.constant 0 : index
    %39 = vector.load %arg10[%c0_46, %c7_47, %c0_48] : memref<10x17x8xf32, #tpu.memory_space<vmem>>, vector<8x8x8xf32>
    %40 = vector.shape_cast %39 : vector<8x8x8xf32> to vector<64x8xf32>
    %c0_49 = arith.constant 0 : index
    %c8_50 = arith.constant 8 : index
    %c0_51 = arith.constant 0 : index
    %41 = vector.load %arg10[%c0_49, %c8_50, %c0_51] : memref<10x17x8xf32, #tpu.memory_space<vmem>>, vector<8x8x8xf32>
    %42 = vector.shape_cast %41 : vector<8x8x8xf32> to vector<64x8xf32>
    %c0_52 = arith.constant 0 : index
    %c9_53 = arith.constant 9 : index
    %c0_54 = arith.constant 0 : index
    %43 = vector.load %arg10[%c0_52, %c9_53, %c0_54] : memref<10x17x8xf32, #tpu.memory_space<vmem>>, vector<8x8x8xf32>
    %44 = vector.shape_cast %43 : vector<8x8x8xf32> to vector<64x8xf32>
    %c1_55 = arith.constant 1 : index
    %c7_56 = arith.constant 7 : index
    %c0_57 = arith.constant 0 : index
    %45 = vector.load %arg10[%c1_55, %c7_56, %c0_57] : memref<10x17x8xf32, #tpu.memory_space<vmem>>, vector<8x8x8xf32>
    %46 = vector.shape_cast %45 : vector<8x8x8xf32> to vector<64x8xf32>
    %c1_58 = arith.constant 1 : index
    %c8_59 = arith.constant 8 : index
    %c0_60 = arith.constant 0 : index
    %47 = vector.load %arg10[%c1_58, %c8_59, %c0_60] : memref<10x17x8xf32, #tpu.memory_space<vmem>>, vector<8x8x8xf32>
    %48 = vector.shape_cast %47 : vector<8x8x8xf32> to vector<64x8xf32>
    %c1_61 = arith.constant 1 : index
    %c9_62 = arith.constant 9 : index
    %c0_63 = arith.constant 0 : index
    %49 = vector.load %arg10[%c1_61, %c9_62, %c0_63] : memref<10x17x8xf32, #tpu.memory_space<vmem>>, vector<8x8x8xf32>
    %50 = vector.shape_cast %49 : vector<8x8x8xf32> to vector<64x8xf32>
    %c2_64 = arith.constant 2 : index
    %c7_65 = arith.constant 7 : index
    %c0_66 = arith.constant 0 : index
    %51 = vector.load %arg10[%c2_64, %c7_65, %c0_66] : memref<10x17x8xf32, #tpu.memory_space<vmem>>, vector<8x8x8xf32>
    %52 = vector.shape_cast %51 : vector<8x8x8xf32> to vector<64x8xf32>
    %c2_67 = arith.constant 2 : index
    %c8_68 = arith.constant 8 : index
    %c0_69 = arith.constant 0 : index
    %53 = vector.load %arg10[%c2_67, %c8_68, %c0_69] : memref<10x17x8xf32, #tpu.memory_space<vmem>>, vector<8x8x8xf32>
    %54 = vector.shape_cast %53 : vector<8x8x8xf32> to vector<64x8xf32>
    %c2_70 = arith.constant 2 : index
    %c9_71 = arith.constant 9 : index
    %c0_72 = arith.constant 0 : index
    %55 = vector.load %arg10[%c2_70, %c9_71, %c0_72] : memref<10x17x8xf32, #tpu.memory_space<vmem>>, vector<8x8x8xf32>
    %56 = vector.shape_cast %55 : vector<8x8x8xf32> to vector<64x8xf32>
    %57 = tpu.concatenate %40, %42, %44, %46, %48, %50, %52, %54, %56 in 1 : vector<64x8xf32>, vector<64x8xf32>, vector<64x8xf32>, vector<64x8xf32>, vector<64x8xf32>, vector<64x8xf32>, vector<64x8xf32>, vector<64x8xf32>, vector<64x8xf32> -> vector<64x72xf32>
    %c0_73 = arith.constant 0 : index
    %c0_74 = arith.constant 0 : index
    %58 = vector.load %arg5[%c0_73, %c0_74] : memref<72x8xf32, #tpu.memory_space<vmem>>, vector<72x8xf32>
    %cst_75 = arith.constant dense<0.000000e+00> : vector<64x8xf32>
    %59 = tpu.matmul %57, %58, %cst_75 {dimension_numbers = #tpu.dot_dimension_numbers<[1], [0], [0], [1], [0, 0, 1, 1], [], []>} : vector<64x72xf32>, vector<72x8xf32>, vector<64x8xf32> -> vector<64x8xf32>
    %c0_76 = arith.constant 0 : index
    %c0_77 = arith.constant 0 : index
    %60 = vector.load %arg6[%c0_76, %c0_77] : memref<1x8xf32, #tpu.memory_space<vmem>>, vector<1x8xf32>
    %61 = vector.broadcast %60 : vector<1x8xf32> to vector<64x8xf32>
    %62 = arith.mulf %59, %61 : vector<64x8xf32>
    %c0_78 = arith.constant 0 : index
    %c0_79 = arith.constant 0 : index
    %63 = vector.load %arg7[%c0_78, %c0_79] : memref<1x8xf32, #tpu.memory_space<vmem>>, vector<1x8xf32>
    %64 = vector.broadcast %63 : vector<1x8xf32> to vector<64x8xf32>
    %65 = arith.addf %62, %64 : vector<64x8xf32>
    %66 = arith.addf %65, %34 : vector<64x8xf32>
    %cst_80 = arith.constant 0.000000e+00 : f32
    %67 = vector.broadcast %cst_80 : f32 to vector<64x8xf32>
    %68 = arith.maximumf %66, %67 : vector<64x8xf32>
    %69 = vector.shape_cast %68 : vector<64x8xf32> to vector<8x8x8xf32>
    %c0_81 = arith.constant 0 : index
    %c0_82 = arith.constant 0 : index
    %c0_83 = arith.constant 0 : index
    %c0_84 = arith.constant 0 : index
    %70 = vector.load %arg8[%c0_81, %c0_82, %c0_83, %c0_84] : memref<1x8x8x8xf32, #tpu.memory_space<vmem>>, vector<1x8x8x8xf32>
    %71 = vector.shape_cast %70 : vector<1x8x8x8xf32> to vector<8x8x8xf32>
    %72 = vector.shape_cast %69 : vector<8x8x8xf32> to vector<1x8x8x8xf32>
    tpu.vector_store %arg8[%c0_81, %c0_82, %c0_83, %c0_84], %72 {strides = array<i32>} : memref<1x8x8x8xf32, #tpu.memory_space<vmem>>, vector<1x8x8x8xf32>,
    return
  }
  func.func @transform_0(%arg0: i32) -> (i32, i32, i32, i32) {
    %c0_i32 = arith.constant 0 : i32
    %c0_i32_0 = arith.constant 0 : i32
    %c0_i32_1 = arith.constant 0 : i32
    %c0_i32_2 = arith.constant 0 : i32
    return %arg0, %c0_i32, %c0_i32_0, %c0_i32_1 : i32, i32, i32, i32
  }
  func.func @transform_1(%arg0: i32) -> (i32, i32) {
    %c0_i32 = arith.constant 0 : i32
    %c0_i32_0 = arith.constant 0 : i32
    %c0_i32_1 = arith.constant 0 : i32
    return %c0_i32, %c0_i32_0 : i32, i32
  }
  func.func @transform_2(%arg0: i32) -> (i32, i32) {
    %c0_i32 = arith.constant 0 : i32
    %c0_i32_0 = arith.constant 0 : i32
    %c0_i32_1 = arith.constant 0 : i32
    return %c0_i32, %c0_i32_0 : i32, i32
  }
  func.func @transform_3(%arg0: i32) -> (i32, i32) {
    %c0_i32 = arith.constant 0 : i32
    %c0_i32_0 = arith.constant 0 : i32
    %c0_i32_1 = arith.constant 0 : i32
    return %c0_i32, %c0_i32_0 : i32, i32
  }
  func.func @transform_4(%arg0: i32) -> (i32, i32) {
    %c0_i32 = arith.constant 0 : i32
    %c0_i32_0 = arith.constant 0 : i32
    %c0_i32_1 = arith.constant 0 : i32
    return %c0_i32, %c0_i32_0 : i32, i32
  }
  func.func @transform_5(%arg0: i32) -> (i32, i32) {
    %c0_i32 = arith.constant 0 : i32
    %c0_i32_0 = arith.constant 0 : i32
    %c0_i32_1 = arith.constant 0 : i32
    return %c0_i32, %c0_i32_0 : i32, i32
  }
  func.func @transform_6(%arg0: i32) -> (i32, i32) {
    %c0_i32 = arith.constant 0 : i32
    %c0_i32_0 = arith.constant 0 : i32
    %c0_i32_1 = arith.constant 0 : i32
    return %c0_i32, %c0_i32_0 : i32, i32
  }
  func.func @transform_7(%arg0: i32) -> (i32, i32, i32, i32) {
    %c0_i32 = arith.constant 0 : i32
    %c0_i32_0 = arith.constant 0 : i32
    %c0_i32_1 = arith.constant 0 : i32
    %c0_i32_2 = arith.constant 0 : i32
    return %arg0, %c0_i32, %c0_i32_0, %c0_i32_1 : i32, i32, i32, i32
  }
}

</mosaic_0001>

<bundles_post_ra>
// kernel: encoder_residual_block_pallas.3
= control target key start
LH: loop header
LB: loop body
LE: loop exit
PB: predicated region body
PF: predicated region fallthrough
CT: control target
= control target key end

     0   :  { %s1569_s24 = smov 0   ;;  %s2298_s0 = inlined_call_operand.vmem [shape: f32[2,8,8,8], index: 0, kind: input, shape index: {}]   ;;  %s2299_s1 = inlined_call_operand.vmem [shape: f32[72,8], index: 1, kind: input, shape index: {}]   ;;  %s2300_s2 = inlined_call_operand.vmem [shape: f32[1,8], index: 2, kind: input, shape index: {}]   ;;  %s2301_s3 = inlined_call_operand.vmem [shape: f32[1,8], index: 3, kind: input, shape index: {}]   ;;  %s2302_s4 = inlined_call_operand.vmem [shape: f32[72,8], index: 4, kind: input, shape index: {}]   ;;  %s2303_s5 = inlined_call_operand.vmem [shape: f32[1,8], index: 5, kind: input, shape index: {}]   ;;  %s2304_s6 = inlined_call_operand.vmem [shape: f32[1,8], index: 6, kind: input, shape index: {}]   ;;  %s2305_s7 = inlined_call_operand.vmem [shape: f32[2,8,8,8], index: 7, kind: output, shape index: {}]  }
   0x1 LB: > { %s1444_s25 = sadd.s32 4294967295, %s1518_s24   ;;  %p1448_p0 = scmp.ge.s32.totalorder %s1518_s24, 1  ;;  %s1518_s24 = sphi %s1569_s24, %s17_s24  }
   0x2   : > { %p237_p1 = scmp.lt.s32.totalorder %s1518_s24, 3 }
   0x4   : > { %p238_p2 = pnand %p1448_p0, %p237_p1 }
   0x5   : > { %s1521_s26 = smov (!%p238_p2), 8   ;;  %p269_p3 = scmp.lt.s32.totalorder (!%p238_p2), %s1444_s25, 1 }
   0x6   : > { %241 = sbr.rel (%p238_p2) target bundleno = 814 (0x32e), region = 48  ;;  %s1522_s8 = smov (!%p238_p2), 24  }
   0x7   : > { %s1523_s9 = smov (!%p238_p2), 16   ;;  %s1524_s10 = smov (!%p238_p2), 40  }
   0x8   : > { %s1525_s11 = smov (!%p238_p2), 32   ;;  %s1526_s12 = smov (!%p238_p2), 56  }
   0x9   : > { %s1527_s13 = smov (!%p238_p2), 64   ;;  %s1528_s14 = smov (!%p238_p2), 48  }
   0xb   : > { %vm287_vm0 = vcmask 64512   ;;  %v1520_v0 = vmov 0.0   ;;  %s2307_s25 = smov (!%p269_p3, %s1444_s25), 1  ;;  %vm290_vm1 = vcmask 57344   ;;  %v736_v28 = vld [vmem:[%s2299_s1 + $0x40] sm:$0xff]  ;;  %v735_v29 = vld [vmem:[%s2299_s1 + $0x38] sm:$0xff] }
   0xc   : > { %289 = vst.msk [vmem:[#allocation2 + $0x8] sm:$0xff] %vm287_vm0, %v1520_v0  ;;  %s1471_s27 = sshll.u32 %s2307_s25, 6  ;;  %769 = vmatpush.msra.mxu0 %v736_v28  ;;  %v734_v30 = vld [vmem:[%s2299_s1 + $0x30] sm:$0xff]  ;;  %1473 = vmatpush.msra.mxu2 %v736_v28  ;;  %v733_v31 = vld [vmem:[%s2299_s1 + $0x28] sm:$0xff]  ;;  %v732_v32 = vld [vmem:[%s2299_s1 + $0x20] sm:$0xff]  ;;  %vm665_vm2 = vcmask 130048  }
   0xd   : > { %288 = vst.msk [vmem:[#allocation2] sm:$0xff] %vm287_vm0, %v1520_v0  ;;  %s1660_s30 = scalar_lea.vmem %s2298_s0, %s1471_s27  ;;  %v731_v34 = vld [vmem:[%s2299_s1 + $0x18] sm:$0xff]  ;;  %v730_v35 = vld [vmem:[%s2299_s1 + $0x10] sm:$0xff]  ;;  %v729_v36 = vld [vmem:[%s2299_s1 + $0x8] sm:$0xff]  ;;  %vm674_vm3 = vcmask 195584   ;;  %vm683_vm4 = vcmask 261120  }
   0xe   : > { %292 = vst.msk [vmem:[#allocation2 + $0x18] sm:$0xff] %vm287_vm0, %v1520_v0  ;;  %v1669_v2 = vld [vmem:[%s1660_s30] sm:$0xff]  ;;  %v1721_v7 = vld [vmem:[%s1660_s30 + $0x8] sm:$0xff]  ;;  %v1726_v8 = vld [vmem:[%s1660_s30 + $0x10] sm:$0xff]  ;;  %770 = vmatpush.msra.mxu0 %v735_v29  ;;  %1474 = vmatpush.msra.mxu2 %v735_v29  ;;  %vm692_vm5 = vcmask 326656   ;;  %vm701_vm6 = vcmask 392192  }
   0xf   : > { %293 = vst.msk [vmem:[#allocation2 + $0x20] sm:$0xff] %vm287_vm0, %v1520_v0  ;;  %v1731_v9 = vld [vmem:[%s1660_s30 + $0x18] sm:$0xff]  ;;  %v1746_v13 = vld [vmem:[%s1660_s30 + $0x20] sm:$0xff]  ;;  %v1761_v17 = vld [vmem:[%s1660_s30 + $0x28] sm:$0xff]  ;;  %vm710_vm7 = vcmask 457728   ;;  %vm719_vm8 = vcmask 523264  }
  0x10   : > { %295 = vst.msk [vmem:[#allocation2 + $0x30] sm:$0xff] %vm287_vm0, %v1520_v0  ;;  %v1797_v26 = vld [vmem:[%s1660_s30 + $0x30] sm:$0xff]  ;;  %771 = vmatpush.msra.mxu0 %v734_v30  ;;  %1475 = vmatpush.msra.mxu2 %v734_v30  ;;  %v728_v37 = vld [vmem:[%s2299_s1] sm:$0xff]  ;;  %v1865_v43 = vld [vmem:[%s1660_s30 + $0x38] sm:$0xff]  ;;  %vm737_vm9 = vcmask 588800  }
  0x11   : > { %296 = vst.msk [vmem:[#allocation2 + $0x38] sm:$0xff] %vm287_vm0, %v1520_v0 }
  0x12   : > { %298 = vst.msk [vmem:[#allocation2 + $0x48] sm:$0xff] %vm287_vm0, %v1520_v0  ;;  %772 = vmatpush.msra.mxu0 %v733_v31  ;;  %1476 = vmatpush.msra.mxu2 %v733_v31 }
  0x13   : > { %v336_v1 = vld [vmem:[#allocation2 + $0x8] sm:$0xff]  ;;  %299 = vst.msk [vmem:[#allocation2 + $0x50] sm:$0xff] %vm287_vm0, %v1520_v0 }
  0x14   : > { %409 = vrot.lane.b32.xlu0 %v336_v1, %s1521_s26  ;;  %301 = vst.msk [vmem:[#allocation2 + $0x60] sm:$0xff] %vm287_vm0, %v1520_v0  ;;  %773 = vmatpush.msra.mxu0 %v732_v32  ;;  %v328_v42 = vld [vmem:[#allocation2 + $0x7] sm:$0xff] }
  0x15   : > { %302 = vst.msk [vmem:[#allocation2 + $0x68] sm:$0xff] %vm287_vm0, %v1520_v0  ;;  %1477 = vmatpush.msra.mxu2 %v732_v32 }
  0x16   : > { %304 = vst.msk [vmem:[#allocation2 + $0x78] sm:$0xff] %vm287_vm0, %v1520_v0  ;;  %774 = vmatpush.msra.mxu0 %v731_v34 }
  0x17   : > { %305 = vst.msk [vmem:[#allocation2 + $0x80] sm:$0xff] %vm287_vm0, %v1520_v0  ;;  %1478 = vmatpush.msra.mxu2 %v731_v34 }
  0x18   : > { %307 = vst.msk [vmem:[#allocation2 + $0x90] sm:$0xff] %vm287_vm0, %v1520_v0  ;;  %775 = vmatpush.msra.mxu0 %v730_v35 }
  0x19   : > { %308 = vst.msk [vmem:[#allocation2 + $0x98] sm:$0xff] %vm287_vm0, %v1520_v0  ;;  %1479 = vmatpush.msra.mxu2 %v730_v35 }
  0x1a   : > { %310 = vst.msk [vmem:[#allocation2 + $0xa8] sm:$0xff] %vm287_vm0, %v1520_v0  ;;  %776 = vmatpush.msra.mxu0 %v729_v36 }
  0x1b   : > { %311 = vst.msk [vmem:[#allocation2 + $0xb0] sm:$0xff] %vm287_vm0, %v1520_v0  ;;  %1480 = vmatpush.msra.mxu2 %v729_v36 }
  0x1c   : > { %313 = vst.msk [vmem:[#allocation2 + $0xc0] sm:$0xff] %vm287_vm0, %v1520_v0  ;;  %777 = vmatpush.msra.mxu0 %v728_v37 }
  0x1d   : > { %314 = vst.msk [vmem:[#allocation2 + $0xc8] sm:$0xff] %vm287_vm0, %v1520_v0  ;;  %1481 = vmatpush.msra.mxu2 %v728_v37 }
  0x1e   : > { %316 = vst.msk [vmem:[#allocation2 + $0xd8] sm:$0xff] %vm287_vm0, %v1520_v0 }
  0x1f   : > { %317 = vst.msk [vmem:[#allocation2 + $0xe0] sm:$0xff] %vm287_vm0, %v1520_v0 }
  0x20   : > { %835 = vst.msk [vmem:[#allocation3] sm:$0xff] %vm287_vm0, %v1520_v0 }
  0x21   : > { %836 = vst.msk [vmem:[#allocation3 + $0x8] sm:$0xff] %vm287_vm0, %v1520_v0 }
  0x22   : > { %838 = vst.msk [vmem:[#allocation3 + $0x18] sm:$0xff] %vm287_vm0, %v1520_v0 }
  0x23   : > { %839 = vst.msk [vmem:[#allocation3 + $0x20] sm:$0xff] %vm287_vm0, %v1520_v0 }
  0x24   : > { %841 = vst.msk [vmem:[#allocation3 + $0x30] sm:$0xff] %vm287_vm0, %v1520_v0 }
  0x25   : > { %842 = vst.msk [vmem:[#allocation3 + $0x38] sm:$0xff] %vm287_vm0, %v1520_v0 }
  0x26   : > { %844 = vst.msk [vmem:[#allocation3 + $0x48] sm:$0xff] %vm287_vm0, %v1520_v0  ;;  %v384_v29 = vld [vmem:[#allocation2 + $0xdf] sm:$0xff] }
  0x27   : > { %845 = vst.msk [vmem:[#allocation3 + $0x50] sm:$0xff] %vm287_vm0, %v1520_v0  ;;  %v392_v36 = vld [vmem:[#allocation2 + $0xe0] sm:$0xff] }
  0x28   : > { %847 = vst.msk [vmem:[#allocation3 + $0x60] sm:$0xff] %vm287_vm0, %v1520_v0 }
  0x29   : > { %848 = vst.msk [vmem:[#allocation3 + $0x68] sm:$0xff] %vm287_vm0, %v1520_v0 }
  0x2a   : > { %850 = vst.msk [vmem:[#allocation3 + $0x78] sm:$0xff] %vm287_vm0, %v1520_v0 }
  0x2b   : > { %851 = vst.msk [vmem:[#allocation3 + $0x80] sm:$0xff] %vm287_vm0, %v1520_v0 }
  0x2c   : > { %853 = vst.msk [vmem:[#allocation3 + $0x90] sm:$0xff] %vm287_vm0, %v1520_v0 }
  0x2d   : > { %854 = vst.msk [vmem:[#allocation3 + $0x98] sm:$0xff] %vm287_vm0, %v1520_v0 }
  0x2e   : > { %856 = vst.msk [vmem:[#allocation3 + $0xa8] sm:$0xff] %vm287_vm0, %v1520_v0 }
  0x2f   : > { %857 = vst.msk [vmem:[#allocation3 + $0xb0] sm:$0xff] %vm287_vm0, %v1520_v0 }
  0x30   : > { %859 = vst.msk [vmem:[#allocation3 + $0xc0] sm:$0xff] %vm287_vm0, %v1520_v0 }
  0x31   : > { %860 = vst.msk [vmem:[#allocation3 + $0xc8] sm:$0xff] %vm287_vm0, %v1520_v0 }
  0x32   : > { %862 = vst.msk [vmem:[#allocation3 + $0xd8] sm:$0xff] %vm287_vm0, %v1520_v0 }
  0x33   : > { %863 = vst.msk [vmem:[#allocation3 + $0xe0] sm:$0xff] %vm287_vm0, %v1520_v0 }
  0x34   : > { %320 = vst.msk [vmem:[#allocation2 + $0x20] sm:$0xff] %vm287_vm0, %v1669_v2 }
  0x35   : > { %291 = vst.msk [vmem:[#allocation2 + $0x10] sm:$0x1] %vm290_vm1, %v1520_v0 }
  0x36   : > { %294 = vst.msk [vmem:[#allocation2 + $0x28] sm:$0x1] %vm290_vm1, %v1520_v0 }
  0x37   : > { %297 = vst.msk [vmem:[#allocation2 + $0x40] sm:$0x1] %vm290_vm1, %v1520_v0 }
  0x38   : > { %300 = vst.msk [vmem:[#allocation2 + $0x58] sm:$0x1] %vm290_vm1, %v1520_v0 }
  0x39   : > { %303 = vst.msk [vmem:[#allocation2 + $0x70] sm:$0x1] %vm290_vm1, %v1520_v0 }
  0x3a   : > { %306 = vst.msk [vmem:[#allocation2 + $0x88] sm:$0x1] %vm290_vm1, %v1520_v0 }
  0x3b   : > { %v1689_v3 = vld [vmem:[#allocation2 + $0x1f] sm:$0xff]  ;;  %309 = vst.msk [vmem:[#allocation2 + $0xa0] sm:$0x1] %vm290_vm1, %v1520_v0 }
  0x3c   : > { %473 = vrot.lane.b32.xlu1 %v1689_v3, %s1522_s8  ;;  %v344_v4 = vld [vmem:[#allocation2 + $0x9] sm:$0xff]  ;;  %312 = vst.msk [vmem:[#allocation2 + $0xb8] sm:$0x1] %vm290_vm1, %v1520_v0  ;;  %v360_v6 = vld [vmem:[#allocation2 + $0x20] sm:$0xff] }
  0x3d   : > { %441 = vrot.lane.b32.xlu0 %v344_v4, %s1523_s9  ;;  %315 = vst.msk [vmem:[#allocation2 + $0xd0] sm:$0x1] %vm290_vm1, %v1520_v0  ;;  %v368_v5 = vld [vmem:[#allocation2 + $0x21] sm:$0xff] }
  0x3e   : > { %318 = vst.msk [vmem:[#allocation2 + $0xe8] sm:$0x1] %vm290_vm1, %v1520_v0  ;;  %537 = vrot.lane.b32.xlu2 %v368_v5, %s1524_s10 }
  0x3f   : > { %837 = vst.msk [vmem:[#allocation3 + $0x10] sm:$0x1] %vm290_vm1, %v1520_v0 }
  0x40   : > { %840 = vst.msk [vmem:[#allocation3 + $0x28] sm:$0x1] %vm290_vm1, %v1520_v0 }
  0x41   : > { %843 = vst.msk [vmem:[#allocation3 + $0x40] sm:$0x1] %vm290_vm1, %v1520_v0 }
  0x42   : > { %846 = vst.msk [vmem:[#allocation3 + $0x58] sm:$0x1] %vm290_vm1, %v1520_v0 }
  0x43   : > { %849 = vst.msk [vmem:[#allocation3 + $0x70] sm:$0x1] %vm290_vm1, %v1520_v0 }
  0x44   : > { %852 = vst.msk [vmem:[#allocation3 + $0x88] sm:$0x1] %vm290_vm1, %v1520_v0  ;;  %505 = vrot.lane.b32.xlu1 %v360_v6, %s1525_s11 }
  0x45   : > { %855 = vst.msk [vmem:[#allocation3 + $0xa0] sm:$0x1] %vm290_vm1, %v1520_v0 }
  0x46   : > { %858 = vst.msk [vmem:[#allocation3 + $0xb8] sm:$0x1] %vm290_vm1, %v1520_v0 }
  0x47   : > { %861 = vst.msk [vmem:[#allocation3 + $0xd0] sm:$0x1] %vm290_vm1, %v1520_v0 }
  0x48   : > { %864 = vst.msk [vmem:[#allocation3 + $0xe8] sm:$0x1] %vm290_vm1, %v1520_v0 }
  0x49   : > { %321 = vst.msk [vmem:[#allocation2 + $0x38] sm:$0xff] %vm287_vm0, %v1721_v7 }
  0x4a   : > { %322 = vst.msk [vmem:[#allocation2 + $0x50] sm:$0xff] %vm287_vm0, %v1726_v8 }
  0x4b   : > { %323 = vst.msk [vmem:[#allocation2 + $0x68] sm:$0xff] %vm287_vm0, %v1731_v9 }
  0x4c   : > { %324 = vst.msk [vmem:[#allocation2 + $0x80] sm:$0xff] %vm287_vm0, %v1746_v13 }
  0x4d   : > { %325 = vst.msk [vmem:[#allocation2 + $0x98] sm:$0xff] %vm287_vm0, %v1761_v17 }
  0x4e   : > { %326 = vst.msk [vmem:[#allocation2 + $0xb0] sm:$0xff] %vm287_vm0, %v1797_v26 }
  0x4f   : > { %327 = vst.msk [vmem:[#allocation2 + $0xc8] sm:$0xff] %vm287_vm0, %v1865_v43 }
  0x50   : > { %v385_v10 = vld [vmem:[#allocation2 + $0x38] sm:$0xff] }
  0x51   : > { %v393_v11 = vld [vmem:[#allocation2 + $0x39] sm:$0xff]  ;;  %601 = vrot.lane.b32.xlu0 %v385_v10, %s1526_s12  ;;  %v1754_v14 = vld [vmem:[#allocation2 + $0x4f] sm:$0xff] }
  0x52   : > { %v1739_v12 = vld [vmem:[#allocation2 + $0x37] sm:$0xff]  ;;  %633 = vrot.lane.b32.xlu1 %v393_v11, %s1527_s13  ;;  %v340_v15 = vld [vmem:[#allocation2 + $0x68] sm:$0xff] }
  0x53   : > { %569 = vrot.lane.b32.xlu2 %v1739_v12, %s1528_s14  ;;  %v394_v16 = vld [vmem:[#allocation2 + $0x51] sm:$0xff]  ;;  %v1768_v19 = vld [vmem:[#allocation2 + $0x69] sm:$0xff]  ;;  %v1774_v20 = vld [vmem:[#allocation2 + $0x80] sm:$0xff] }
  0x54   : > { %v386_v18 = vld [vmem:[#allocation2 + $0x50] sm:$0xff]  ;;  %v1776_v21 = vld [vmem:[#allocation2 + $0x7f] sm:$0xff]  ;;  %v1790_v23 = vld [vmem:[#allocation2 + $0x67] sm:$0xff] }
  0x55   : > { %v1784_v22 = vld [vmem:[#allocation2 + $0x81] sm:$0xff]  ;;  %v1792_v24 = vld [vmem:[#allocation2 + $0x98] sm:$0xff]  ;;  %v1856_v40 = vld [vmem:[#allocation2 + $0xaf] sm:$0xff] }
  0x56   : > { %v1794_v25 = vld [vmem:[#allocation2 + $0x97] sm:$0xff]  ;;  %v391_v4 = vld [vmem:[#allocation2 + $0xc8] sm:$0xff] }
  0x57   : > { %v1807_v27 = vld [vmem:[#allocation2 + $0x99] sm:$0xff]  ;;  %v398_v47 = vld [vmem:[#allocation2 + $0xb1] sm:$0xff] }
  0x58   : > { %v390_v49 = vld [vmem:[#allocation2 + $0xb0] sm:$0xff] }
  0x59   : > { %443 = vrot.lane.b32.xlu0 %v368_v5, %s1523_s9  ;;  %v399_v5 = vld [vmem:[#allocation2 + $0xc9] sm:$0xff] }
  0x5a   : > { %475 = vrot.lane.b32.xlu1 %v1739_v12, %s1522_s8 }
  0x5b   : > { %411 = vrot.lane.b32.xlu2 %v360_v6, %s1521_s26 }
  0x61   : > { %539 = vrot.lane.b32.xlu0 %v393_v11, %s1524_s10 }
  0x62   : > { %571 = vrot.lane.b32.xlu1 %v1754_v14, %s1528_s14 }
  0x63   : > { %507 = vrot.lane.b32.xlu2 %v385_v10, %s1525_s11 }
  0x69   : > { %417 = vrot.lane.b32.xlu0 %v340_v15, %s1521_s26 }
  0x6a   : > { %635 = vrot.lane.b32.xlu1 %v394_v16, %s1527_s13 }
  0x6b   : > { %603 = vrot.lane.b32.xlu2 %v386_v18, %s1526_s12 }
  0x71   : > { %449 = vrot.lane.b32.xlu0 %v1768_v19, %s1523_s9 }
  0x72   : > { %445 = vrot.lane.b32.xlu1 %v393_v11, %s1523_s9 }
  0x73   : > { %413 = vrot.lane.b32.xlu2 %v385_v10, %s1521_s26  ;;  %v359_v10 = vld [vmem:[#allocation2 + $0xc7] sm:$0xff] }
  0x79   : > { %477 = vrot.lane.b32.xlu0 %v1754_v14, %s1522_s8 }
  0x7a   : > { %513 = vrot.lane.b32.xlu1 %v1774_v20, %s1525_s11 }
  0x7b   : > { %481 = vrot.lane.b32.xlu2 %v1776_v21, %s1522_s8 }
  0x81   : > { %545 = vrot.lane.b32.xlu0 %v1784_v22, %s1524_s10 }
  0x82   : > { %541 = vrot.lane.b32.xlu1 %v394_v16, %s1524_s10 }
  0x83   : > { %509 = vrot.lane.b32.xlu2 %v386_v18, %s1525_s11 }
  0x86   : > { %v410_v38 = vpop.permute.xlu0 %409 }
  0x87   : > { %v657_v44 = vsel %vm287_vm0, %v328_v42, %v410_v38 }
  0x89   : > { %573 = vrot.lane.b32.xlu0 %v1790_v23, %s1528_s14 }
  0x8a   : > { %609 = vrot.lane.b32.xlu1 %v1792_v24, %s1526_s12 }
  0x8b   : > { %577 = vrot.lane.b32.xlu2 %v1794_v25, %s1528_s14 }
  0x91   : > { %641 = vrot.lane.b32.xlu0 %v1807_v27, %s1527_s13 }
  0x92   : > { %419 = vrot.lane.b32.xlu1 %v1774_v20, %s1521_s26 }
  0x93   : > { %605 = vrot.lane.b32.xlu2 %v340_v15, %s1526_s12 }
  0x98   : > { %v538_v33 = vpop.permute.xlu2 %537 }
  0x99   : > { %415 = vrot.lane.b32.xlu0 %v386_v18, %s1521_s26 }
  0x9a   : > { %451 = vrot.lane.b32.xlu1 %v1784_v22, %s1523_s9 }
  0x9b   : > { %637 = vrot.lane.b32.xlu2 %v1768_v19, %s1527_s13 }
  0xa1   : > { %483 = vrot.lane.b32.xlu0 %v1794_v25, %s1522_s8 }
  0xa2   : > { %479 = vrot.lane.b32.xlu1 %v1790_v23, %s1522_s8 }
  0xa3   : > { %447 = vrot.lane.b32.xlu2 %v394_v16, %s1523_s9 }
  0xa9   : > { %511 = vrot.lane.b32.xlu0 %v340_v15, %s1525_s11 }
  0xaa   : > { %547 = vrot.lane.b32.xlu1 %v1807_v27, %s1524_s10 }
  0xab   : > { %515 = vrot.lane.b32.xlu2 %v1792_v24, %s1525_s11 }
  0xad   : > { %v570_v39 = vpop.permute.xlu2 %569 }
  0xae   : > { %v474_v41 = vpop.permute.xlu1 %473 }
  0xaf   : > { %v442_v45 = vpop.permute.xlu0 %441 }
  0xb0   : > { %v666_v48 = vsel %vm665_vm2, %v657_v44, %v442_v45 }
  0xb1   : > { %579 = vrot.lane.b32.xlu0 %v1856_v40, %s1528_s14  ;;  %v675_v51 = vsel %vm674_vm3, %v666_v48, %v474_v41 }
  0xb2   : > { %575 = vrot.lane.b32.xlu1 %v1776_v21, %s1528_s14 }
  0xb3   : > { %543 = vrot.lane.b32.xlu2 %v1768_v19, %s1524_s10 }
  0xb5   : > { %v412_v46 = vpop.permute.xlu2 %411 }
  0xb6   : > { %v506_v50 = vpop.permute.xlu1 %505  ;;  %v658_v61 = vsel %vm287_vm0, %v1689_v3, %v412_v46 }
  0xb7   : > { %v684_v52 = vsel %vm683_vm4, %v675_v51, %v506_v50 }
  0xb8   : > { %v693_v54 = vsel %vm692_vm5, %v684_v52, %v538_v33  ;;  %v400_v33 = vld [vmem:[#allocation2 + $0xe1] sm:$0xff] }
  0xb9   : > { %607 = vrot.lane.b32.xlu0 %v1774_v20, %s1526_s12  ;;  %v702_v55 = vsel %vm701_vm6, %v693_v54, %v570_v39 }
  0xba   : > { %643 = vrot.lane.b32.xlu1 %v398_v47, %s1527_s13 }
  0xbb   : > { %611 = vrot.lane.b32.xlu2 %v390_v49, %s1526_s12 }
  0xbd   : > { %v508_v53 = vpop.permute.xlu2 %507 }
  0xc1   : > { %639 = vrot.lane.b32.xlu0 %v1784_v22, %s1527_s13 }
  0xc2   : > { %453 = vrot.lane.b32.xlu1 %v1807_v27, %s1523_s9 }
  0xc3   : > { %421 = vrot.lane.b32.xlu2 %v1792_v24, %s1521_s26  ;;  %v602_v56 = vpop.permute.xlu0 %601 }
  0xc4   : > { %v634_v57 = vpop.permute.xlu1 %633  ;;  %v711_v58 = vsel %vm710_vm7, %v702_v55, %v602_v56 }
  0xc5   : > { %v604_v59 = vpop.permute.xlu2 %603  ;;  %v720_v60 = vsel %vm719_vm8, %v711_v58, %v634_v57 }
  0xc6   : > { %1453 = vmatmul.msk.f32.vlgmr.msra.gmra.mxu0 %vm737_vm9, %v720_v60 }
  0xc9   : > { %517 = vrot.lane.b32.xlu0 %v390_v49, %s1525_s11 }
  0xca   : > { %549 = vrot.lane.b32.xlu1 %v398_v47, %s1524_s10 }
  0xcb   : > { %485 = vrot.lane.b32.xlu2 %v1856_v40, %s1522_s8  ;;  %v444_v62 = vpop.permute.xlu0 %443 }
  0xcc   : > { %v476_v63 = vpop.permute.xlu1 %475  ;;  %v667_v1 = vsel %vm665_vm2, %v658_v61, %v444_v62 }
  0xcd   : > { %v414_v0 = vpop.permute.xlu2 %413  ;;  %v676_v6 = vsel %vm674_vm3, %v667_v1, %v476_v63 }
  0xce   : > { %v685_v3 = vsel %vm683_vm4, %v676_v6, %v508_v53  ;;  %v659_v38 = vsel %vm287_vm0, %v1739_v12, %v414_v0 }
  0xd1   : > { %613 = vrot.lane.b32.xlu0 %v391_v4, %s1526_s12 }
  0xd2   : > { %645 = vrot.lane.b32.xlu1 %v399_v5, %s1527_s13 }
  0xd3   : > { %581 = vrot.lane.b32.xlu2 %v359_v10, %s1528_s14  ;;  %v540_v11 = vpop.permute.xlu0 %539 }
  0xd4   : > { %v572_v15 = vpop.permute.xlu1 %571  ;;  %v694_v18 = vsel %vm692_vm5, %v685_v3, %v540_v11 }
  0xd5   : > { %v482_v16 = vpop.permute.xlu2 %481  ;;  %v703_v19 = vsel %vm701_vm6, %v694_v18, %v572_v15 }
  0xd6   : > { %v712_v24 = vsel %vm710_vm7, %v703_v19, %v604_v59 }
  0xd9   : > { %455 = vrot.lane.b32.xlu0 %v398_v47, %s1523_s9 }
  0xda   : > { %487 = vrot.lane.b32.xlu1 %v359_v10, %s1522_s8 }
  0xdb   : > { %423 = vrot.lane.b32.xlu2 %v390_v49, %s1521_s26  ;;  %v418_v20 = vpop.permute.xlu0 %417 }
  0xdc   : > { %v636_v22 = vpop.permute.xlu1 %635  ;;  %v661_v41 = vsel %vm287_vm0, %v1790_v23, %v418_v20 }
  0xdd   : > { %v721_v27 = vsel %vm719_vm8, %v712_v24, %v636_v22  ;;  %v510_v28 = vpop.permute.xlu2 %509 }
  0xde   : > { %1454 = vmatmul.msk.f32.gmra.mxu0 %vm737_vm9, %v721_v27 }
  0xe1   : > { %551 = vrot.lane.b32.xlu0 %v399_v5, %s1524_s10 }
  0xe2   : > { %583 = vrot.lane.b32.xlu1 %v384_v29, %s1528_s14 }
  0xe3   : > { %519 = vrot.lane.b32.xlu2 %v391_v4, %s1525_s11  ;;  %v450_v30 = vpop.permute.xlu0 %449 }
  0xe4   : > { %v446_v31 = vpop.permute.xlu1 %445  ;;  %v670_v46 = vsel %vm665_vm2, %v661_v41, %v450_v30  ;;  %v882_v30 = vld [vmem:[#allocation3 + $0x8] sm:$0xff] }
  0xe5   : > { %v578_v32 = vpop.permute.xlu2 %577  ;;  %v668_v39 = vsel %vm665_vm2, %v659_v38, %v446_v31  ;;  %v679_v49 = vsel %vm674_vm3, %v670_v46, %v482_v16  ;;  %v890_v31 = vld [vmem:[#allocation3 + $0x9] sm:$0xff] }
  0xe9   : > { %647 = vrot.lane.b32.xlu0 %v400_v33, %s1527_s13 }
  0xea   : > { %955 = vrot.lane.b32.xlu1 %v882_v30, %s1521_s26 }
  0xeb   : > { %v478_v34 = vpop.permute.xlu0 %477  ;;  %615 = vrot.lane.b32.xlu2 %v392_v36, %s1526_s12 }
  0xec   : > { %v514_v35 = vpop.permute.xlu1 %513  ;;  %v677_v45 = vsel %vm674_vm3, %v668_v39, %v478_v34 }
  0xed   : > { %v606_v37 = vpop.permute.xlu2 %605  ;;  %v686_v47 = vsel %vm683_vm4, %v677_v45, %v510_v28  ;;  %v688_v12 = vsel %vm683_vm4, %v679_v49, %v514_v35 }
  0xf1   : > { %987 = vrot.lane.b32.xlu0 %v890_v31, %s1523_s9 }
  0xf3   : > { %v546_v42 = vpop.permute.xlu0 %545 }
  0xf4   : > { %v542_v44 = vpop.permute.xlu1 %541  ;;  %v697_v23 = vsel %vm692_vm5, %v688_v12, %v546_v42 }
  0xf5   : > { %v638_v48 = vpop.permute.xlu2 %637  ;;  %v695_v50 = vsel %vm692_vm5, %v686_v47, %v542_v44  ;;  %v706_v56 = vsel %vm701_vm6, %v697_v23, %v578_v32  ;;  %v930_v32 = vld [vmem:[#allocation3 + $0xdf] sm:$0xff]  ;;  %v1971_v23 = vld [vmem:[%s2301_s3] ss:$0 sm:$0xff] }
  0xf6   : > { %1129 = vrot.lane.b32.xlu2 %v930_v32, %s1528_s14 }
  0xfb   : > { %v574_v51 = vpop.permute.xlu0 %573 }
  0xfc   : > { %v610_v52 = vpop.permute.xlu1 %609  ;;  %v704_v53 = vsel %vm701_vm6, %v695_v50, %v574_v51 }
  0xfd   : > { %v713_v54 = vsel %vm710_vm7, %v704_v53, %v606_v37  ;;  %v448_v57 = vpop.permute.xlu2 %447  ;;  %v715_v58 = vsel %vm710_vm7, %v706_v56, %v610_v52 }
  0xfe   : > { %v722_v55 = vsel %vm719_vm8, %v713_v54, %v638_v48 }
  0xff   : > { %1455 = vmatmul.msk.f32.gmra.mxu0 %vm737_vm9, %v722_v55 }
 0x103   : > { %v642_v59 = vpop.permute.xlu0 %641 }
 0x104   : > { %v420_v60 = vpop.permute.xlu1 %419  ;;  %v724_v61 = vsel %vm719_vm8, %v715_v58, %v642_v59 }
 0x105   : > { %1457 = vmatmul.msk.f32.vlgmr.msra.gmra.mxu2 %vm737_vm9, %v724_v61  ;;  %v516_v62 = vpop.permute.xlu2 %515  ;;  %v662_v11 = vsel %vm287_vm0, %v1776_v21, %v420_v60 }
 0x10b   : > { %v416_v63 = vpop.permute.xlu0 %415 }
 0x10c   : > { %v452_v0 = vpop.permute.xlu1 %451  ;;  %v660_v18 = vsel %vm287_vm0, %v1754_v14, %v416_v63 }
 0x10d   : > { %v544_v5 = vpop.permute.xlu2 %543  ;;  %v671_v15 = vsel %vm665_vm2, %v662_v11, %v452_v0  ;;  %v669_v27 = vsel %vm665_vm2, %v660_v18, %v448_v57 }
 0x113   : > { %v484_v1 = vpop.permute.xlu0 %483 }
 0x114   : > { %v480_v4 = vpop.permute.xlu1 %479  ;;  %v680_v16 = vsel %vm674_vm3, %v671_v15, %v484_v1 }
 0x115   : > { %v612_v3 = vpop.permute.xlu2 %611  ;;  %v689_v22 = vsel %vm683_vm4, %v680_v16, %v516_v62  ;;  %v678_v21 = vsel %vm674_vm3, %v669_v27, %v480_v4 }
 0x11b   : > { %v512_v6 = vpop.permute.xlu0 %511 }
 0x11c   : > { %v548_v10 = vpop.permute.xlu1 %547  ;;  %v687_v35 = vsel %vm683_vm4, %v678_v21, %v512_v6 }
 0x11d   : > { %v698_v24 = vsel %vm692_vm5, %v689_v22, %v548_v10  ;;  %v422_v28 = vpop.permute.xlu2 %421  ;;  %v696_v37 = vsel %vm692_vm5, %v687_v35, %v544_v5 }
 0x11e   : > { %v663_v44 = vsel %vm287_vm0, %v1794_v25, %v422_v28  ;;  %v1965_v25 = vld [vmem:[%s2300_s2] ss:$0 sm:$0xff] }
 0x123   : > { %v580_v19 = vpop.permute.xlu0 %579 }
 0x124   : > { %v576_v20 = vpop.permute.xlu1 %575  ;;  %v707_v29 = vsel %vm701_vm6, %v698_v24, %v580_v19 }
 0x125   : > { %v716_v33 = vsel %vm710_vm7, %v707_v29, %v612_v3  ;;  %v705_v38 = vsel %vm701_vm6, %v696_v37, %v576_v20  ;;  %v486_v39 = vpop.permute.xlu2 %485 }
 0x12b   : > { %v608_v34 = vpop.permute.xlu0 %607 }
 0x12c   : > { %v644_v14 = vpop.permute.xlu1 %643  ;;  %v714_v41 = vsel %vm710_vm7, %v705_v38, %v608_v34 }
 0x12d   : > { %v725_v36 = vsel %vm719_vm8, %v716_v33, %v644_v14  ;;  %v582_v49 = vpop.permute.xlu2 %581 }
 0x12e   : > { %1458 = vmatmul.msk.f32.gmra.mxu2 %vm737_vm9, %v725_v36 }
 0x133   : > { %v640_v42 = vpop.permute.xlu0 %639 }
 0x134   : > { %v454_v45 = vpop.permute.xlu1 %453  ;;  %v723_v46 = vsel %vm719_vm8, %v714_v41, %v640_v42 }
 0x135   : > { %1456 = vmatmul.msk.f32.gmra.mxu0 %vm737_vm9, %v723_v46  ;;  %v672_v47 = vsel %vm665_vm2, %v663_v44, %v454_v45  ;;  %v424_v54 = vpop.permute.xlu2 %423 }
 0x136   : > { %v681_v48 = vsel %vm674_vm3, %v672_v47, %v486_v39  ;;  %v664_v63 = vsel %vm287_vm0, %v1856_v40, %v424_v54 }
 0x13b   : > { %v518_v50 = vpop.permute.xlu0 %517 }
 0x13c   : > { %v550_v12 = vpop.permute.xlu1 %549  ;;  %v690_v51 = vsel %vm683_vm4, %v681_v48, %v518_v50 }
 0x13d   : > { %v699_v52 = vsel %vm692_vm5, %v690_v51, %v550_v12  ;;  %v520_v5 = vpop.permute.xlu2 %519 }
 0x13e   : > { %v708_v53 = vsel %vm701_vm6, %v699_v52, %v582_v49 }
 0x143   : > { %v779_v55 = vpop.f32.mrf.mxu0  ;;  %v614_v56 = vpop.permute.xlu0 %613 }
 0x144   : > { %v807_v57 = vmul.f32 %v1965_v25, %v779_v55  ;;  %v717_v58 = vsel %vm710_vm7, %v708_v53, %v614_v56  ;;  %v646_v59 = vpop.permute.xlu1 %645 }
 0x145   : > { %v726_v60 = vsel %vm719_vm8, %v717_v58, %v646_v59  ;;  %v616_v20 = vpop.permute.xlu2 %615 }
 0x146   : > { %v819_v61 = vadd.f32 %v1971_v23, %v807_v57  ;;  %1459 = vmatmul.msk.f32.gmra.mxu2 %vm737_vm9, %v726_v60 }
 0x148   : > { %v827_v62 = vmax.f32 %v819_v61, 0.0 }
 0x14a   : > { %866 = vst.msk [vmem:[#allocation3 + $0x20] sm:$0xff] %vm287_vm0, %v827_v62 }
 0x14b   : > { %v456_v0 = vpop.permute.xlu0 %455 }
 0x14c   : > { %v673_v1 = vsel %vm665_vm2, %v664_v63, %v456_v0  ;;  %v488_v4 = vpop.permute.xlu1 %487 }
 0x14d   : > { %v682_v6 = vsel %vm674_vm3, %v673_v1, %v488_v4 }
 0x14e   : > { %v691_v3 = vsel %vm683_vm4, %v682_v6, %v520_v5 }
 0x150   : > { %v2036_v12 = vpop.permute.xlu2 %1129 }
 0x151   : > { %v914_v10 = vld [vmem:[#allocation3 + $0x21] sm:$0xff] }
 0x152   : > { %v1983_v11 = vld [vmem:[#allocation3 + $0x1f] sm:$0xff]  ;;  %1083 = vrot.lane.b32.xlu1 %v914_v10, %s1524_s10 }
 0x153   : > { %v906_v15 = vld [vmem:[#allocation3 + $0x20] sm:$0xff]  ;;  %1019 = vrot.lane.b32.xlu0 %v1983_v11, %s1522_s8  ;;  %v552_v40 = vpop.permute.xlu0 %551 }
 0x154   : > { %1051 = vrot.lane.b32.xlu2 %v906_v15, %s1525_s11  ;;  %v700_v16 = vsel %vm692_vm5, %v691_v3, %v552_v40  ;;  %v584_v18 = vpop.permute.xlu1 %583 }
 0x155   : > { %v709_v19 = vsel %vm701_vm6, %v700_v16, %v584_v18 }
 0x156   : > { %v718_v22 = vsel %vm710_vm7, %v709_v19, %v616_v20 }
 0x15a   : > { %989 = vrot.lane.b32.xlu1 %v914_v10, %s1523_s9 }
 0x15b   : > { %v782_v24 = vpop.f32.mrf.mxu0  ;;  %v648_v28 = vpop.permute.xlu0 %647 }
 0x15c   : > { %957 = vrot.lane.b32.xlu2 %v906_v15, %s1521_s26  ;;  %v808_v27 = vmul.f32 %v1965_v25, %v782_v24  ;;  %v727_v29 = vsel %vm719_vm8, %v718_v22, %v648_v28  ;;  %v2042_v54 = vpop.permute.xlu1 %955  ;;  %v1273_v22 = vld [vmem:[%s2302_s4 + $0x30] sm:$0xff]  ;;  %v1272_v28 = vld [vmem:[%s2302_s4 + $0x28] sm:$0xff] }
 0x15d   : > { %1460 = vmatmul.msk.f32.gmra.mxu2 %vm737_vm9, %v727_v29 }
 0x15e   : > { %v820_v21 = vadd.f32 %v1971_v23, %v808_v27 }
 0x160   : > { %v828_v30 = vmax.f32 %v820_v21, 0.0  ;;  %v1271_v21 = vld [vmem:[%s2302_s4 + $0x20] sm:$0xff] }
 0x162   : > { %867 = vst.msk [vmem:[#allocation3 + $0x38] sm:$0xff] %vm287_vm0, %v828_v30  ;;  %v1270_v30 = vld [vmem:[%s2302_s4 + $0x18] sm:$0xff] }
 0x169   : > { %v2022_v42 = vld [vmem:[#allocation3 + $0x37] sm:$0xff] }
 0x16a   : > { %v939_v44 = vld [vmem:[#allocation3 + $0x39] sm:$0xff] }
 0x16b   : > { %v931_v45 = vld [vmem:[#allocation3 + $0x38] sm:$0xff] }
 0x17c   : > { %v785_v31 = vpop.f32.mrf.mxu0 }
 0x17d   : > { %v809_v32 = vmul.f32 %v1965_v25, %v785_v31  ;;  %v1269_v31 = vld [vmem:[%s2302_s4 + $0x10] sm:$0xff] }
 0x17f   : > { %v821_v33 = vadd.f32 %v1971_v23, %v809_v32  ;;  %v1268_v32 = vld [vmem:[%s2302_s4 + $0x8] sm:$0xff] }
 0x181   : > { %v829_v34 = vmax.f32 %v821_v33, 0.0  ;;  %v988_v33 = vpop.permute.xlu0 %987 }
 0x183   : > { %868 = vst.msk [vmem:[#allocation3 + $0x50] sm:$0xff] %vm287_vm0, %v829_v34 }
 0x188   : > { %v791_v14 = vpop.f32.mrf.mxu2 }
 0x189   : > { %v811_v35 = vmul.f32 %v1965_v25, %v791_v14  ;;  %v1267_v14 = vld [vmem:[%s2302_s4] sm:$0xff] }
 0x18a   : > { %v2065_v6 = vld [vmem:[#allocation3 + $0x4f] sm:$0xff] }
 0x18b   : > { %v823_v36 = vadd.f32 %v1971_v23, %v811_v35  ;;  %v2072_v10 = vld [vmem:[#allocation3 + $0x51] sm:$0xff] }
 0x18d   : > { %v831_v37 = vmax.f32 %v823_v36, 0.0 }
 0x18f   : > { %870 = vst.msk [vmem:[#allocation3 + $0x80] sm:$0xff] %vm287_vm0, %v831_v37 }
 0x196   : > { %v2006_v38 = vld [vmem:[#allocation3 + $0x81] sm:$0xff] }
 0x197   : > { %v2008_v39 = vld [vmem:[#allocation3 + $0x80] sm:$0xff]  ;;  %1091 = vrot.lane.b32.xlu2 %v2006_v38, %s1524_s10 }
 0x198   : > { %v2010_v41 = vld [vmem:[#allocation3 + $0x7f] sm:$0xff]  ;;  %1059 = vrot.lane.b32.xlu1 %v2008_v39, %s1525_s11 }
 0x199   : > { %1027 = vrot.lane.b32.xlu0 %v2010_v41, %s1522_s8 }
 0x19f   : > { %965 = vrot.lane.b32.xlu2 %v2008_v39, %s1521_s26 }
 0x1a0   : > { %997 = vrot.lane.b32.xlu1 %v2006_v38, %s1523_s9 }
 0x1a1   : > { %1115 = vrot.lane.b32.xlu0 %v2022_v42, %s1528_s14 }
 0x1a7   : > { %1147 = vrot.lane.b32.xlu2 %v931_v45, %s1526_s12 }
 0x1a8   : > { %1179 = vrot.lane.b32.xlu1 %v939_v44, %s1527_s13 }
 0x1a9   : > { %1053 = vrot.lane.b32.xlu0 %v931_v45, %s1525_s11 }
 0x1ae   : > { %v2046_v58 = vpop.permute.xlu2 %1051 }
 0x1af   : > { %1085 = vrot.lane.b32.xlu2 %v939_v44, %s1524_s10 }
 0x1b0   : > { %1021 = vrot.lane.b32.xlu1 %v2022_v42, %s1522_s8 }
 0x1b1   : > { %959 = vrot.lane.b32.xlu0 %v931_v45, %s1521_s26  ;;  %v794_v46 = vpop.f32.mrf.mxu2  ;;  %v874_v45 = vld [vmem:[#allocation3 + $0x7] sm:$0xff] }
 0x1b2   : > { %v812_v47 = vmul.f32 %v1965_v25, %v794_v46  ;;  %v788_v48 = vpop.f32.mrf.mxu0 }
 0x1b3   : > { %v810_v49 = vmul.f32 %v1965_v25, %v788_v48  ;;  %v1203_v48 = vsel %vm287_vm0, %v874_v45, %v2042_v54 }
 0x1b4   : > { %v824_v50 = vadd.f32 %v1971_v23, %v812_v47 }
 0x1b5   : > { %v822_v51 = vadd.f32 %v1971_v23, %v810_v49 }
 0x1b6   : > { %v832_v52 = vmax.f32 %v824_v50, 0.0  ;;  %v958_v60 = vpop.permute.xlu2 %957 }
 0x1b7   : > { %v830_v53 = vmax.f32 %v822_v51, 0.0  ;;  %991 = vrot.lane.b32.xlu2 %v939_v44, %s1523_s9  ;;  %v1204_v63 = vsel %vm287_vm0, %v1983_v11, %v958_v60  ;;  %v2074_v11 = vld [vmem:[#allocation3 + $0x50] sm:$0xff]  ;;  %v1211_v51 = vsel %vm665_vm2, %v1203_v48, %v988_v33 }
 0x1b8   : > { %871 = vst.msk [vmem:[#allocation3 + $0x98] sm:$0xff] %vm287_vm0, %v832_v52  ;;  %v938_v52 = vld [vmem:[#allocation3 + $0xe0] sm:$0xff] }
 0x1b9   : > { %869 = vst.msk [vmem:[#allocation3 + $0x68] sm:$0xff] %vm287_vm0, %v830_v53 }
 0x1bf   : > { %v943_v55 = vld [vmem:[#allocation3 + $0x99] sm:$0xff] }
 0x1c0   : > { %v935_v56 = vld [vmem:[#allocation3 + $0x98] sm:$0xff]  ;;  %1187 = vrot.lane.b32.xlu1 %v943_v55, %s1527_s13  ;;  %v2082_v15 = vld [vmem:[#allocation3 + $0x68] sm:$0xff] }
 0x1c1   : > { %v2044_v57 = vld [vmem:[#allocation3 + $0x97] sm:$0xff]  ;;  %1155 = vrot.lane.b32.xlu2 %v935_v56, %s1526_s12  ;;  %v2094_v20 = vld [vmem:[#allocation3 + $0x69] sm:$0xff] }
 0x1c2   : > { %1123 = vrot.lane.b32.xlu0 %v2044_v57, %s1528_s14  ;;  %v2139_v35 = vld [vmem:[#allocation3 + $0x67] sm:$0xff] }
 0x1c4   : > { %v2052_v59 = vpop.permute.xlu1 %1083 }
 0x1c5   : > { %v1020_v37 = vpop.permute.xlu0 %1019 }
 0x1c8   : > { %1093 = vrot.lane.b32.xlu1 %v943_v55, %s1524_s10 }
 0x1c9   : > { %1061 = vrot.lane.b32.xlu2 %v935_v56, %s1525_s11  ;;  %v797_v61 = vpop.f32.mrf.mxu2 }
 0x1ca   : > { %1029 = vrot.lane.b32.xlu0 %v2044_v57, %s1522_s8  ;;  %v813_v62 = vmul.f32 %v1965_v25, %v797_v61 }
 0x1cc   : > { %v990_v0 = vpop.permute.xlu1 %989  ;;  %v825_v1 = vadd.f32 %v1971_v23, %v813_v62 }
 0x1cd   : > { %v2063_v4 = vsel %vm665_vm2, %v1204_v63, %v990_v0 }
 0x1ce   : > { %v833_v5 = vmax.f32 %v825_v1, 0.0 }
 0x1d0   : > { %1117 = vrot.lane.b32.xlu1 %v2065_v6, %s1528_s14  ;;  %872 = vst.msk [vmem:[#allocation3 + $0xb0] sm:$0xff] %vm287_vm0, %v833_v5 }
 0x1d1   : > { %999 = vrot.lane.b32.xlu2 %v943_v55, %s1523_s9  ;;  %v1219_v55 = vsel %vm674_vm3, %v1211_v51, %v1020_v37 }
 0x1d2   : > { %967 = vrot.lane.b32.xlu0 %v935_v56, %s1521_s26  ;;  %v1227_v54 = vsel %vm683_vm4, %v1219_v55, %v2046_v58 }
 0x1d3   : > { %v1235_v63 = vsel %vm692_vm5, %v1227_v54, %v2052_v59  ;;  %v946_v59 = vld [vmem:[#allocation3 + $0xe1] sm:$0xff] }
 0x1d7   : > { %v2092_v19 = vld [vmem:[#allocation3 + $0xaf] sm:$0xff] }
 0x1d8   : > { %1055 = vrot.lane.b32.xlu1 %v2074_v11, %s1525_s11  ;;  %v936_v24 = vld [vmem:[#allocation3 + $0xb0] sm:$0xff] }
 0x1d9   : > { %1181 = vrot.lane.b32.xlu2 %v2072_v10, %s1527_s13  ;;  %v944_v27 = vld [vmem:[#allocation3 + $0xb1] sm:$0xff] }
 0x1da   : > { %1149 = vrot.lane.b32.xlu0 %v2074_v11, %s1526_s12 }
 0x1e0   : > { %963 = vrot.lane.b32.xlu1 %v2082_v15, %s1521_s26  ;;  %v800_v3 = vpop.f32.mrf.mxu2 }
 0x1e1   : > { %1023 = vrot.lane.b32.xlu2 %v2065_v6, %s1522_s8  ;;  %v814_v40 = vmul.f32 %v1965_v25, %v800_v3  ;;  %v1275_v25 = vld [vmem:[%s2302_s4 + $0x40] sm:$0xff] }
 0x1e2   : > { %1087 = vrot.lane.b32.xlu0 %v2072_v10, %s1524_s10  ;;  %1307 = vmatpush.msra.mxu1 %v1275_v25 }
 0x1e3   : > { %v826_v16 = vadd.f32 %v1971_v23, %v814_v40  ;;  %v1274_v23 = vld [vmem:[%s2302_s4 + $0x38] sm:$0xff]  ;;  %1482 = vmatpush.msra.mxu3 %v1275_v25 }
 0x1e4   : > { %1308 = vmatpush.msra.mxu1 %v1274_v23 }
 0x1e5   : > { %v834_v18 = vmax.f32 %v826_v16, 0.0  ;;  %1483 = vmatpush.msra.mxu3 %v1274_v23 }
 0x1e6   : > { %1309 = vmatpush.msra.mxu1 %v1273_v22 }
 0x1e7   : > { %873 = vst.msk [vmem:[#allocation3 + $0xc8] sm:$0xff] %vm287_vm0, %v834_v18  ;;  %1484 = vmatpush.msra.mxu3 %v1273_v22 }
 0x1e8   : > { %1031 = vrot.lane.b32.xlu1 %v2092_v19, %s1522_s8  ;;  %1310 = vmatpush.msra.mxu1 %v1272_v28 }
 0x1e9   : > { %995 = vrot.lane.b32.xlu2 %v2094_v20, %s1523_s9  ;;  %1485 = vmatpush.msra.mxu3 %v1272_v28 }
 0x1ea   : > { %1125 = vrot.lane.b32.xlu0 %v2092_v19, %s1528_s14  ;;  %1311 = vmatpush.msra.mxu1 %v1271_v21 }
 0x1eb   : > { %1486 = vmatpush.msra.mxu3 %v1271_v21 }
 0x1ec   : > { %1312 = vmatpush.msra.mxu1 %v1270_v30 }
 0x1ed   : > { %1487 = vmatpush.msra.mxu3 %v1270_v30 }
 0x1ee   : > { %1313 = vmatpush.msra.mxu1 %v1269_v31  ;;  %v929_v36 = vld [vmem:[#allocation3 + $0xc7] sm:$0xff] }
 0x1ef   : > { %1488 = vmatpush.msra.mxu3 %v1269_v31  ;;  %v937_v46 = vld [vmem:[#allocation3 + $0xc8] sm:$0xff] }
 0x1f0   : > { %969 = vrot.lane.b32.xlu1 %v936_v24, %s1521_s26  ;;  %1314 = vmatpush.msra.mxu1 %v1268_v32  ;;  %v945_v47 = vld [vmem:[#allocation3 + $0xc9] sm:$0xff] }
 0x1f1   : > { %1189 = vrot.lane.b32.xlu2 %v944_v27, %s1527_s13  ;;  %v2118_v29 = vpop.permute.xlu2 %1091  ;;  %1489 = vmatpush.msra.mxu3 %v1268_v32 }
 0x1f2   : > { %1157 = vrot.lane.b32.xlu0 %v936_v24, %s1526_s12  ;;  %1315 = vmatpush.msra.mxu1 %v1267_v14 }
 0x1f3   : > { %1490 = vmatpush.msra.mxu3 %v1267_v14 }
 0x1f8   : > { %1151 = vrot.lane.b32.xlu1 %v2082_v15, %s1526_s12 }
 0x1f9   : > { %1095 = vrot.lane.b32.xlu2 %v944_v27, %s1524_s10  ;;  %v966_v34 = vpop.permute.xlu2 %965 }
 0x1fa   : > { %1063 = vrot.lane.b32.xlu0 %v936_v24, %s1525_s11  ;;  %v1208_v56 = vsel %vm287_vm0, %v2010_v41, %v966_v34 }
 0x200   : > { %1127 = vrot.lane.b32.xlu1 %v929_v36, %s1528_s14 }
 0x201   : > { %1119 = vrot.lane.b32.xlu2 %v2139_v35, %s1528_s14  ;;  %v1148_v44 = vpop.permute.xlu2 %1147 }
 0x202   : > { %1001 = vrot.lane.b32.xlu0 %v944_v27, %s1523_s9 }
 0x208   : > { %1159 = vrot.lane.b32.xlu1 %v937_v46, %s1526_s12 }
 0x209   : > { %1033 = vrot.lane.b32.xlu2 %v929_v36, %s1522_s8  ;;  %v1086_v53 = vpop.permute.xlu2 %1085 }
 0x20a   : > { %1191 = vrot.lane.b32.xlu0 %v945_v47, %s1527_s13  ;;  %v2150_v49 = vpop.permute.xlu1 %1059 }
 0x20b   : > { %v1028_v50 = vpop.permute.xlu0 %1027 }
 0x210   : > { %1065 = vrot.lane.b32.xlu1 %v937_v46, %s1525_s11 }
 0x211   : > { %1161 = vrot.lane.b32.xlu2 %v938_v52, %s1526_s12  ;;  %v992_v1 = vpop.permute.xlu2 %991 }
 0x212   : > { %1097 = vrot.lane.b32.xlu0 %v945_v47, %s1524_s10  ;;  %v998_v60 = vpop.permute.xlu1 %997 }
 0x213   : > { %v1216_v61 = vsel %vm665_vm2, %v1208_v56, %v998_v60  ;;  %v1116_v62 = vpop.permute.xlu0 %1115 }
 0x214   : > { %v1243_v0 = vsel %vm701_vm6, %v1235_v63, %v1116_v62 }
 0x215   : > { %v1251_v58 = vsel %vm710_vm7, %v1243_v0, %v1148_v44 }
 0x218   : > { %961 = vrot.lane.b32.xlu1 %v2074_v11, %s1521_s26 }
 0x219   : > { %1025 = vrot.lane.b32.xlu2 %v2139_v35, %s1522_s8 }
 0x21a   : > { %1183 = vrot.lane.b32.xlu0 %v2094_v20, %s1527_s13  ;;  %v1180_v5 = vpop.permute.xlu1 %1179 }
 0x21b   : > { %v1054_v3 = vpop.permute.xlu0 %1053  ;;  %v1259_v40 = vsel %vm719_vm8, %v1251_v58, %v1180_v5  ;;  %v1156_v16 = vpop.permute.xlu2 %1155 }
 0x21c   : > { %1461 = vmatmul.msk.f32.vlgmr.msra.gmra.mxu1 %vm737_vm9, %v1259_v40 }
 0x220   : > { %1193 = vrot.lane.b32.xlu1 %v946_v59, %s1527_s13 }
 0x221   : > { %1121 = vrot.lane.b32.xlu2 %v2010_v41, %s1528_s14 }
 0x222   : > { %993 = vrot.lane.b32.xlu0 %v2072_v10, %s1523_s9  ;;  %v1022_v41 = vpop.permute.xlu1 %1021 }
 0x223   : > { %v960_v11 = vpop.permute.xlu0 %959  ;;  %v1062_v23 = vpop.permute.xlu2 %1061 }
 0x224   : > { %v1205_v18 = vsel %vm287_vm0, %v2022_v42, %v960_v11 }
 0x225   : > { %v2182_v25 = vsel %vm665_vm2, %v1205_v18, %v992_v1 }
 0x228   : > { %1089 = vrot.lane.b32.xlu1 %v2094_v20, %s1524_s10  ;;  %v1220_v20 = vsel %vm674_vm3, %v2063_v4, %v1022_v41 }
 0x22a   : > { %1057 = vrot.lane.b32.xlu0 %v2082_v15, %s1525_s11  ;;  %v1228_v15 = vsel %vm683_vm4, %v1220_v20, %v1054_v3 }
 0x22b   : > { %v1000_v42 = vpop.permute.xlu2 %999  ;;  %v1236_v32 = vsel %vm692_vm5, %v1228_v15, %v1086_v53 }
 0x230   : > { %1185 = vrot.lane.b32.xlu1 %v2006_v38, %s1527_s13  ;;  %s2265_s13 = scalar_lea.vmem %s2305_s7, %s1471_s27 }
 0x232   : > { %1153 = vrot.lane.b32.xlu0 %v2008_v39, %s1526_s12  ;;  %v1188_v10 = vpop.permute.xlu1 %1187 }
 0x233   : > { %v1182_v28 = vpop.permute.xlu2 %1181 }
 0x234   : > { %v1124_v22 = vpop.permute.xlu0 %1123 }
 0x23a   : > { %v1094_v24 = vpop.permute.xlu1 %1093 }
 0x23b   : > { %v1024_v31 = vpop.permute.xlu2 %1023 }
 0x23c   : > { %v1030_v27 = vpop.permute.xlu0 %1029  ;;  %v1221_v20 = vsel %vm674_vm3, %v2182_v25, %v1024_v31 }
 0x242   : > { %v1118_v21 = vpop.permute.xlu1 %1117 }
 0x243   : > { %v1244_v33 = vsel %vm701_vm6, %v1236_v32, %v1118_v21  ;;  %v996_v37 = vpop.permute.xlu2 %995 }
 0x244   : > { %v968_v30 = vpop.permute.xlu0 %967 }
 0x24a   : > { %v1056_v38 = vpop.permute.xlu1 %1055 }
 0x24b   : > { %v1190_v62 = vpop.permute.xlu2 %1189  ;;  %v1229_v15 = vsel %vm683_vm4, %v1221_v20, %v1056_v38 }
 0x24c   : > { %v1150_v39 = vpop.permute.xlu0 %1149 }
 0x24d   : > { %v1252_v34 = vsel %vm710_vm7, %v1244_v33, %v1150_v39 }
 0x24e   : > { %v1260_v14 = vsel %vm719_vm8, %v1252_v34, %v1182_v28 }
 0x24f   : > { %1462 = vmatmul.msk.f32.gmra.mxu1 %vm737_vm9, %v1260_v14 }
 0x252   : > { %v964_v36 = vpop.permute.xlu1 %963 }
 0x253   : > { %v1207_v4 = vsel %vm287_vm0, %v2139_v35, %v964_v36  ;;  %v1224_v35 = vsel %vm674_vm3, %v1216_v61, %v1030_v27  ;;  %v1096_v58 = vpop.permute.xlu2 %1095  ;;  %v1209_v61 = vsel %vm287_vm0, %v2044_v57, %v968_v30 }
 0x254   : > { %v1088_v44 = vpop.permute.xlu0 %1087  ;;  %v1215_v45 = vsel %vm665_vm2, %v1207_v4, %v996_v37  ;;  %v1217_v59 = vsel %vm665_vm2, %v1209_v61, %v1000_v42 }
 0x255   : > { %v1223_v46 = vsel %vm674_vm3, %v1215_v45, %v1028_v50  ;;  %v1232_v50 = vsel %vm683_vm4, %v1224_v35, %v1062_v23  ;;  %v1237_v33 = vsel %vm692_vm5, %v1229_v15, %v1088_v44 }
 0x256   : > { %v1231_v47 = vsel %vm683_vm4, %v1223_v46, %v2150_v49  ;;  %v1240_v60 = vsel %vm692_vm5, %v1232_v50, %v1094_v24 }
 0x257   : > { %v1239_v48 = vsel %vm692_vm5, %v1231_v47, %v2118_v29  ;;  %v1510_v47 = vld [vmem:[%s2303_s5] ss:$0 sm:$0xff] }
 0x258   : > { %v1247_v51 = vsel %vm701_vm6, %v1239_v48, %v1124_v22 }
 0x259   : > { %v1255_v52 = vsel %vm710_vm7, %v1247_v51, %v1156_v16 }
 0x25a   : > { %v1032_v53 = vpop.permute.xlu1 %1031  ;;  %v1263_v55 = vsel %vm719_vm8, %v1255_v52, %v1188_v10 }
 0x25b   : > { %1465 = vmatmul.msk.f32.vlgmr.msra.gmra.mxu3 %vm737_vm9, %v1263_v55  ;;  %v1225_v16 = vsel %vm674_vm3, %v1217_v59, %v1032_v53  ;;  %v1120_v41 = vpop.permute.xlu2 %1119 }
 0x25c   : > { %v1126_v56 = vpop.permute.xlu0 %1125  ;;  %v1245_v34 = vsel %vm701_vm6, %v1237_v33, %v1120_v41 }
 0x25d   : > { %v1248_v54 = vsel %vm701_vm6, %v1240_v60, %v1126_v56 }
 0x262   : > { %v970_v49 = vpop.permute.xlu1 %969 }
 0x263   : > { %v1034_v42 = vpop.permute.xlu2 %1033  ;;  %v1210_v21 = vsel %vm287_vm0, %v2092_v19, %v970_v49 }
 0x264   : > { %v1158_v29 = vpop.permute.xlu0 %1157 }
 0x265   : > { %v1256_v63 = vsel %vm710_vm7, %v1248_v54, %v1158_v29 }
 0x266   : > { %v1264_v0 = vsel %vm719_vm8, %v1256_v63, %v1190_v62 }
 0x267   : > { %1466 = vmatmul.msk.f32.gmra.mxu3 %vm737_vm9, %v1264_v0 }
 0x26a   : > { %v1152_v1 = vpop.permute.xlu1 %1151 }
 0x26b   : > { %v1253_v36 = vsel %vm710_vm7, %v1245_v34, %v1152_v1  ;;  %v1162_v25 = vpop.permute.xlu2 %1161 }
 0x26c   : > { %v1064_v5 = vpop.permute.xlu0 %1063 }
 0x26d   : > { %v1233_v11 = vsel %vm683_vm4, %v1225_v16, %v1064_v5 }
 0x26e   : > { %v1241_v18 = vsel %vm692_vm5, %v1233_v11, %v1096_v58 }
 0x272   : > { %v1128_v3 = vpop.permute.xlu1 %1127 }
 0x273   : > { %v1249_v23 = vsel %vm701_vm6, %v1241_v18, %v1128_v3  ;;  %v1026_v48 = vpop.permute.xlu2 %1025 }
 0x274   : > { %v1002_v40 = vpop.permute.xlu0 %1001 }
 0x275   : > { %v1218_v30 = vsel %vm665_vm2, %v1210_v21, %v1002_v40 }
 0x276   : > { %v1226_v32 = vsel %vm674_vm3, %v1218_v30, %v1034_v42 }
 0x27a   : > { %v1160_v10 = vpop.permute.xlu1 %1159 }
 0x27b   : > { %v1257_v24 = vsel %vm710_vm7, %v1249_v23, %v1160_v10  ;;  %v1122_v62 = vpop.permute.xlu2 %1121 }
 0x27c   : > { %v1192_v22 = vpop.permute.xlu0 %1191 }
 0x27d   : > { %v1265_v27 = vsel %vm719_vm8, %v1257_v24, %v1192_v22 }
 0x27e   : > { %1467 = vmatmul.msk.f32.gmra.mxu3 %vm737_vm9, %v1265_v27 }
 0x282   : > { %v1066_v57 = vpop.permute.xlu1 %1065 }
 0x283   : > { %v1234_v39 = vsel %vm683_vm4, %v1226_v32, %v1066_v57 }
 0x284   : > { %v1098_v28 = vpop.permute.xlu0 %1097 }
 0x285   : > { %v1242_v19 = vsel %vm692_vm5, %v1234_v39, %v1098_v28 }
 0x286   : > { %v1250_v31 = vsel %vm701_vm6, %v1242_v19, %v2036_v12  ;;  %v1511_v12 = vld [vmem:[%s2304_s6] ss:$0 sm:$0xff] }
 0x287   : > { %v1258_v44 = vsel %vm710_vm7, %v1250_v31, %v1162_v25 }
 0x28a   : > { %v962_v14 = vpop.permute.xlu1 %961 }
 0x28b   : > { %v1206_v51 = vsel %vm287_vm0, %v2065_v6, %v962_v14 }
 0x28c   : > { %v1184_v37 = vpop.permute.xlu0 %1183 }
 0x28d   : > { %v1261_v4 = vsel %vm719_vm8, %v1253_v36, %v1184_v37 }
 0x28e   : > { %1463 = vmatmul.msk.f32.gmra.mxu1 %vm737_vm9, %v1261_v4 }
 0x292   : > { %v1194_v38 = vpop.permute.xlu1 %1193 }
 0x293   : > { %v1266_v46 = vsel %vm719_vm8, %v1258_v44, %v1194_v38 }
 0x294   : > { %v994_v45 = vpop.permute.xlu0 %993  ;;  %1468 = vmatmul.msk.f32.gmra.mxu3 %vm737_vm9, %v1266_v46 }
 0x295   : > { %v1214_v52 = vsel %vm665_vm2, %v1206_v51, %v994_v45 }
 0x296   : > { %v1222_v60 = vsel %vm674_vm3, %v1214_v52, %v1026_v48 }
 0x299   : > { %v1317_v53 = vpop.f32.mrf.mxu1 }
 0x29a   : > { %v1345_v55 = vmul.f32 %v1510_v47, %v1317_v53  ;;  %v1090_v56 = vpop.permute.xlu1 %1089 }
 0x29c   : > { %v1058_v35 = vpop.permute.xlu0 %1057  ;;  %v1357_v50 = vadd.f32 %v1511_v12, %v1345_v55 }
 0x29d   : > { %v1230_v49 = vsel %vm683_vm4, %v1222_v60, %v1058_v35 }
 0x29e   : > { %v1365_v54 = vadd.f32 %v1357_v50, %v1669_v2  ;;  %v1238_v29 = vsel %vm692_vm5, %v1230_v49, %v1090_v56 }
 0x29f   : > { %v1246_v1 = vsel %vm701_vm6, %v1238_v29, %v1122_v62 }
 0x2a0   : > { %v1373_v6 = vmax.f32 %v1365_v54, 0.0 }
 0x2a2   : > { %1381 = vst.msk [vmem:[%s2265_s13] sm:$0xff] %vm287_vm0, %v1373_v6  ;;  %v1186_v63 = vpop.permute.xlu1 %1185 }
 0x2a4   : > { %v1154_v0 = vpop.permute.xlu0 %1153 }
 0x2a5   : > { %v1254_v2 = vsel %vm710_vm7, %v1246_v1, %v1154_v0 }
 0x2a6   : > { %v1262_v5 = vsel %vm719_vm8, %v1254_v2, %v1186_v63 }
 0x2a7   : > { %1464 = vmatmul.msk.f32.gmra.mxu1 %vm737_vm9, %v1262_v5 }
 0x2cc   : > { %v1320_v58 = vpop.f32.mrf.mxu1 }
 0x2cd   : > { %v1346_v61 = vmul.f32 %v1510_v47, %v1320_v58 }
 0x2cf   : > { %v1358_v3 = vadd.f32 %v1511_v12, %v1346_v61 }
 0x2d1   : > { %v1366_v40 = vadd.f32 %v1358_v3, %v1721_v7 }
 0x2d3   : > { %v1374_v59 = vmax.f32 %v1366_v40, 0.0 }
 0x2d5   : > { %1382 = vst.msk [vmem:[%s2265_s13 + $0x8] sm:$0xff] %vm287_vm0, %v1374_v59 }
 0x2de   : > { %v1329_v16 = vpop.f32.mrf.mxu3 }
 0x2df   : > { %v1349_v11 = vmul.f32 %v1510_v47, %v1329_v16 }
 0x2e1   : > { %v1361_v18 = vadd.f32 %v1511_v12, %v1349_v11 }
 0x2e3   : > { %v1369_v41 = vadd.f32 %v1361_v18, %v1746_v13 }
 0x2e5   : > { %v1377_v23 = vmax.f32 %v1369_v41, 0.0 }
 0x2e7   : > { %1385 = vst.msk [vmem:[%s2265_s13 + $0x20] sm:$0xff] %vm287_vm0, %v1377_v23 }
 0x2ea   : > { %v1332_v10 = vpop.f32.mrf.mxu3 }
 0x2eb   : > { %v1350_v22 = vmul.f32 %v1510_v47, %v1332_v10 }
 0x2ed   : > { %v1362_v24 = vadd.f32 %v1511_v12, %v1350_v22 }
 0x2ef   : > { %v1370_v27 = vadd.f32 %v1362_v24, %v1761_v17 }
 0x2f1   : > { %v1378_v57 = vmax.f32 %v1370_v27, 0.0 }
 0x2f3   : > { %1386 = vst.msk [vmem:[%s2265_s13 + $0x28] sm:$0xff] %vm287_vm0, %v1378_v57 }
 0x301   : > { %v1335_v7 = vpop.f32.mrf.mxu3 }
 0x302   : > { %v1351_v28 = vmul.f32 %v1510_v47, %v1335_v7 }
 0x304   : > { %v1363_v42 = vadd.f32 %v1511_v12, %v1351_v28 }
 0x306   : > { %v1371_v21 = vadd.f32 %v1363_v42, %v1797_v26 }
 0x308   : > { %v1379_v30 = vmax.f32 %v1371_v21, 0.0 }
 0x30a   : > { %1387 = vst.msk [vmem:[%s2265_s13 + $0x30] sm:$0xff] %vm287_vm0, %v1379_v30 }
 0x30b   : > { %v1323_v13 = vpop.f32.mrf.mxu1 }
 0x30c   : > { %v1347_v20 = vmul.f32 %v1510_v47, %v1323_v13 }
 0x30e   : > { %v1359_v15 = vadd.f32 %v1511_v12, %v1347_v20 }
 0x310   : > { %v1367_v32 = vadd.f32 %v1359_v15, %v1726_v8 }
 0x312   : > { %v1375_v33 = vmax.f32 %v1367_v32, 0.0 }
 0x314   : > { %1383 = vst.msk [vmem:[%s2265_s13 + $0x10] sm:$0xff] %vm287_vm0, %v1375_v33 }
 0x317   : > { %v1338_v17 = vpop.f32.mrf.mxu3 }
 0x318   : > { %v1352_v39 = vmul.f32 %v1510_v47, %v1338_v17 }
 0x31a   : > { %v1364_v34 = vadd.f32 %v1511_v12, %v1352_v39 }
 0x31c   : > { %v1372_v14 = vadd.f32 %v1364_v34, %v1865_v43 }
 0x31e   : > { %v1380_v36 = vmax.f32 %v1372_v14, 0.0 }
 0x320   : > { %1388 = vst.msk [vmem:[%s2265_s13 + $0x38] sm:$0xff] %vm287_vm0, %v1380_v36 }
 0x324   : > { %v1326_v26 = vpop.f32.mrf.mxu1 }
 0x325   : > { %v1348_v37 = vmul.f32 %v1510_v47, %v1326_v26 }
 0x327   : > { %v1360_v19 = vadd.f32 %v1511_v12, %v1348_v37 }
 0x329   : > { %v1368_v4 = vadd.f32 %v1360_v19, %v1731_v9 }
 0x32b   : > { %v1376_v25 = vmax.f32 %v1368_v4, 0.0 }
 0x32d   : > { %1384 = vst.msk [vmem:[%s2265_s13 + $0x18] sm:$0xff] %vm287_vm0, %v1376_v25 }
 0x32e PF: > { %s17_s24 = sadd.s32 1, %s1518_s24  }
 0x32f   : > { %p14_p4 = scmp.ge.s32.totalorder %s17_s24, 4  }
 0x331   :  { %16 = sbr.rel (!%p14_p4) target bundleno = 1 (0x1), region = 82 }

// kernel: encoder_residual_block_pallas.2
= control target key start
LH: loop header
LB: loop body
LE: loop exit
PB: predicated region body
PF: predicated region fallthrough
CT: control target
= control target key end

     0   :  { %s1726_s13 = smov 0   ;;  %s2403_s0 = inlined_call_operand.vmem [shape: f32[2,16,8,8], index: 0, kind: input, shape index: {}]   ;;  %s2404_s1 = inlined_call_operand.vmem [shape: f32[36,8], index: 1, kind: input, shape index: {}]   ;;  %s2405_s2 = inlined_call_operand.vmem [shape: f32[1,8], index: 2, kind: input, shape index: {}]   ;;  %s2406_s3 = inlined_call_operand.vmem [shape: f32[1,8], index: 3, kind: input, shape index: {}]   ;;  %s2407_s4 = inlined_call_operand.vmem [shape: f32[72,8], index: 4, kind: input, shape index: {}]   ;;  %s2408_s5 = inlined_call_operand.vmem [shape: f32[1,8], index: 5, kind: input, shape index: {}]   ;;  %s2409_s6 = inlined_call_operand.vmem [shape: f32[1,8], index: 6, kind: input, shape index: {}]   ;;  %s2410_s7 = inlined_call_operand.vmem [shape: f32[4,8], index: 7, kind: input, shape index: {}]   ;;  %s2411_s8 = inlined_call_operand.vmem [shape: f32[1,8], index: 8, kind: input, shape index: {}]   ;;  %s2412_s9 = inlined_call_operand.vmem [shape: f32[1,8], index: 9, kind: input, shape index: {}]   ;;  %s2413_s10 = inlined_call_operand.vmem [shape: f32[2,8,8,8], index: 10, kind: output, shape index: {}]  }
   0x1 LB: > { %s1575_s14 = sadd.s32 4294967295, %s1656_s13   ;;  %p1579_p0 = scmp.ge.s32.totalorder %s1656_s13, 1  ;;  %s1656_s13 = sphi %s1726_s13, %s20_s13  }
   0x2   : > { %p312_p1 = scmp.lt.s32.totalorder %s1656_s13, 3 }
   0x4   : > { %p313_p2 = pnand %p1579_p0, %p312_p1 }
   0x5   : > { %s1659_s15 = smov (!%p313_p2), 124   ;;  %s1660_s16 = smov (!%p313_p2), 4  }
   0x6   : > { %316 = sbr.rel (%p313_p2) target bundleno = 760 (0x2f8), region = 60  ;;  %p350_p3 = scmp.lt.s32.totalorder (!%p313_p2), %s1575_s14, 1 }
   0x7   : > { %s1661_s21 = smov (!%p313_p2), 8   ;;  %s1662_s22 = smov (!%p313_p2), 20  }
   0x8   : > { %s1663_s23 = smov (!%p313_p2), 16   ;;  %s1664_s24 = smov (!%p313_p2), 28  }
   0x9   : > { %s1667_s25 = smov (!%p313_p2), 32   ;;  %s1668_s26 = smov (!%p313_p2), 24  }
   0xa   : > { %s1669_s27 = smov (!%p313_p2), 64   ;;  %s1670_s28 = smov (!%p313_p2), 56  }
   0xb   : > { %vm376_vm0 = vcmask 64512   ;;  %v1658_v0 = vmov 0.0   ;;  %s2415_s14 = smov (!%p350_p3, %s1575_s14), 1  ;;  %v765_v39 = vld [vmem:[%s2404_s1 + $0x20] sm:$0xf]  ;;  %vm791_vm1 = vcmask 1043456  }
   0xc   : > { %377 = vst.msk [vmem:[#allocation2] sm:$0xff] %vm376_vm0, %v1658_v0  ;;  %s1612_s17 = sshll.u32 %s2415_s14, 7  ;;  %1584 = vmatpush.msk.msra.mxu0 %vm791_vm1, %v765_v39  ;;  %v764_v40 = vld [vmem:[%s2404_s1 + $0x18] sm:$0xff]  ;;  %v763_v43 = vld [vmem:[%s2404_s1 + $0x10] sm:$0xff]  ;;  %v762_v46 = vld [vmem:[%s2404_s1 + $0x8] sm:$0xff]  ;;  %vm690_vm2 = vcmask 31744  }
   0xd   : > { %378 = vst.msk [vmem:[#allocation2 + $0x8] sm:$0xff] %vm376_vm0, %v1658_v0  ;;  %s1844_s20 = scalar_lea.vmem %s2403_s0, %s1612_s17  ;;  %v761_v47 = vld [vmem:[%s2404_s1] sm:$0xff]  ;;  %vm707_vm3 = vcmask 97280   ;;  %vm716_vm4 = vcmask 130048   ;;  %vm725_vm5 = vcmask 162816   ;;  %vm734_vm6 = vcmask 195584  }
   0xe   : > { %381 = vst.msk [vmem:[#allocation2 + $0x18] sm:$0xff] %vm376_vm0, %v1658_v0  ;;  %v1853_v3 = vld [vmem:[%s1844_s20] sm:$0xff]  ;;  %v361_v4 = vld [vmem:[%s1844_s20 + $0x8] sm:$0xff]  ;;  %v1861_v5 = vld [vmem:[%s1844_s20 + $0x10] sm:$0xff]  ;;  %807 = vmatpush.msra.mxu0 %v764_v40  ;;  %vm743_vm7 = vcmask 228352   ;;  %vm752_vm8 = vcmask 261120  }
   0xf   : > { %382 = vst.msk [vmem:[#allocation2 + $0x20] sm:$0xff] %vm376_vm0, %v1658_v0  ;;  %v363_v6 = vld [vmem:[%s1844_s20 + $0x18] sm:$0xff]  ;;  %v1870_v7 = vld [vmem:[%s1844_s20 + $0x20] sm:$0xff]  ;;  %v365_v9 = vld [vmem:[%s1844_s20 + $0x28] sm:$0xff]  ;;  %vm766_vm9 = vcmask 293888   ;;  %vm379_vm10 = vcmask 57344  }
  0x10   : > { %384 = vst.msk [vmem:[#allocation2 + $0x30] sm:$0xff] %vm376_vm0, %v1658_v0  ;;  %v1885_v16 = vld [vmem:[%s1844_s20 + $0x30] sm:$0xff]  ;;  %v367_v17 = vld [vmem:[%s1844_s20 + $0x38] sm:$0xff]  ;;  %v1898_v22 = vld [vmem:[%s1844_s20 + $0x40] sm:$0xff]  ;;  %808 = vmatpush.msra.mxu0 %v763_v43  ;;  %vm1361_vm11 = vcmask 326656   ;;  %vm1370_vm12 = vcmask 392192  }
  0x11   : > { %385 = vst.msk [vmem:[#allocation2 + $0x38] sm:$0xff] %vm376_vm0, %v1658_v0  ;;  %v369_v23 = vld [vmem:[%s1844_s20 + $0x48] sm:$0xff]  ;;  %v1911_v28 = vld [vmem:[%s1844_s20 + $0x50] sm:$0xff]  ;;  %v371_v29 = vld [vmem:[%s1844_s20 + $0x58] sm:$0xff]  ;;  %vm1379_vm13 = vcmask 457728   ;;  %vm1388_vm14 = vcmask 523264  }
  0x12   : > { %387 = vst.msk [vmem:[#allocation2 + $0x48] sm:$0xff] %vm376_vm0, %v1658_v0  ;;  %v1931_v37 = vld [vmem:[%s1844_s20 + $0x60] sm:$0xff]  ;;  %v373_v41 = vld [vmem:[%s1844_s20 + $0x68] sm:$0xff]  ;;  %809 = vmatpush.msra.mxu0 %v762_v46  ;;  %v1960_v51 = vld [vmem:[%s1844_s20 + $0x70] sm:$0xff]  ;;  %vm1406_vm15 = vcmask 588800   ;;  %s1613_s29 = sshll.u32 %s2415_s14, 6 }
  0x13   : > { %388 = vst.msk [vmem:[#allocation2 + $0x50] sm:$0xff] %vm376_vm0, %v1658_v0  ;;  %v375_v53 = vld [vmem:[%s1844_s20 + $0x78] sm:$0xff]  ;;  %s2349_s12 = scalar_lea.vmem %s2413_s10, %s1613_s29 }
  0x14   : > { %v449_v1 = vld [vmem:[#allocation2 + $0x7] sm:$0xff]  ;;  %390 = vst.msk [vmem:[#allocation2 + $0x60] sm:$0xff] %vm376_vm0, %v1658_v0  ;;  %810 = vmatpush.msra.mxu0 %v761_v47 }
  0x15   : > { %506 = vrot.lane.b32.xlu0 %v449_v1, %s1659_s15  ;;  %391 = vst.msk [vmem:[#allocation2 + $0x68] sm:$0xff] %vm376_vm0, %v1658_v0  ;;  %v457_v2 = vld [vmem:[#allocation2 + $0x8] sm:$0xff] }
  0x16   : > { %393 = vst.msk [vmem:[#allocation2 + $0x78] sm:$0xff] %vm376_vm0, %v1658_v0 }
  0x17   : > { %394 = vst.msk [vmem:[#allocation2 + $0x80] sm:$0xff] %vm376_vm0, %v1658_v0 }
  0x18   : > { %396 = vst.msk [vmem:[#allocation2 + $0x90] sm:$0xff] %vm376_vm0, %v1658_v0 }
  0x19   : > { %397 = vst.msk [vmem:[#allocation2 + $0x98] sm:$0xff] %vm376_vm0, %v1658_v0 }
  0x1a   : > { %399 = vst.msk [vmem:[#allocation2 + $0xa8] sm:$0xff] %vm376_vm0, %v1658_v0 }
  0x1b   : > { %400 = vst.msk [vmem:[#allocation2 + $0xb0] sm:$0xff] %vm376_vm0, %v1658_v0 }
  0x1c   : > { %402 = vst.msk [vmem:[#allocation2 + $0xc0] sm:$0xff] %vm376_vm0, %v1658_v0 }
  0x1d   : > { %403 = vst.msk [vmem:[#allocation2 + $0xc8] sm:$0xff] %vm376_vm0, %v1658_v0  ;;  %538 = vrot.lane.b32.xlu0 %v457_v2, %s1660_s16 }
  0x1e   : > { %405 = vst.msk [vmem:[#allocation2 + $0xd8] sm:$0xff] %vm376_vm0, %v1658_v0 }
  0x1f   : > { %406 = vst.msk [vmem:[#allocation2 + $0xe0] sm:$0xff] %vm376_vm0, %v1658_v0 }
  0x20   : > { %408 = vst.msk [vmem:[#allocation2 + $0xf0] sm:$0xff] %vm376_vm0, %v1658_v0 }
  0x21   : > { %409 = vst.msk [vmem:[#allocation2 + $0xf8] sm:$0xff] %vm376_vm0, %v1658_v0 }
  0x22   : > { %411 = vst.msk [vmem:[#allocation2 + $0x108] sm:$0xff] %vm376_vm0, %v1658_v0 }
  0x23   : > { %412 = vst.msk [vmem:[#allocation2 + $0x110] sm:$0xff] %vm376_vm0, %v1658_v0 }
  0x24   : > { %414 = vst.msk [vmem:[#allocation2 + $0x120] sm:$0xff] %vm376_vm0, %v1658_v0 }
  0x25   : > { %415 = vst.msk [vmem:[#allocation2 + $0x128] sm:$0xff] %vm376_vm0, %v1658_v0 }
  0x26   : > { %417 = vst.msk [vmem:[#allocation2 + $0x138] sm:$0xff] %vm376_vm0, %v1658_v0 }
  0x27   : > { %418 = vst.msk [vmem:[#allocation2 + $0x140] sm:$0xff] %vm376_vm0, %v1658_v0 }
  0x28   : > { %420 = vst.msk [vmem:[#allocation2 + $0x150] sm:$0xff] %vm376_vm0, %v1658_v0 }
  0x29   : > { %421 = vst.msk [vmem:[#allocation2 + $0x158] sm:$0xff] %vm376_vm0, %v1658_v0 }
  0x2a   : > { %423 = vst.msk [vmem:[#allocation2 + $0x168] sm:$0xff] %vm376_vm0, %v1658_v0 }
  0x2b   : > { %424 = vst.msk [vmem:[#allocation2 + $0x170] sm:$0xff] %vm376_vm0, %v1658_v0 }
  0x2c   : > { %426 = vst.msk [vmem:[#allocation2 + $0x180] sm:$0xff] %vm376_vm0, %v1658_v0 }
  0x2d   : > { %427 = vst.msk [vmem:[#allocation2 + $0x188] sm:$0xff] %vm376_vm0, %v1658_v0 }
  0x2e   : > { %961 = vst.msk [vmem:[#allocation3] sm:$0xff] %vm376_vm0, %v1658_v0 }
  0x2f   : > { %962 = vst.msk [vmem:[#allocation3 + $0x8] sm:$0xff] %vm376_vm0, %v1658_v0 }
  0x30   : > { %964 = vst.msk [vmem:[#allocation3 + $0x18] sm:$0xff] %vm376_vm0, %v1658_v0 }
  0x31   : > { %965 = vst.msk [vmem:[#allocation3 + $0x20] sm:$0xff] %vm376_vm0, %v1658_v0 }
  0x32   : > { %967 = vst.msk [vmem:[#allocation3 + $0x30] sm:$0xff] %vm376_vm0, %v1658_v0 }
  0x33   : > { %968 = vst.msk [vmem:[#allocation3 + $0x38] sm:$0xff] %vm376_vm0, %v1658_v0 }
  0x34   : > { %970 = vst.msk [vmem:[#allocation3 + $0x48] sm:$0xff] %vm376_vm0, %v1658_v0 }
  0x35   : > { %971 = vst.msk [vmem:[#allocation3 + $0x50] sm:$0xff] %vm376_vm0, %v1658_v0 }
  0x36   : > { %973 = vst.msk [vmem:[#allocation3 + $0x60] sm:$0xff] %vm376_vm0, %v1658_v0 }
  0x37   : > { %974 = vst.msk [vmem:[#allocation3 + $0x68] sm:$0xff] %vm376_vm0, %v1658_v0 }
  0x38   : > { %976 = vst.msk [vmem:[#allocation3 + $0x78] sm:$0xff] %vm376_vm0, %v1658_v0 }
  0x39   : > { %977 = vst.msk [vmem:[#allocation3 + $0x80] sm:$0xff] %vm376_vm0, %v1658_v0 }
  0x3a   : > { %979 = vst.msk [vmem:[#allocation3 + $0x90] sm:$0xff] %vm376_vm0, %v1658_v0 }
  0x3b   : > { %980 = vst.msk [vmem:[#allocation3 + $0x98] sm:$0xff] %vm376_vm0, %v1658_v0 }
  0x3c   : > { %982 = vst.msk [vmem:[#allocation3 + $0xa8] sm:$0xff] %vm376_vm0, %v1658_v0 }
  0x3d   : > { %983 = vst.msk [vmem:[#allocation3 + $0xb0] sm:$0xff] %vm376_vm0, %v1658_v0 }
  0x3e   : > { %985 = vst.msk [vmem:[#allocation3 + $0xc0] sm:$0xff] %vm376_vm0, %v1658_v0 }
  0x3f   : > { %986 = vst.msk [vmem:[#allocation3 + $0xc8] sm:$0xff] %vm376_vm0, %v1658_v0 }
  0x40   : > { %988 = vst.msk [vmem:[#allocation3 + $0xd8] sm:$0xff] %vm376_vm0, %v1658_v0 }
  0x41   : > { %989 = vst.msk [vmem:[#allocation3 + $0xe0] sm:$0xff] %vm376_vm0, %v1658_v0 }
  0x42   : > { %433 = vst.msk [vmem:[#allocation2 + $0x20] sm:$0xff] %vm376_vm0, %v1853_v3 }
  0x43   : > { %434 = vst.msk [vmem:[#allocation2 + $0x38] sm:$0xff] %vm376_vm0, %v361_v4 }
  0x44   : > { %435 = vst.msk [vmem:[#allocation2 + $0x50] sm:$0xff] %vm376_vm0, %v1861_v5 }
  0x45   : > { %436 = vst.msk [vmem:[#allocation2 + $0x68] sm:$0xff] %vm376_vm0, %v363_v6 }
  0x46   : > { %437 = vst.msk [vmem:[#allocation2 + $0x80] sm:$0xff] %vm376_vm0, %v1870_v7 }
  0x47   : > { %438 = vst.msk [vmem:[#allocation2 + $0x98] sm:$0xff] %vm376_vm0, %v365_v9 }
  0x48   : > { %439 = vst.msk [vmem:[#allocation2 + $0xb0] sm:$0xff] %vm376_vm0, %v1885_v16 }
  0x49   : > { %v465_v8 = vld [vmem:[#allocation2 + $0x1f] sm:$0xff]  ;;  %440 = vst.msk [vmem:[#allocation2 + $0xc8] sm:$0xff] %vm376_vm0, %v367_v17 }
  0x4a   : > { %570 = vrot.lane.b32.xlu1 %v465_v8, %s1661_s21  ;;  %v450_v10 = vld [vmem:[#allocation2 + $0x37] sm:$0xff]  ;;  %v473_v11 = vld [vmem:[#allocation2 + $0x20] sm:$0xff]  ;;  %441 = vst.msk [vmem:[#allocation2 + $0xe0] sm:$0xff] %vm376_vm0, %v1898_v22 }
  0x4b   : > { %508 = vrot.lane.b32.xlu0 %v450_v10, %s1659_s15  ;;  %634 = vrot.lane.b32.xlu2 %v450_v10, %s1662_s22  ;;  %v474_v12 = vld [vmem:[#allocation2 + $0x50] sm:$0xff]  ;;  %v458_v13 = vld [vmem:[#allocation2 + $0x38] sm:$0xff]  ;;  %442 = vst.msk [vmem:[#allocation2 + $0xf8] sm:$0xff] %vm376_vm0, %v369_v23 }
  0x4c   : > { %v466_v14 = vld [vmem:[#allocation2 + $0x4f] sm:$0xff]  ;;  %v483_v15 = vld [vmem:[#allocation2 + $0x67] sm:$0xff]  ;;  %443 = vst.msk [vmem:[#allocation2 + $0x110] sm:$0xff] %vm376_vm0, %v1911_v28 }
  0x4d   : > { %v475_v18 = vld [vmem:[#allocation2 + $0x80] sm:$0xff]  ;;  %v459_v19 = vld [vmem:[#allocation2 + $0x68] sm:$0xff]  ;;  %444 = vst.msk [vmem:[#allocation2 + $0x128] sm:$0xff] %vm376_vm0, %v371_v29 }
  0x4e   : > { %v467_v20 = vld [vmem:[#allocation2 + $0x7f] sm:$0xff]  ;;  %v484_v21 = vld [vmem:[#allocation2 + $0x97] sm:$0xff]  ;;  %445 = vst.msk [vmem:[#allocation2 + $0x140] sm:$0xff] %vm376_vm0, %v1931_v37 }
  0x4f   : > { %v476_v24 = vld [vmem:[#allocation2 + $0xb0] sm:$0xff]  ;;  %v460_v25 = vld [vmem:[#allocation2 + $0x98] sm:$0xff]  ;;  %446 = vst.msk [vmem:[#allocation2 + $0x158] sm:$0xff] %vm376_vm0, %v373_v41 }
  0x50   : > { %v468_v26 = vld [vmem:[#allocation2 + $0xaf] sm:$0xff]  ;;  %v485_v27 = vld [vmem:[#allocation2 + $0xc7] sm:$0xff]  ;;  %447 = vst.msk [vmem:[#allocation2 + $0x170] sm:$0xff] %vm376_vm0, %v1960_v51 }
  0x51   : > { %v477_v30 = vld [vmem:[#allocation2 + $0xe0] sm:$0xff]  ;;  %v461_v31 = vld [vmem:[#allocation2 + $0xc8] sm:$0xff]  ;;  %448 = vst.msk [vmem:[#allocation2 + $0x188] sm:$0xff] %vm376_vm0, %v375_v53 }
  0x52   : > { %602 = vrot.lane.b32.xlu1 %v473_v11, %s1663_s23  ;;  %v469_v32 = vld [vmem:[#allocation2 + $0xdf] sm:$0xff]  ;;  %v486_v33 = vld [vmem:[#allocation2 + $0xf7] sm:$0xff]  ;;  %963 = vst.msk [vmem:[#allocation3 + $0x10] sm:$0x1] %vm379_vm10, %v1658_v0 }
  0x53   : > { %604 = vrot.lane.b32.xlu0 %v474_v12, %s1663_s23  ;;  %666 = vrot.lane.b32.xlu2 %v458_v13, %s1664_s24  ;;  %v478_v34 = vld [vmem:[#allocation2 + $0x110] sm:$0xff]  ;;  %v462_v35 = vld [vmem:[#allocation2 + $0xf8] sm:$0xff]  ;;  %966 = vst.msk [vmem:[#allocation3 + $0x28] sm:$0x1] %vm379_vm10, %v1658_v0 }
  0x54   : > { %v487_v36 = vld [vmem:[#allocation2 + $0x127] sm:$0xff]  ;;  %v470_v38 = vld [vmem:[#allocation2 + $0x10f] sm:$0xff]  ;;  %969 = vst.msk [vmem:[#allocation3 + $0x40] sm:$0x1] %vm379_vm10, %v1658_v0 }
  0x55   : > { %v479_v42 = vld [vmem:[#allocation2 + $0x140] sm:$0xff]  ;;  %v463_v45 = vld [vmem:[#allocation2 + $0x128] sm:$0xff]  ;;  %972 = vst.msk [vmem:[#allocation3 + $0x58] sm:$0x1] %vm379_vm10, %v1658_v0 }
  0x56   : > { %v488_v49 = vld [vmem:[#allocation2 + $0x157] sm:$0xff]  ;;  %v471_v54 = vld [vmem:[#allocation2 + $0x13f] sm:$0xff]  ;;  %975 = vst.msk [vmem:[#allocation3 + $0x70] sm:$0x1] %vm379_vm10, %v1658_v0 }
  0x57   : > { %v464_v55 = vld [vmem:[#allocation2 + $0x158] sm:$0xff]  ;;  %v480_v57 = vld [vmem:[#allocation2 + $0x170] sm:$0xff]  ;;  %978 = vst.msk [vmem:[#allocation3 + $0x88] sm:$0x1] %vm379_vm10, %v1658_v0 }
  0x58   : > { %v489_v61 = vld [vmem:[#allocation2 + $0x187] sm:$0xff]  ;;  %v472_v11 = vld [vmem:[#allocation2 + $0x16f] sm:$0xff]  ;;  %981 = vst.msk [vmem:[#allocation3 + $0xa0] sm:$0x1] %vm379_vm10, %v1658_v0 }
  0x59   : > { %984 = vst.msk [vmem:[#allocation3 + $0xb8] sm:$0x1] %vm379_vm10, %v1658_v0 }
  0x5a   : > { %540 = vrot.lane.b32.xlu1 %v458_v13, %s1660_s16  ;;  %987 = vst.msk [vmem:[#allocation3 + $0xd0] sm:$0x1] %vm379_vm10, %v1658_v0 }
  0x5b   : > { %510 = vrot.lane.b32.xlu0 %v483_v15, %s1659_s15  ;;  %572 = vrot.lane.b32.xlu2 %v466_v14, %s1661_s21  ;;  %990 = vst.msk [vmem:[#allocation3 + $0xe8] sm:$0x1] %vm379_vm10, %v1658_v0 }
  0x62   : > { %636 = vrot.lane.b32.xlu1 %v483_v15, %s1662_s22 }
  0x63   : > { %606 = vrot.lane.b32.xlu0 %v475_v18, %s1663_s23  ;;  %668 = vrot.lane.b32.xlu2 %v459_v19, %s1664_s24 }
  0x6a   : > { %542 = vrot.lane.b32.xlu1 %v459_v19, %s1660_s16 }
  0x6b   : > { %512 = vrot.lane.b32.xlu0 %v484_v21, %s1659_s15  ;;  %574 = vrot.lane.b32.xlu2 %v467_v20, %s1661_s21  ;;  %v497_v20 = vld [vmem:[#allocation2 + $0x188] sm:$0xff] }
  0x72   : > { %638 = vrot.lane.b32.xlu1 %v484_v21, %s1662_s22 }
  0x73   : > { %608 = vrot.lane.b32.xlu0 %v476_v24, %s1663_s23  ;;  %670 = vrot.lane.b32.xlu2 %v460_v25, %s1664_s24 }
  0x7a   : > { %544 = vrot.lane.b32.xlu1 %v460_v25, %s1660_s16 }
  0x7b   : > { %514 = vrot.lane.b32.xlu0 %v485_v27, %s1659_s15  ;;  %576 = vrot.lane.b32.xlu2 %v468_v26, %s1661_s21 }
  0x82   : > { %640 = vrot.lane.b32.xlu1 %v485_v27, %s1662_s22 }
  0x83   : > { %610 = vrot.lane.b32.xlu0 %v477_v30, %s1663_s23  ;;  %672 = vrot.lane.b32.xlu2 %v461_v31, %s1664_s24 }
  0x87   : > { %v507_v48 = vpop.permute.xlu0 %506 }
  0x8a   : > { %546 = vrot.lane.b32.xlu1 %v461_v31, %s1660_s16 }
  0x8b   : > { %516 = vrot.lane.b32.xlu0 %v486_v33, %s1659_s15  ;;  %578 = vrot.lane.b32.xlu2 %v469_v32, %s1661_s21 }
  0x8f   : > { %v539_v52 = vpop.permute.xlu0 %538 }
  0x90   : > { %v691_v60 = vsel %vm690_vm2, %v507_v48, %v539_v52 }
  0x91   : > { %v699_v62 = vsel %vm376_vm0, %v691_v60, %v539_v52 }
  0x92   : > { %642 = vrot.lane.b32.xlu1 %v486_v33, %s1662_s22 }
  0x93   : > { %612 = vrot.lane.b32.xlu0 %v478_v34, %s1663_s23  ;;  %674 = vrot.lane.b32.xlu2 %v462_v35, %s1664_s24 }
  0x9a   : > { %548 = vrot.lane.b32.xlu1 %v462_v35, %s1660_s16 }
  0x9b   : > { %518 = vrot.lane.b32.xlu0 %v487_v36, %s1659_s15  ;;  %580 = vrot.lane.b32.xlu2 %v470_v38, %s1661_s21 }
  0xa2   : > { %644 = vrot.lane.b32.xlu1 %v487_v36, %s1662_s22 }
  0xa3   : > { %614 = vrot.lane.b32.xlu0 %v479_v42, %s1663_s23  ;;  %676 = vrot.lane.b32.xlu2 %v463_v45, %s1664_s24 }
  0xa5   : > { %v635_v44 = vpop.permute.xlu2 %634 }
  0xaa   : > { %550 = vrot.lane.b32.xlu1 %v463_v45, %s1660_s16 }
  0xab   : > { %520 = vrot.lane.b32.xlu0 %v488_v49, %s1659_s15  ;;  %582 = vrot.lane.b32.xlu2 %v471_v54, %s1661_s21  ;;  %s1665_s15 = smov 48  }
  0xad   : > { %v667_v50 = vpop.permute.xlu2 %666 }
  0xb2   : > { %646 = vrot.lane.b32.xlu1 %v488_v49, %s1662_s22 }
  0xb3   : > { %616 = vrot.lane.b32.xlu0 %v480_v57, %s1663_s23  ;;  %678 = vrot.lane.b32.xlu2 %v464_v55, %s1664_s24 }
  0xb5   : > { %v573_v56 = vpop.permute.xlu2 %572 }
  0xba   : > { %552 = vrot.lane.b32.xlu1 %v464_v55, %s1660_s16 }
  0xbb   : > { %584 = vrot.lane.b32.xlu2 %v472_v11, %s1661_s21 }
  0xbc   : > { %v571_v58 = vpop.permute.xlu1 %570 }
  0xbd   : > { %v509_v59 = vpop.permute.xlu0 %508  ;;  %v669_v63 = vpop.permute.xlu2 %668  ;;  %v708_v1 = vsel %vm707_vm3, %v699_v62, %v571_v58 }
  0xc2   : > { %648 = vrot.lane.b32.xlu1 %v489_v61, %s1662_s22 }
  0xc3   : > { %680 = vrot.lane.b32.xlu2 %v497_v20, %s1664_s24  ;;  %s1666_s24 = smov 40  }
  0xc4   : > { %v603_v2 = vpop.permute.xlu1 %602 }
  0xc5   : > { %v717_v4 = vsel %vm716_vm4, %v708_v1, %v603_v2  ;;  %v605_v6 = vpop.permute.xlu0 %604  ;;  %v575_v17 = vpop.permute.xlu2 %574 }
  0xc6   : > { %v726_v8 = vsel %vm725_vm5, %v717_v4, %v603_v2 }
  0xc7   : > { %v735_v9 = vsel %vm734_vm6, %v726_v8, %v635_v44 }
  0xc8   : > { %v744_v10 = vsel %vm743_vm7, %v735_v9, %v667_v50 }
  0xc9   : > { %v753_v12 = vsel %vm752_vm8, %v744_v10, %v667_v50 }
  0xca   : > { %1585 = vmatmul.msk.f32.vlgmr.msra.gmra.mxu0 %vm766_vm9, %v753_v12  ;;  %v1008_v12 = vld [vmem:[#allocation3 + $0x8] sm:$0xff] }
  0xcb   : > { %1081 = vrot.lane.b32.xlu0 %v1008_v12, %s1661_s21 }
  0xcc   : > { %v541_v13 = vpop.permute.xlu1 %540 }
  0xcd   : > { %v692_v14 = vsel %vm690_vm2, %v509_v59, %v541_v13  ;;  %v511_v15 = vpop.permute.xlu0 %510  ;;  %v671_v30 = vpop.permute.xlu2 %670 }
  0xce   : > { %v700_v18 = vsel %vm376_vm0, %v692_v14, %v541_v13 }
  0xcf   : > { %v709_v19 = vsel %vm707_vm3, %v700_v18, %v573_v56 }
  0xd0   : > { %v718_v21 = vsel %vm716_vm4, %v709_v19, %v605_v6 }
  0xd1   : > { %v727_v23 = vsel %vm725_vm5, %v718_v21, %v605_v6 }
  0xd4   : > { %v637_v24 = vpop.permute.xlu1 %636 }
  0xd5   : > { %v736_v25 = vsel %vm734_vm6, %v727_v23, %v637_v24  ;;  %v607_v26 = vpop.permute.xlu0 %606  ;;  %v577_v36 = vpop.permute.xlu2 %576 }
  0xd6   : > { %v745_v27 = vsel %vm743_vm7, %v736_v25, %v669_v63 }
  0xd7   : > { %v754_v29 = vsel %vm752_vm8, %v745_v27, %v669_v63 }
  0xd8   : > { %1586 = vmatmul.msk.f32.gmra.mxu0 %vm766_vm9, %v754_v29 }
  0xdc   : > { %v543_v31 = vpop.permute.xlu1 %542 }
  0xdd   : > { %v693_v32 = vsel %vm690_vm2, %v511_v15, %v543_v31  ;;  %v513_v33 = vpop.permute.xlu0 %512  ;;  %v673_v45 = vpop.permute.xlu2 %672 }
  0xde   : > { %v701_v34 = vsel %vm376_vm0, %v693_v32, %v543_v31 }
  0xdf   : > { %v710_v35 = vsel %vm707_vm3, %v701_v34, %v575_v17 }
  0xe0   : > { %v719_v38 = vsel %vm716_vm4, %v710_v35, %v607_v26 }
  0xe1   : > { %v728_v39 = vsel %vm725_vm5, %v719_v38, %v607_v26 }
  0xe4   : > { %v639_v40 = vpop.permute.xlu1 %638 }
  0xe5   : > { %v737_v41 = vsel %vm734_vm6, %v728_v39, %v639_v40  ;;  %v609_v42 = vpop.permute.xlu0 %608  ;;  %v579_v54 = vpop.permute.xlu2 %578  ;;  %v1016_v40 = vld [vmem:[#allocation3 + $0x9] sm:$0xff] }
  0xe6   : > { %v746_v43 = vsel %vm743_vm7, %v737_v41, %v671_v30  ;;  %1113 = vrot.lane.b32.xlu1 %v1016_v40, %s1663_s23 }
  0xe7   : > { %v755_v44 = vsel %vm752_vm8, %v746_v43, %v671_v30 }
  0xe8   : > { %1587 = vmatmul.msk.f32.gmra.mxu0 %vm766_vm9, %v755_v44 }
  0xec   : > { %v545_v46 = vpop.permute.xlu1 %544 }
  0xed   : > { %v694_v47 = vsel %vm690_vm2, %v513_v33, %v545_v46  ;;  %v515_v48 = vpop.permute.xlu0 %514  ;;  %v675_v62 = vpop.permute.xlu2 %674 }
  0xee   : > { %v702_v49 = vsel %vm376_vm0, %v694_v47, %v545_v46 }
  0xef   : > { %v711_v50 = vsel %vm707_vm3, %v702_v49, %v577_v36 }
  0xf0   : > { %v720_v52 = vsel %vm716_vm4, %v711_v50, %v609_v42  ;;  %v1056_v50 = vld [vmem:[#allocation3 + $0xdf] sm:$0xff] }
  0xf1   : > { %v729_v53 = vsel %vm725_vm5, %v720_v52, %v609_v42  ;;  %1255 = vrot.lane.b32.xlu2 %v1056_v50, %s1665_s15  ;;  %v1404_v50 = vld [vmem:[%s2407_s4 + $0x38] sm:$0xff] }
  0xf4   : > { %v641_v55 = vpop.permute.xlu1 %640 }
  0xf5   : > { %v738_v56 = vsel %vm734_vm6, %v729_v53, %v641_v55  ;;  %v611_v59 = vpop.permute.xlu0 %610  ;;  %v581_v10 = vpop.permute.xlu2 %580 }
  0xf6   : > { %v747_v57 = vsel %vm743_vm7, %v738_v56, %v673_v45 }
  0xf7   : > { %v756_v58 = vsel %vm752_vm8, %v747_v57, %v673_v45 }
  0xf8   : > { %1588 = vmatmul.msk.f32.gmra.mxu0 %vm766_vm9, %v756_v58 }
  0xfc   : > { %v547_v60 = vpop.permute.xlu1 %546 }
  0xfd   : > { %v695_v61 = vsel %vm690_vm2, %v515_v48, %v547_v60  ;;  %v517_v2 = vpop.permute.xlu0 %516  ;;  %v677_v20 = vpop.permute.xlu2 %676 }
  0xfe   : > { %v703_v63 = vsel %vm376_vm0, %v695_v61, %v547_v60  ;;  %v2072_v60 = vld [vmem:[%s2405_s2] ss:$0 sm:$0xff] }
  0xff   : > { %v712_v1 = vsel %vm707_vm3, %v703_v63, %v579_v54  ;;  %v2077_v61 = vld [vmem:[%s2406_s3] ss:$0 sm:$0xff] }
 0x100   : > { %v721_v4 = vsel %vm716_vm4, %v712_v1, %v611_v59 }
 0x101   : > { %v730_v6 = vsel %vm725_vm5, %v721_v4, %v611_v59 }
 0x104   : > { %v643_v8 = vpop.permute.xlu1 %642 }
 0x105   : > { %v739_v9 = vsel %vm734_vm6, %v730_v6, %v643_v8  ;;  %v613_v14 = vpop.permute.xlu0 %612  ;;  %v583_v30 = vpop.permute.xlu2 %582 }
 0x106   : > { %v748_v11 = vsel %vm743_vm7, %v739_v9, %v675_v62 }
 0x107   : > { %v757_v13 = vsel %vm752_vm8, %v748_v11, %v675_v62 }
 0x108   : > { %1589 = vmatmul.msk.f32.gmra.mxu0 %vm766_vm9, %v757_v13 }
 0x10c   : > { %v549_v15 = vpop.permute.xlu1 %548 }
 0x10d   : > { %v696_v17 = vsel %vm690_vm2, %v517_v2, %v549_v15  ;;  %v519_v23 = vpop.permute.xlu0 %518  ;;  %v679_v38 = vpop.permute.xlu2 %678 }
 0x10e   : > { %v704_v18 = vsel %vm376_vm0, %v696_v17, %v549_v15 }
 0x10f   : > { %v713_v19 = vsel %vm707_vm3, %v704_v18, %v581_v10 }
 0x110   : > { %v722_v21 = vsel %vm716_vm4, %v713_v19, %v613_v14 }
 0x111   : > { %v731_v24 = vsel %vm725_vm5, %v722_v21, %v613_v14 }
 0x114   : > { %v645_v25 = vpop.permute.xlu1 %644 }
 0x115   : > { %v740_v26 = vsel %vm734_vm6, %v731_v24, %v645_v25  ;;  %v615_v31 = vpop.permute.xlu0 %614  ;;  %v585_v46 = vpop.permute.xlu2 %584 }
 0x116   : > { %v749_v27 = vsel %vm743_vm7, %v740_v26, %v677_v20 }
 0x117   : > { %v758_v29 = vsel %vm752_vm8, %v749_v27, %v677_v20 }
 0x118   : > { %1590 = vmatmul.msk.f32.gmra.mxu0 %vm766_vm9, %v758_v29 }
 0x11c   : > { %v551_v32 = vpop.permute.xlu1 %550 }
 0x11d   : > { %v697_v33 = vsel %vm690_vm2, %v519_v23, %v551_v32  ;;  %v521_v41 = vpop.permute.xlu0 %520  ;;  %v681_v55 = vpop.permute.xlu2 %680 }
 0x11e   : > { %v705_v34 = vsel %vm376_vm0, %v697_v33, %v551_v32 }
 0x11f   : > { %v714_v35 = vsel %vm707_vm3, %v705_v34, %v583_v30 }
 0x120   : > { %v723_v36 = vsel %vm716_vm4, %v714_v35, %v615_v31 }
 0x121   : > { %v732_v39 = vsel %vm725_vm5, %v723_v36, %v615_v31 }
 0x124   : > { %v647_v42 = vpop.permute.xlu1 %646 }
 0x125   : > { %v741_v43 = vsel %vm734_vm6, %v732_v39, %v647_v42  ;;  %v617_v49 = vpop.permute.xlu0 %616 }
 0x126   : > { %v750_v44 = vsel %vm743_vm7, %v741_v43, %v679_v38 }
 0x127   : > { %v759_v45 = vsel %vm752_vm8, %v750_v44, %v679_v38 }
 0x128   : > { %1591 = vmatmul.msk.f32.gmra.mxu0 %vm766_vm9, %v759_v45 }
 0x12c   : > { %v553_v47 = vpop.permute.xlu1 %552 }
 0x12d   : > { %v698_v48 = vsel %vm690_vm2, %v521_v41, %v553_v47 }
 0x12e   : > { %v706_v52 = vsel %vm376_vm0, %v698_v48, %v553_v47 }
 0x12f   : > { %v715_v0 = vsel %vm707_vm3, %v706_v52, %v585_v46 }
 0x130   : > { %v724_v53 = vsel %vm716_vm4, %v715_v0, %v617_v49  ;;  %v1403_v0 = vld [vmem:[%s2407_s4 + $0x30] sm:$0xff] }
 0x131   : > { %v733_v54 = vsel %vm725_vm5, %v724_v53, %v617_v49  ;;  %v1405_v49 = vld [vmem:[%s2407_s4 + $0x40] sm:$0xff]  ;;  %v1402_v53 = vld [vmem:[%s2407_s4 + $0x28] sm:$0xff] }
 0x132   : > { %1438 = vmatpush.msra.mxu2 %v1405_v49  ;;  %1614 = vmatpush.msra.mxu3 %v1405_v49 }
 0x134   : > { %v649_v56 = vpop.permute.xlu1 %648  ;;  %1439 = vmatpush.msra.mxu2 %v1404_v50  ;;  %1615 = vmatpush.msra.mxu3 %v1404_v50 }
 0x135   : > { %v742_v57 = vsel %vm734_vm6, %v733_v54, %v649_v56  ;;  %v1400_v56 = vld [vmem:[%s2407_s4 + $0x18] sm:$0xff] }
 0x136   : > { %v751_v58 = vsel %vm743_vm7, %v742_v57, %v681_v55  ;;  %1440 = vmatpush.msra.mxu2 %v1403_v0  ;;  %1616 = vmatpush.msra.mxu3 %v1403_v0  ;;  %v1399_v57 = vld [vmem:[%s2407_s4 + $0x10] sm:$0xff] }
 0x137   : > { %v760_v59 = vsel %vm752_vm8, %v751_v58, %v681_v55  ;;  %v1401_v55 = vld [vmem:[%s2407_s4 + $0x20] sm:$0xff] }
 0x138   : > { %1592 = vmatmul.msk.f32.gmra.mxu0 %vm766_vm9, %v760_v59  ;;  %1441 = vmatpush.msra.mxu2 %v1402_v53 }
 0x139   : > { %1617 = vmatpush.msra.mxu3 %v1402_v53 }
 0x13a   : > { %1442 = vmatpush.msra.mxu2 %v1401_v55 }
 0x13b   : > { %1618 = vmatpush.msra.mxu3 %v1401_v55 }
 0x13c   : > { %1443 = vmatpush.msra.mxu2 %v1400_v56 }
 0x13d   : > { %1619 = vmatpush.msra.mxu3 %v1400_v56  ;;  %v1072_v56 = vld [vmem:[#allocation3 + $0xe1] sm:$0xff] }
 0x13e   : > { %1444 = vmatpush.msra.mxu2 %v1399_v57 }
 0x13f   : > { %1620 = vmatpush.msra.mxu3 %v1399_v57 }
 0x147   : > { %v812_v62 = vpop.f32.mrf.mxu0 }
 0x148   : > { %v840_v63 = vmul.f32 %v2072_v60, %v812_v62 }
 0x14a   : > { %v852_v1 = vadd.f32 %v2077_v61, %v840_v63  ;;  %v1398_v63 = vld [vmem:[%s2407_s4 + $0x8] sm:$0xff] }
 0x14b   : > { %v2149_v46 = vpop.permute.xlu2 %1255  ;;  %1445 = vmatpush.msra.mxu2 %v1398_v63  ;;  %1621 = vmatpush.msra.mxu3 %v1398_v63 }
 0x14c   : > { %v860_v2 = vmax.f32 %v852_v1, 0.0 }
 0x14e   : > { %992 = vst.msk [vmem:[#allocation3 + $0x20] sm:$0xff] %vm376_vm0, %v860_v2 }
 0x155   : > { %v815_v4 = vpop.f32.mrf.mxu0  ;;  %v1040_v6 = vld [vmem:[#allocation3 + $0x21] sm:$0xff] }
 0x156   : > { %v1032_v8 = vld [vmem:[#allocation3 + $0x20] sm:$0xff]  ;;  %v841_v10 = vmul.f32 %v2072_v60, %v815_v4  ;;  %1209 = vrot.lane.b32.xlu1 %v1040_v6, %s1666_s24  ;;  %v1397_v4 = vld [vmem:[%s2407_s4] sm:$0xff] }
 0x157   : > { %v2082_v9 = vld [vmem:[#allocation3 + $0x1f] sm:$0xff]  ;;  %1177 = vrot.lane.b32.xlu0 %v1032_v8, %s1667_s25  ;;  %1446 = vmatpush.msra.mxu2 %v1397_v4 }
 0x158   : > { %1145 = vrot.lane.b32.xlu2 %v2082_v9, %s1668_s26  ;;  %v853_v11 = vadd.f32 %v2077_v61, %v841_v10  ;;  %1622 = vmatpush.msra.mxu3 %v1397_v4  ;;  %v1082_v10 = vpop.permute.xlu0 %1081 }
 0x15a   : > { %v861_v12 = vmax.f32 %v853_v11, 0.0 }
 0x15c   : > { %993 = vst.msk [vmem:[#allocation3 + $0x38] sm:$0xff] %vm376_vm0, %v861_v12  ;;  %v1114_v12 = vpop.permute.xlu1 %1113 }
 0x15f   : > { %1115 = vrot.lane.b32.xlu0 %v1040_v6, %s1663_s23 }
 0x160   : > { %1083 = vrot.lane.b32.xlu2 %v1032_v8, %s1661_s21 }
 0x163   : > { %v1065_v13 = vld [vmem:[#allocation3 + $0x39] sm:$0xff] }
 0x164   : > { %1305 = vrot.lane.b32.xlu1 %v1065_v13, %s1669_s27  ;;  %v1057_v15 = vld [vmem:[#allocation3 + $0x38] sm:$0xff] }
 0x165   : > { %v818_v14 = vpop.f32.mrf.mxu0  ;;  %v2096_v18 = vld [vmem:[#allocation3 + $0x37] sm:$0xff] }
 0x166   : > { %v842_v17 = vmul.f32 %v2072_v60, %v818_v14 }
 0x167   : > { %1273 = vrot.lane.b32.xlu0 %v1057_v15, %s1670_s28 }
 0x168   : > { %1241 = vrot.lane.b32.xlu2 %v2096_v18, %s1665_s15  ;;  %v854_v19 = vadd.f32 %v2077_v61, %v842_v17 }
 0x16a   : > { %v862_v20 = vmax.f32 %v854_v19, 0.0 }
 0x16c   : > { %994 = vst.msk [vmem:[#allocation3 + $0x50] sm:$0xff] %vm376_vm0, %v862_v20  ;;  %1147 = vrot.lane.b32.xlu1 %v2096_v18, %s1668_s26 }
 0x16f   : > { %1211 = vrot.lane.b32.xlu0 %v1065_v13, %s1666_s24 }
 0x170   : > { %1179 = vrot.lane.b32.xlu2 %v1057_v15, %s1667_s25 }
 0x173   : > { %v1066_v21 = vld [vmem:[#allocation3 + $0x51] sm:$0xff] }
 0x174   : > { %1085 = vrot.lane.b32.xlu1 %v1057_v15, %s1661_s21  ;;  %v2111_v27 = vld [vmem:[#allocation3 + $0x4f] sm:$0xff] }
 0x175   : > { %v821_v23 = vpop.f32.mrf.mxu0  ;;  %v1058_v29 = vld [vmem:[#allocation3 + $0x50] sm:$0xff] }
 0x176   : > { %v843_v24 = vmul.f32 %v2072_v60, %v821_v23 }
 0x177   : > { %1307 = vrot.lane.b32.xlu0 %v1066_v21, %s1669_s27 }
 0x178   : > { %1117 = vrot.lane.b32.xlu2 %v1065_v13, %s1663_s23  ;;  %v855_v25 = vadd.f32 %v2077_v61, %v843_v24  ;;  %v1000_v13 = vld [vmem:[#allocation3 + $0x7] sm:$0xff] }
 0x179   : > { %v1329_v17 = vsel %vm376_vm0, %v1000_v13, %v1082_v10 }
 0x17a   : > { %v863_v26 = vmax.f32 %v855_v25, 0.0  ;;  %v1337_v20 = vsel %vm716_vm4, %v1329_v17, %v1114_v12 }
 0x17c   : > { %995 = vst.msk [vmem:[#allocation3 + $0x68] sm:$0xff] %vm376_vm0, %v863_v26  ;;  %1243 = vrot.lane.b32.xlu1 %v2111_v27, %s1665_s15 }
 0x17f   : > { %1149 = vrot.lane.b32.xlu0 %v2111_v27, %s1668_s26 }
 0x180   : > { %1275 = vrot.lane.b32.xlu2 %v1058_v29, %s1670_s28 }
 0x183   : > { %v2126_v34 = vld [vmem:[#allocation3 + $0x67] sm:$0xff] }
 0x184   : > { %1181 = vrot.lane.b32.xlu1 %v1058_v29, %s1667_s25  ;;  %v1067_v35 = vld [vmem:[#allocation3 + $0x69] sm:$0xff] }
 0x185   : > { %v824_v30 = vpop.f32.mrf.mxu0  ;;  %v1059_v36 = vld [vmem:[#allocation3 + $0x68] sm:$0xff] }
 0x186   : > { %v844_v31 = vmul.f32 %v2072_v60, %v824_v30 }
 0x187   : > { %1087 = vrot.lane.b32.xlu0 %v1058_v29, %s1661_s21 }
 0x188   : > { %1213 = vrot.lane.b32.xlu2 %v1066_v21, %s1666_s24  ;;  %v856_v32 = vadd.f32 %v2077_v61, %v844_v31 }
 0x18a   : > { %v864_v33 = vmax.f32 %v856_v32, 0.0 }
 0x18c   : > { %996 = vst.msk [vmem:[#allocation3 + $0x80] sm:$0xff] %vm376_vm0, %v864_v33  ;;  %1119 = vrot.lane.b32.xlu1 %v1066_v21, %s1663_s23 }
 0x18f   : > { %1245 = vrot.lane.b32.xlu0 %v2126_v34, %s1665_s15 }
 0x190   : > { %1309 = vrot.lane.b32.xlu2 %v1067_v35, %s1669_s27 }
 0x193   : > { %v1060_v42 = vld [vmem:[#allocation3 + $0x80] sm:$0xff] }
 0x194   : > { %1277 = vrot.lane.b32.xlu1 %v1059_v36, %s1670_s28  ;;  %v2142_v43 = vld [vmem:[#allocation3 + $0x7f] sm:$0xff] }
 0x195   : > { %v827_v38 = vpop.f32.mrf.mxu0  ;;  %v1068_v52 = vld [vmem:[#allocation3 + $0x81] sm:$0xff] }
 0x196   : > { %v845_v39 = vmul.f32 %v2072_v60, %v827_v38 }
 0x197   : > { %1183 = vrot.lane.b32.xlu0 %v1059_v36, %s1667_s25 }
 0x198   : > { %1151 = vrot.lane.b32.xlu2 %v2126_v34, %s1668_s26  ;;  %v857_v40 = vadd.f32 %v2077_v61, %v845_v39 }
 0x19a   : > { %v865_v41 = vmax.f32 %v857_v40, 0.0 }
 0x19c   : > { %1215 = vrot.lane.b32.xlu1 %v1067_v35, %s1666_s24  ;;  %997 = vst.msk [vmem:[#allocation3 + $0x98] sm:$0xff] %vm376_vm0, %v865_v41 }
 0x19f   : > { %1279 = vrot.lane.b32.xlu0 %v1060_v42, %s1670_s28 }
 0x1a0   : > { %1089 = vrot.lane.b32.xlu2 %v1059_v36, %s1661_s21 }
 0x1a3   : > { %v1014_v58 = vld [vmem:[#allocation3 + $0x98] sm:$0xff] }
 0x1a4   : > { %1121 = vrot.lane.b32.xlu1 %v1067_v35, %s1663_s23  ;;  %v2192_v8 = vld [vmem:[#allocation3 + $0x97] sm:$0xff] }
 0x1a5   : > { %v830_v44 = vpop.f32.mrf.mxu0 }
 0x1a6   : > { %v846_v45 = vmul.f32 %v2072_v60, %v830_v44 }
 0x1a7   : > { %1153 = vrot.lane.b32.xlu0 %v2142_v43, %s1668_s26 }
 0x1a8   : > { %1247 = vrot.lane.b32.xlu2 %v2142_v43, %s1665_s15  ;;  %v858_v47 = vadd.f32 %v2077_v61, %v846_v45 }
 0x1aa   : > { %v866_v48 = vmax.f32 %v858_v47, 0.0 }
 0x1ac   : > { %1311 = vrot.lane.b32.xlu1 %v1068_v52, %s1669_s27  ;;  %998 = vst.msk [vmem:[#allocation3 + $0xb0] sm:$0xff] %vm376_vm0, %v866_v48 }
 0x1af   : > { %1091 = vrot.lane.b32.xlu0 %v1060_v42, %s1661_s21 }
 0x1b0   : > { %1185 = vrot.lane.b32.xlu2 %v1060_v42, %s1667_s25 }
 0x1b2   : > { %v1146_v54 = vpop.permute.xlu2 %1145 }
 0x1b3   : > { %v2210_v19 = vld [vmem:[#allocation3 + $0xaf] sm:$0xff]  ;;  %v1345_v24 = vsel %vm734_vm6, %v1337_v20, %v1146_v54 }
 0x1b4   : > { %1217 = vrot.lane.b32.xlu1 %v1068_v52, %s1666_s24  ;;  %v1046_v29 = vld [vmem:[#allocation3 + $0xb1] sm:$0xff] }
 0x1b5   : > { %v833_v59 = vpop.f32.mrf.mxu0 }
 0x1b6   : > { %v847_v62 = vmul.f32 %v2072_v60, %v833_v59  ;;  %v1069_v60 = vld [vmem:[#allocation3 + $0x99] sm:$0xff] }
 0x1b7   : > { %1093 = vrot.lane.b32.xlu0 %v1014_v58, %s1661_s21 }
 0x1b8   : > { %1123 = vrot.lane.b32.xlu2 %v1068_v52, %s1663_s23  ;;  %v859_v1 = vadd.f32 %v2077_v61, %v847_v62  ;;  %v868_v61 = vld [vmem:[%s2410_s7] sm:$0xf] }
 0x1b9   : > { %1593 = vmatpush.msk.msra.mxu1 %vm791_vm1, %v868_v61 }
 0x1ba   : > { %v2185_v2 = vpop.permute.xlu2 %1083  ;;  %v867_v6 = vmax.f32 %v859_v1, 0.0  ;;  %1594 = vmatmul.msk.f32.vlgmr.msra.gmra.mxu1 %vm690_vm2, %v1853_v3  ;;  %v1038_v3 = vld [vmem:[#allocation3 + $0xb0] sm:$0xff] }
 0x1bb   : > { %v1330_v42 = vsel %vm376_vm0, %v2082_v9, %v2185_v2 }
 0x1bc   : > { %1313 = vrot.lane.b32.xlu1 %v1069_v60, %s1669_s27  ;;  %999 = vst.msk [vmem:[#allocation3 + $0xc8] sm:$0xff] %vm376_vm0, %v867_v6 }
 0x1bf   : > { %1249 = vrot.lane.b32.xlu0 %v2192_v8, %s1665_s15 }
 0x1c0   : > { %1125 = vrot.lane.b32.xlu2 %v1069_v60, %s1663_s23 }
 0x1c2   : > { %v1242_v11 = vpop.permute.xlu2 %1241  ;;  %1595 = vmatmul.msk.f32.gmra.mxu1 %vm690_vm2, %v1861_v5 }
 0x1c3   : > { %v1071_v36 = vld [vmem:[#allocation3 + $0xc9] sm:$0xff] }
 0x1c4   : > { %1155 = vrot.lane.b32.xlu1 %v2192_v8, %s1668_s26  ;;  %v1055_v41 = vld [vmem:[#allocation3 + $0xc7] sm:$0xff] }
 0x1c7   : > { %1187 = vrot.lane.b32.xlu0 %v1014_v58, %s1667_s25 }
 0x1c8   : > { %1281 = vrot.lane.b32.xlu2 %v1014_v58, %s1670_s28  ;;  %v1210_v21 = vpop.permute.xlu1 %1209 }
 0x1c9   : > { %v1178_v14 = vpop.permute.xlu0 %1177 }
 0x1ca   : > { %v1180_v15 = vpop.permute.xlu2 %1179  ;;  %1596 = vmatmul.msk.f32.gmra.mxu1 %vm690_vm2, %v1870_v7  ;;  %v1353_v5 = vsel %vm752_vm8, %v1345_v24, %v1178_v14 }
 0x1cb   : > { %v1362_v26 = vsel %vm1361_vm11, %v1353_v5, %v1210_v21 }
 0x1cc   : > { %1157 = vrot.lane.b32.xlu1 %v2210_v19, %s1668_s26  ;;  %v1371_v32 = vsel %vm1370_vm12, %v1362_v26, %v1242_v11 }
 0x1cf   : > { %1189 = vrot.lane.b32.xlu0 %v1038_v3, %s1667_s25 }
 0x1d0   : > { %1219 = vrot.lane.b32.xlu2 %v1069_v60, %s1666_s24 }
 0x1d1   : > { %v1116_v23 = vpop.permute.xlu0 %1115 }
 0x1d2   : > { %v2218_v25 = vpop.permute.xlu2 %1117  ;;  %1597 = vmatmul.msk.f32.gmra.mxu1 %vm690_vm2, %v1885_v16  ;;  %v1063_v16 = vld [vmem:[#allocation3 + $0xc8] sm:$0xff]  ;;  %v1338_v45 = vsel %vm716_vm4, %v1330_v42, %v1116_v23 }
 0x1d4   : > { %1095 = vrot.lane.b32.xlu1 %v1038_v3, %s1661_s21 }
 0x1d6   : > { %v1306_v30 = vpop.permute.xlu1 %1305 }
 0x1d7   : > { %1127 = vrot.lane.b32.xlu0 %v1046_v29, %s1663_s23 }
 0x1d8   : > { %1221 = vrot.lane.b32.xlu2 %v1046_v29, %s1666_s24 }
 0x1d9   : > { %v1274_v31 = vpop.permute.xlu0 %1273 }
 0x1da   : > { %v1380_v7 = vsel %vm1379_vm13, %v1371_v32, %v1274_v31  ;;  %v1276_v33 = vpop.permute.xlu2 %1275  ;;  %1598 = vmatmul.msk.f32.gmra.mxu1 %vm690_vm2, %v1898_v22 }
 0x1db   : > { %v1389_v35 = vsel %vm1388_vm14, %v1380_v7, %v1306_v30 }
 0x1dc   : > { %1602 = vmatmul.msk.f32.vlgmr.msra.gmra.mxu2 %vm1406_vm15, %v1389_v35  ;;  %1251 = vrot.lane.b32.xlu1 %v2210_v19, %s1665_s15 }
 0x1de   : > { %v1148_v38 = vpop.permute.xlu1 %1147 }
 0x1df   : > { %1283 = vrot.lane.b32.xlu0 %v1038_v3, %s1670_s28  ;;  %v1346_v47 = vsel %vm734_vm6, %v1338_v45, %v1148_v38 }
 0x1e0   : > { %1317 = vrot.lane.b32.xlu2 %v1071_v36, %s1669_s27  ;;  %v1354_v22 = vsel %vm752_vm8, %v1346_v47, %v1180_v15 }
 0x1e1   : > { %v1212_v39 = vpop.permute.xlu0 %1211 }
 0x1e2   : > { %v1214_v40 = vpop.permute.xlu2 %1213  ;;  %1599 = vmatmul.msk.f32.gmra.mxu1 %vm690_vm2, %v1911_v28  ;;  %v1363_v9 = vsel %vm1361_vm11, %v1354_v22, %v1212_v39  ;;  %v1064_v28 = vld [vmem:[#allocation3 + $0xe0] sm:$0xff] }
 0x1e4   : > { %1253 = vrot.lane.b32.xlu1 %v1055_v41, %s1665_s15 }
 0x1e6   : > { %v1086_v44 = vpop.permute.xlu1 %1085 }
 0x1e7   : > { %1285 = vrot.lane.b32.xlu0 %v1063_v16, %s1670_s28  ;;  %v1331_v62 = vsel %vm376_vm0, %v2096_v18, %v1086_v44 }
 0x1e8   : > { %1159 = vrot.lane.b32.xlu2 %v1055_v41, %s1668_s26 }
 0x1e9   : > { %v1308_v48 = vpop.permute.xlu0 %1307 }
 0x1ea   : > { %v1310_v49 = vpop.permute.xlu2 %1309  ;;  %1600 = vmatmul.msk.f32.gmra.mxu1 %vm690_vm2, %v1931_v37  ;;  %v1339_v37 = vsel %vm716_vm4, %v1331_v62, %v2218_v25 }
 0x1ec   : > { %1191 = vrot.lane.b32.xlu1 %v1063_v16, %s1667_s25 }
 0x1ee   : > { %v1244_v50 = vpop.permute.xlu1 %1243 }
 0x1ef   : > { %1223 = vrot.lane.b32.xlu0 %v1071_v36, %s1666_s24  ;;  %v1372_v52 = vsel %vm1370_vm12, %v1363_v9, %v1244_v50 }
 0x1f0   : > { %1315 = vrot.lane.b32.xlu2 %v1046_v29, %s1669_s27  ;;  %v1381_v53 = vsel %vm1379_vm13, %v1372_v52, %v1276_v33 }
 0x1f1   : > { %v1150_v0 = vpop.permute.xlu0 %1149  ;;  %v1390_v55 = vsel %vm1388_vm14, %v1381_v53, %v1308_v48 }
 0x1f2   : > { %v1152_v54 = vpop.permute.xlu2 %1151  ;;  %1603 = vmatmul.msk.f32.gmra.mxu2 %vm1406_vm15, %v1390_v55  ;;  %1601 = vmatmul.msk.f32.gmra.mxu1 %vm690_vm2, %v1960_v51  ;;  %v1347_v2 = vsel %vm734_vm6, %v1339_v37, %v1150_v0 }
 0x1f4   : > { %1287 = vrot.lane.b32.xlu1 %v1064_v28, %s1670_s28 }
 0x1f6   : > { %v1182_v57 = vpop.permute.xlu1 %1181 }
 0x1f7   : > { %1319 = vrot.lane.b32.xlu0 %v1072_v56, %s1669_s27  ;;  %v1355_v6 = vsel %vm752_vm8, %v1347_v2, %v1182_v57 }
 0x1f8   : > { %v1364_v60 = vsel %vm1361_vm11, %v1355_v6, %v1214_v40 }
 0x1f9   : > { %v1088_v58 = vpop.permute.xlu0 %1087 }
 0x1fa   : > { %v1090_v59 = vpop.permute.xlu2 %1089  ;;  %v1332_v17 = vsel %vm376_vm0, %v2111_v27, %v1088_v58 }
 0x1fb   : > { %v1333_v33 = vsel %vm376_vm0, %v2126_v34, %v1090_v59 }
 0x1fe   : > { %v1120_v63 = vpop.permute.xlu1 %1119 }
 0x1ff   : > { %v1340_v3 = vsel %vm716_vm4, %v1332_v17, %v1120_v63  ;;  %v2331_v17 = vld [vmem:[%s2408_s5] ss:$0 sm:$0xff] }
 0x200   : > { %v1348_v20 = vsel %vm734_vm6, %v1340_v3, %v1152_v54  ;;  %v2337_v3 = vld [vmem:[%s2409_s6] ss:$0 sm:$0xff] }
 0x201   : > { %v1246_v1 = vpop.permute.xlu0 %1245 }
 0x202   : > { %v1248_v4 = vpop.permute.xlu2 %1247  ;;  %v1373_v61 = vsel %vm1370_vm12, %v1364_v60, %v1246_v1 }
 0x206   : > { %v1278_v10 = vpop.permute.xlu1 %1277 }
 0x207   : > { %v1382_v51 = vsel %vm1379_vm13, %v1373_v61, %v1278_v10  ;;  %v2315_v10 = vld [vmem:[%s2411_s8] ss:$0 sm:$0xff] }
 0x208   : > { %v1391_v18 = vsel %vm1388_vm14, %v1382_v51, %v1310_v49 }
 0x209   : > { %v1184_v11 = vpop.permute.xlu0 %1183  ;;  %1604 = vmatmul.msk.f32.gmra.mxu2 %vm1406_vm15, %v1391_v18 }
 0x20a   : > { %v1186_v12 = vpop.permute.xlu2 %1185  ;;  %v1356_v23 = vsel %vm752_vm8, %v1348_v20, %v1184_v11 }
 0x20e   : > { %v1216_v13 = vpop.permute.xlu1 %1215 }
 0x20f   : > { %v1365_v24 = vsel %vm1361_vm11, %v1356_v23, %v1216_v13 }
 0x210   : > { %v1374_v26 = vsel %vm1370_vm12, %v1365_v24, %v1248_v4 }
 0x211   : > { %v1280_v14 = vpop.permute.xlu0 %1279 }
 0x212   : > { %v1124_v15 = vpop.permute.xlu2 %1123  ;;  %v1383_v29 = vsel %vm1379_vm13, %v1374_v26, %v1280_v14 }
 0x216   : > { %v1122_v21 = vpop.permute.xlu1 %1121 }
 0x217   : > { %v1341_v36 = vsel %vm716_vm4, %v1333_v33, %v1122_v21 }
 0x219   : > { %v1154_v25 = vpop.permute.xlu0 %1153 }
 0x21a   : > { %v1126_v5 = vpop.permute.xlu2 %1125  ;;  %v1349_v39 = vsel %vm734_vm6, %v1341_v36, %v1154_v25 }
 0x21b   : > { %v1357_v41 = vsel %vm752_vm8, %v1349_v39, %v1186_v12 }
 0x21e   : > { %v1312_v30 = vpop.permute.xlu1 %1311 }
 0x21f   : > { %v1392_v31 = vsel %vm1388_vm14, %v1383_v29, %v1312_v30 }
 0x220   : > { %1605 = vmatmul.msk.f32.gmra.mxu2 %vm1406_vm15, %v1392_v31 }
 0x221   : > { %v1092_v32 = vpop.permute.xlu0 %1091 }
 0x222   : > { %v1282_v27 = vpop.permute.xlu2 %1281  ;;  %v1334_v52 = vsel %vm376_vm0, %v2142_v43, %v1092_v32 }
 0x223   : > { %v1342_v53 = vsel %vm716_vm4, %v1334_v52, %v1124_v15  ;;  %v2326_v15 = vld [vmem:[%s2412_s9] ss:$0 sm:$0xff] }
 0x226   : > { %v1218_v7 = vpop.permute.xlu1 %1217 }
 0x227   : > { %v1366_v16 = vsel %vm1361_vm11, %v1357_v41, %v1218_v7 }
 0x229   : > { %v1094_v35 = vpop.permute.xlu0 %1093 }
 0x22a   : > { %v1220_v38 = vpop.permute.xlu2 %1219  ;;  %v1335_v57 = vsel %vm376_vm0, %v2192_v8, %v1094_v35 }
 0x22b   : > { %v1343_v62 = vsel %vm716_vm4, %v1335_v57, %v1126_v5 }
 0x22e   : > { %v1314_v40 = vpop.permute.xlu1 %1313 }
 0x231   : > { %v1250_v42 = vpop.permute.xlu0 %1249 }
 0x232   : > { %v1375_v44 = vsel %vm1370_vm12, %v1366_v16, %v1250_v42  ;;  %v1222_v47 = vpop.permute.xlu2 %1221 }
 0x233   : > { %v1384_v45 = vsel %vm1379_vm13, %v1375_v44, %v1282_v27 }
 0x234   : > { %v1393_v48 = vsel %vm1388_vm14, %v1384_v45, %v1314_v40 }
 0x235   : > { %1606 = vmatmul.msk.f32.gmra.mxu2 %vm1406_vm15, %v1393_v48 }
 0x236   : > { %v1156_v34 = vpop.permute.xlu1 %1155 }
 0x237   : > { %v1350_v55 = vsel %vm734_vm6, %v1342_v53, %v1156_v34  ;;  %v913_v11 = vpop.f32.mrf.mxu1 }
 0x238   : > { %v941_v14 = vmul.f32 %v2315_v10, %v913_v11 }
 0x239   : > { %v1188_v49 = vpop.permute.xlu0 %1187 }
 0x23a   : > { %v1318_v22 = vpop.permute.xlu2 %1317  ;;  %v1358_v56 = vsel %vm752_vm8, %v1350_v55, %v1188_v49  ;;  %v953_v23 = vadd.f32 %v2326_v15, %v941_v14 }
 0x23b   : > { %v1367_v58 = vsel %vm1361_vm11, %v1358_v56, %v1220_v38 }
 0x23e   : > { %v1158_v9 = vpop.permute.xlu1 %1157 }
 0x23f   : > { %v1351_v43 = vsel %vm734_vm6, %v1343_v62, %v1158_v9  ;;  %v916_v38 = vpop.f32.mrf.mxu1 }
 0x240   : > { %v942_v39 = vmul.f32 %v2315_v10, %v916_v38 }
 0x241   : > { %v1190_v50 = vpop.permute.xlu0 %1189 }
 0x242   : > { %v1160_v54 = vpop.permute.xlu2 %1159  ;;  %v1359_v6 = vsel %vm752_vm8, %v1351_v43, %v1190_v50  ;;  %v954_v41 = vadd.f32 %v2326_v15, %v942_v39 }
 0x243   : > { %v1368_v8 = vsel %vm1361_vm11, %v1359_v6, %v1222_v47 }
 0x246   : > { %v1096_v0 = vpop.permute.xlu1 %1095 }
 0x247   : > { %v1336_v18 = vsel %vm376_vm0, %v2210_v19, %v1096_v0  ;;  %v919_v45 = vpop.f32.mrf.mxu1 }
 0x248   : > { %v943_v47 = vmul.f32 %v2315_v10, %v919_v45 }
 0x249   : > { %v1128_v28 = vpop.permute.xlu0 %1127 }
 0x24a   : > { %v1316_v1 = vpop.permute.xlu2 %1315  ;;  %v1344_v19 = vsel %vm716_vm4, %v1336_v18, %v1128_v28  ;;  %v955_v34 = vadd.f32 %v2326_v15, %v943_v47 }
 0x24b   : > { %v1352_v25 = vsel %vm734_vm6, %v1344_v19, %v1160_v54 }
 0x24e   : > { %v1252_v59 = vpop.permute.xlu1 %1251 }
 0x24f   : > { %v1376_v63 = vsel %vm1370_vm12, %v1367_v58, %v1252_v59  ;;  %v922_v52 = vpop.f32.mrf.mxu1 }
 0x250   : > { %v944_v0 = vmul.f32 %v2315_v10, %v922_v52 }
 0x251   : > { %v1284_v37 = vpop.permute.xlu0 %1283 }
 0x252   : > { %v1385_v2 = vsel %vm1379_vm13, %v1376_v63, %v1284_v37  ;;  %v956_v54 = vadd.f32 %v2326_v15, %v944_v0 }
 0x253   : > { %v1394_v4 = vsel %vm1388_vm14, %v1385_v2, %v1316_v1 }
 0x254   : > { %1607 = vmatmul.msk.f32.gmra.mxu2 %vm1406_vm15, %v1394_v4 }
 0x256   : > { %v1254_v60 = vpop.permute.xlu1 %1253 }
 0x257   : > { %v1377_v61 = vsel %vm1370_vm12, %v1368_v8, %v1254_v60  ;;  %v925_v58 = vpop.f32.mrf.mxu1 }
 0x258   : > { %v945_v59 = vmul.f32 %v2315_v10, %v925_v58 }
 0x259   : > { %v1286_v51 = vpop.permute.xlu0 %1285 }
 0x25a   : > { %v1386_v12 = vsel %vm1379_vm13, %v1377_v61, %v1286_v51  ;;  %v957_v63 = vadd.f32 %v2326_v15, %v945_v59 }
 0x25b   : > { %v1395_v13 = vsel %vm1388_vm14, %v1386_v12, %v1318_v22 }
 0x25c   : > { %1608 = vmatmul.msk.f32.vlgmr.msra.gmra.mxu3 %vm1406_vm15, %v1395_v13 }
 0x25e   : > { %v1192_v21 = vpop.permute.xlu1 %1191 }
 0x25f   : > { %v1448_v20 = vpop.f32.mrf.mxu2  ;;  %v1360_v5 = vsel %vm752_vm8, %v1352_v25, %v1192_v21  ;;  %v928_v4 = vpop.f32.mrf.mxu1 }
 0x260   : > { %v1476_v24 = vmul.f32 %v2331_v17, %v1448_v20  ;;  %v946_v6 = vmul.f32 %v2315_v10, %v928_v4 }
 0x261   : > { %v1224_v26 = vpop.permute.xlu0 %1223 }
 0x262   : > { %v1488_v29 = vadd.f32 %v2337_v3, %v1476_v24  ;;  %v1369_v31 = vsel %vm1361_vm11, %v1360_v5, %v1224_v26  ;;  %v958_v60 = vadd.f32 %v2326_v15, %v946_v6 }
 0x263   : > { %v1378_v27 = vsel %vm1370_vm12, %v1369_v31, %v2149_v46 }
 0x264   : > { %v1496_v30 = vadd.f32 %v1488_v29, %v953_v23 }
 0x266   : > { %v1504_v32 = vmax.f32 %v1496_v30, 0.0  ;;  %v1288_v7 = vpop.permute.xlu1 %1287 }
 0x267   : > { %v1387_v33 = vsel %vm1379_vm13, %v1378_v27, %v1288_v7  ;;  %v931_v51 = vpop.f32.mrf.mxu1 }
 0x268   : > { %1512 = vst.msk [vmem:[%s2349_s12] sm:$0xff] %vm376_vm0, %v1504_v32  ;;  %v947_v12 = vmul.f32 %v2315_v10, %v931_v51 }
 0x269   : > { %v1320_v35 = vpop.permute.xlu0 %1319 }
 0x26a   : > { %v1396_v36 = vsel %vm1388_vm14, %v1387_v33, %v1320_v35  ;;  %v959_v19 = vadd.f32 %v2326_v15, %v947_v12 }
 0x26b   : > { %1609 = vmatmul.msk.f32.gmra.mxu3 %vm1406_vm15, %v1396_v36 }
 0x26f   : > { %v934_v25 = vpop.f32.mrf.mxu1 }
 0x270   : > { %v948_v5 = vmul.f32 %v2315_v10, %v934_v25 }
 0x272   : > { %v960_v29 = vadd.f32 %v2326_v15, %v948_v5 }
 0x275   : > { %v1451_v40 = vpop.f32.mrf.mxu2 }
 0x276   : > { %v1477_v16 = vmul.f32 %v2331_v17, %v1451_v40 }
 0x278   : > { %v1489_v46 = vadd.f32 %v2337_v3, %v1477_v16 }
 0x27a   : > { %v1497_v42 = vadd.f32 %v1489_v46, %v954_v41 }
 0x27c   : > { %v1505_v44 = vmax.f32 %v1497_v42, 0.0 }
 0x27e   : > { %1513 = vst.msk [vmem:[%s2349_s12 + $0x8] sm:$0xff] %vm376_vm0, %v1505_v44 }
 0x28c   : > { %v1454_v48 = vpop.f32.mrf.mxu2 }
 0x28d   : > { %v1478_v49 = vmul.f32 %v2331_v17, %v1454_v48 }
 0x28f   : > { %v1490_v22 = vadd.f32 %v2337_v3, %v1478_v49 }
 0x291   : > { %v1498_v9 = vadd.f32 %v1490_v22, %v955_v34 }
 0x293   : > { %v1506_v50 = vmax.f32 %v1498_v9, 0.0 }
 0x295   : > { %1514 = vst.msk [vmem:[%s2349_s12 + $0x10] sm:$0xff] %vm376_vm0, %v1506_v50 }
 0x2a3   : > { %v1457_v53 = vpop.f32.mrf.mxu2 }
 0x2a4   : > { %v1479_v55 = vmul.f32 %v2331_v17, %v1457_v53 }
 0x2a6   : > { %v1491_v28 = vadd.f32 %v2337_v3, %v1479_v55 }
 0x2a8   : > { %v1499_v56 = vadd.f32 %v1491_v28, %v956_v54 }
 0x2aa   : > { %v1507_v57 = vmax.f32 %v1499_v56, 0.0 }
 0x2ac   : > { %1515 = vst.msk [vmem:[%s2349_s12 + $0x18] sm:$0xff] %vm376_vm0, %v1507_v57 }
 0x2b8   : > { %v1460_v62 = vpop.f32.mrf.mxu2 }
 0x2b9   : > { %v1480_v43 = vmul.f32 %v2331_v17, %v1460_v62 }
 0x2bb   : > { %v1492_v37 = vadd.f32 %v2337_v3, %v1480_v43 }
 0x2bd   : > { %v1500_v1 = vadd.f32 %v1492_v37, %v957_v63 }
 0x2bf   : > { %v1508_v2 = vmax.f32 %v1500_v1, 0.0 }
 0x2c1   : > { %1516 = vst.msk [vmem:[%s2349_s12 + $0x20] sm:$0xff] %vm376_vm0, %v1508_v2 }
 0x2d7   : > { %v1463_v8 = vpop.f32.mrf.mxu2 }
 0x2d8   : > { %v1481_v61 = vmul.f32 %v2331_v17, %v1463_v8 }
 0x2da   : > { %v1493_v11 = vadd.f32 %v2337_v3, %v1481_v61 }
 0x2dc   : > { %v1501_v18 = vadd.f32 %v1493_v11, %v958_v60 }
 0x2de   : > { %v1509_v13 = vmax.f32 %v1501_v18, 0.0 }
 0x2df   : > { %v1466_v14 = vpop.f32.mrf.mxu3 }
 0x2e0   : > { %1517 = vst.msk [vmem:[%s2349_s12 + $0x28] sm:$0xff] %vm376_vm0, %v1509_v13  ;;  %v1482_v20 = vmul.f32 %v2331_v17, %v1466_v14 }
 0x2e2   : > { %v1494_v21 = vadd.f32 %v2337_v3, %v1482_v20 }
 0x2e4   : > { %v1502_v23 = vadd.f32 %v1494_v21, %v959_v19 }
 0x2e6   : > { %v1510_v24 = vmax.f32 %v1502_v23, 0.0 }
 0x2e8   : > { %1518 = vst.msk [vmem:[%s2349_s12 + $0x30] sm:$0xff] %vm376_vm0, %v1510_v24 }
 0x2ee   : > { %v1469_v26 = vpop.f32.mrf.mxu3 }
 0x2ef   : > { %v1483_v30 = vmul.f32 %v2331_v17, %v1469_v26 }
 0x2f1   : > { %v1495_v31 = vadd.f32 %v2337_v3, %v1483_v30 }
 0x2f3   : > { %v1503_v32 = vadd.f32 %v1495_v31, %v960_v29 }
 0x2f5   : > { %v1511_v27 = vmax.f32 %v1503_v32, 0.0 }
 0x2f7   : > { %1519 = vst.msk [vmem:[%s2349_s12 + $0x38] sm:$0xff] %vm376_vm0, %v1511_v27 }
 0x2f8 PF: > { %s20_s13 = sadd.s32 1, %s1656_s13  }
 0x2f9   : > { %p17_p4 = scmp.ge.s32.totalorder %s20_s13, 4  }
 0x2fb   :  { %19 = sbr.rel (!%p17_p4) target bundleno = 1 (0x1), region = 94 }

</bundles_post_ra>
